<compile_context>
chip_gen: v7x
topology: tpu7x:2x2x1
jax: 0.10.0
libtpu: 0.0.40
codegen_flags: <defaults>
</compile_context>

<pallas_src>
import functools

import jax
import jax.numpy as jnp
from jax.experimental import pallas as pl
from jax.experimental.pallas import tpu as pltpu


def _round_up(x, m):
    return (x + m - 1) // m * m


def lstm_fc_kernel(x_ref, wih0_ref, whh0_ref, b0_ref,
                   wih1_ref, whh1_ref, b1_ref, wfc_ref, bfc_ref,
                   out_ref,
                   gx_ref, h0seq_ref, h0_ref, c0_ref, h1_ref, c1_ref,
                   *, hidden_pad, chunk, seq_len, mask_tail, unroll, mxu_dtype):
    Hp = hidden_pad
    Tc = chunk
    ci = pl.program_id(0)
    t0 = ci * Tc                      # global index of this chunk's first step

    @pl.when(ci == 0)
    def _init():
        h0_ref[...] = jnp.zeros_like(h0_ref)
        c0_ref[...] = jnp.zeros_like(c0_ref)
        h1_ref[...] = jnp.zeros_like(h1_ref)
        c1_ref[...] = jnp.zeros_like(c1_ref)

    def gate_update(gates, c_prev):
        # Packed gate order (i, f, o, g): one contiguous sigmoid slab + tanh.
        # All slice boundaries are multiples of Hp (a multiple of 128 lanes).
        sig = jax.nn.sigmoid(gates[:, :3 * Hp])
        i_g = sig[:, 0 * Hp:1 * Hp]
        f_g = sig[:, 1 * Hp:2 * Hp]
        o_g = sig[:, 2 * Hp:3 * Hp]
        g_g = jnp.tanh(gates[:, 3 * Hp:])
        c_new = f_g * c_prev + i_g * g_g
        h_new = o_g * jnp.tanh(c_new)
        return h_new, c_new

    def masked(t, new, old):
        # Keep carried state on padded tail timesteps (static no-op otherwise).
        if not mask_tail:
            return new
        return jnp.where(t0 + t < seq_len, new, old)

    # ---- Layer 0: batched input projection (one MXU matmul per chunk) -------
    x = x_ref[...]                                          # (Tc, Bp, I)
    bp = x.shape[1]
    gx0 = jnp.dot(x.reshape(Tc * bp, x.shape[2]).astype(mxu_dtype),
                  wih0_ref[...], preferred_element_type=jnp.float32)
    gx_ref[...] = (gx0 + b0_ref[...]).reshape(Tc, bp, 4 * Hp)

    # ---- Layer 0: serial recurrence (one small recurrent matmul per step) ---
    whh0 = whh0_ref[...]

    def step0(t, carry):
        h, c = carry
        gates = jnp.dot(h.astype(mxu_dtype), whh0,
                        preferred_element_type=jnp.float32) + gx_ref[t]
        h_new, c_new = gate_update(gates, c)
        h_new = masked(t, h_new, h)
        c_new = masked(t, c_new, c)
        h0seq_ref[t] = h_new
        return h_new, c_new

    h0, c0 = jax.lax.fori_loop(0, Tc, step0, (h0_ref[...], c0_ref[...]),
                               unroll=unroll)
    h0_ref[...] = h0
    c0_ref[...] = c0

    # ---- Layer 1: batched input projection over the chunk's h0 sequence -----
    h0s = h0seq_ref[...].reshape(Tc * bp, Hp)
    gx1 = jnp.dot(h0s.astype(mxu_dtype), wih1_ref[...],
                  preferred_element_type=jnp.float32)
    gx_ref[...] = (gx1 + b1_ref[...]).reshape(Tc, bp, 4 * Hp)

    # ---- Layer 1: serial recurrence -----------------------------------------
    whh1 = whh1_ref[...]

    def step1(t, carry):
        h, c = carry
        gates = jnp.dot(h.astype(mxu_dtype), whh1,
                        preferred_element_type=jnp.float32) + gx_ref[t]
        h_new, c_new = gate_update(gates, c)
        return masked(t, h_new, h), masked(t, c_new, c)

    h1, c1 = jax.lax.fori_loop(0, Tc, step1, (h1_ref[...], c1_ref[...]),
                               unroll=unroll)
    h1_ref[...] = h1
    c1_ref[...] = c1

    # ---- FC on the last valid timestep's top-layer hidden state -------------
    @pl.when(ci == pl.num_programs(0) - 1)
    def _final():
        out_ref[...] = (jnp.dot(h1.astype(mxu_dtype), wfc_ref[...],
                                preferred_element_type=jnp.float32)
                        + bfc_ref[...])


def _pack_lstm_layer(w_ih, w_hh, b_ih, b_hh, H, Hp, in_pad):
    """torch layout (4H, in) / (4H, H), gate order (i, f, g, o)  ->
       W_ih (in_pad, 4Hp), W_hh (Hp, 4Hp), b (1, 4Hp) in gate order (i, f, o, g),
       each gate block zero-padded from H to Hp columns (Hp multiple of 128)."""
    def reorder_pad_cols(a):                           # (rows, 4H) -> (rows, 4Hp)
        gi, gf, gg, go = jnp.split(a, 4, axis=1)
        pad = ((0, 0), (0, Hp - H))
        return jnp.concatenate([jnp.pad(g, pad) for g in (gi, gf, go, gg)],
                               axis=1)

    in_dim = w_ih.shape[1]
    w_ih_p = jnp.pad(reorder_pad_cols(w_ih.T), ((0, in_pad - in_dim), (0, 0)))
    w_hh_p = jnp.pad(reorder_pad_cols(w_hh.T), ((0, Hp - H), (0, 0)))
    b_p = reorder_pad_cols((b_ih + b_hh).reshape(1, 4 * H))
    return w_ih_p, w_hh_p, b_p


def rnn_forward(x, params, *, max_chunk=64, mxu_dtype=jnp.float32):
    """x: (B, T, I) float32, or (T, I) treated as batch of 1 (like the module)."""
    if x.ndim == 2:
        x = x[None]
    x = x.astype(jnp.float32)
    B, T, I = x.shape
    H = params["w_hh_l0"].shape[1]
    O = params["fc_w"].shape[0]

    Bp = _round_up(max(B, 8), 8)          # f32 sublane quantum
    Hp = _round_up(max(H, 128), 128)      # vreg-aligned gate blocks
    Op = _round_up(max(O, 128), 128)      # lane-dense FC output (unmasked vst)

    Tc = min(T, max_chunk)                # timesteps per grid step
    n_chunks = pl.cdiv(T, Tc)
    Tp = n_chunks * Tc                    # padded sequence length
    mask_tail = Tp != T

    # Pack torch-layout parameters into the fused / padded kernel layout.
    wih0, whh0, b0 = _pack_lstm_layer(params["w_ih_l0"], params["w_hh_l0"],
                                      params["b_ih_l0"], params["b_hh_l0"],
                                      H, Hp, I)
    wih1, whh1, b1 = _pack_lstm_layer(params["w_ih_l1"], params["w_hh_l1"],
                                      params["b_ih_l1"], params["b_hh_l1"],
                                      H, Hp, Hp)
    wfc = jnp.pad(params["fc_w"].T, ((0, Hp - H), (0, Op - O)))
    bfc = jnp.pad(params["fc_b"].reshape(1, O), ((0, 0), (0, Op - O)))

    # Time-major, batch/time padded; cast only the MXU operands.
    x_tm = jnp.transpose(x, (1, 0, 2))
    x_tm = jnp.pad(x_tm, ((0, Tp - T), (0, Bp - B), (0, 0))).astype(mxu_dtype)
    wih0, whh0, wih1, whh1, wfc = [w.astype(mxu_dtype)
                                   for w in (wih0, whh0, wih1, whh1, wfc)]

    # Full unroll only while everything is tiny; otherwise cap to limit vreg
    # pressure / spills on the serial path.
    unroll = Tc if (Hp <= 128 and Tc <= 16) else min(Tc, 8)

    # Scoped-VMEM budget: double-buffered inputs/outputs + scratch, 2x margin.
    wbytes = jnp.dtype(mxu_dtype).itemsize
    est = (2 * Tc * Bp * I * wbytes                              # x chunk
           + 2 * ((I + 3 * Hp) * 4 * Hp + Hp * Op) * wbytes      # weights
           + 2 * (2 * 4 * Hp + Op) * 4                           # biases
           + 2 * Bp * Op * 4                                     # output
           + (Tc * Bp * 4 * Hp + Tc * Bp * Hp + 4 * Bp * Hp) * 4)  # scratch
    vmem_limit = int(min(max(2 * est, 32 * 1024 * 1024), 100 * 1024 * 1024))

    kernel = functools.partial(
        lstm_fc_kernel, hidden_pad=Hp, chunk=Tc, seq_len=T,
        mask_tail=mask_tail, unroll=unroll, mxu_dtype=mxu_dtype)

    out = pl.pallas_call(
        kernel,
        out_shape=jax.ShapeDtypeStruct((Bp, Op), jnp.float32),
        grid_spec=pltpu.PrefetchScalarGridSpec(
            num_scalar_prefetch=0,
            grid=(n_chunks,),
            in_specs=[
                pl.BlockSpec((Tc, Bp, I), lambda c: (c, 0, 0)),     # x chunk
                pl.BlockSpec((I, 4 * Hp), lambda c: (0, 0)),        # W_ih l0
                pl.BlockSpec((Hp, 4 * Hp), lambda c: (0, 0)),       # W_hh l0
                pl.BlockSpec((1, 4 * Hp), lambda c: (0, 0)),        # bias  l0
                pl.BlockSpec((Hp, 4 * Hp), lambda c: (0, 0)),       # W_ih l1
                pl.BlockSpec((Hp, 4 * Hp), lambda c: (0, 0)),       # W_hh l1
                pl.BlockSpec((1, 4 * Hp), lambda c: (0, 0)),        # bias  l1
                pl.BlockSpec((Hp, Op), lambda c: (0, 0)),           # fc weight
                pl.BlockSpec((1, Op), lambda c: (0, 0)),            # fc bias
                # NOTE(v7x, large H): add pipeline_mode=pl.Buffered(1) to the
                # grid-invariant weight specs to single-buffer them under the
                # 64 MiB VMEM budget.
            ],
            out_specs=pl.BlockSpec((Bp, Op), lambda c: (0, 0)),
            scratch_shapes=[
                pltpu.VMEM((Tc, Bp, 4 * Hp), jnp.float32),  # gate pre-acts
                pltpu.VMEM((Tc, Bp, Hp), jnp.float32),      # layer-0 h sequence
                pltpu.VMEM((Bp, Hp), jnp.float32),          # h0
                pltpu.VMEM((Bp, Hp), jnp.float32),          # c0
                pltpu.VMEM((Bp, Hp), jnp.float32),          # h1
                pltpu.VMEM((Bp, Hp), jnp.float32),          # c1
            ],
        ),
        compiler_params=pltpu.CompilerParams(
            dimension_semantics=("arbitrary",),   # time recurrence: sequential
            vmem_limit_bytes=vmem_limit),
    )(x_tm, wih0, whh0, b0, wih1, whh1, b1, wfc, bfc)

    return out[:B, :O]


def init_params(key, input_size, hidden_size, output_size):
    """Parameters in torch nn.LSTM(num_layers=2) / nn.Linear layout,
    gate order (i, f, g, o), init U(-1/sqrt(H), 1/sqrt(H))."""
    H = hidden_size
    k = 1.0 / float(H) ** 0.5
    keys = jax.random.split(key, 10)

    def u(kk, shape):
        return jax.random.uniform(kk, shape, jnp.float32, -k, k)

    return {
        "w_ih_l0": u(keys[0], (4 * H, input_size)),
        "w_hh_l0": u(keys[1], (4 * H, H)),
        "b_ih_l0": u(keys[2], (4 * H,)),
        "b_hh_l0": u(keys[3], (4 * H,)),
        "w_ih_l1": u(keys[4], (4 * H, H)),
        "w_hh_l1": u(keys[5], (4 * H, H)),
        "b_ih_l1": u(keys[6], (4 * H,)),
        "b_hh_l1": u(keys[7], (4 * H,)),
        "fc_w": u(keys[8], (output_size, H)),
        "fc_b": u(keys[9], (output_size,)),
    }


def ref_forward(x, params):
    """Pure-JAX reference with torch semantics: 2-layer LSTM + FC(last step)."""
    if x.ndim == 2:
        x = x[None]
    B, T, _ = x.shape
    H = params["w_hh_l0"].shape[1]
    hi = jax.lax.Precision.HIGHEST

    def cell(x_t, h, c, w_ih, w_hh, b_ih, b_hh):
        g = (jnp.dot(x_t, w_ih.T, precision=hi) + b_ih
             + jnp.dot(h, w_hh.T, precision=hi) + b_hh)
        i, f, gg, o = jnp.split(g, 4, axis=-1)       # torch gate order (i,f,g,o)
        c = jax.nn.sigmoid(f) * c + jax.nn.sigmoid(i) * jnp.tanh(gg)
        h = jax.nn.sigmoid(o) * jnp.tanh(c)
        return h, c

    h0 = c0 = h1 = c1 = jnp.zeros((B, H), jnp.float32)
    for t in range(T):
        h0, c0 = cell(x[:, t], h0, c0, params["w_ih_l0"], params["w_hh_l0"],
                      params["b_ih_l0"], params["b_hh_l0"])
        h1, c1 = cell(h0, h1, c1, params["w_ih_l1"], params["w_hh_l1"],
                      params["b_ih_l1"], params["b_hh_l1"])
    return jnp.dot(h1, params["fc_w"].T, precision=hi) + params["fc_b"]


if __name__ == "__main__":
    B, T, I, H, O = 2, 8, 16, 32, 10

    key = jax.random.PRNGKey(0)
    k_x, k_p = jax.random.split(key)
    x = jax.random.normal(k_x, (B, T, I), dtype=jnp.float32)
    params = init_params(k_p, I, H, O)

    out = jax.block_until_ready(rnn_forward(x, params))
    ref = ref_forward(x, params)
    assert out.shape == (B, O), out.shape
    assert jnp.allclose(out, ref, atol=1e-3, rtol=1e-3), (
        float(jnp.max(jnp.abs(out - ref))))

    # Exercise the multi-chunk + padded-tail path (T not divisible by chunk).
    x2 = jax.random.normal(jax.random.PRNGKey(1), (B, 13, I), dtype=jnp.float32)
    out2 = jax.block_until_ready(rnn_forward(x2, params, max_chunk=4))
    ref2 = ref_forward(x2, params)
    assert jnp.allclose(out2, ref2, atol=1e-3, rtol=1e-3), (
        float(jnp.max(jnp.abs(out2 - ref2))))

    print("KERNEL_OK")
</pallas_src>

<mosaic_0001>
module attributes {stable_mosaic.version = 11 : i64} {
  func.func @lstm_fc_kernel(%arg0: i32, %arg1: memref<8x8x16xf32, #tpu.memory_space<vmem>>, %arg2: memref<16x512xf32, #tpu.memory_space<vmem>>, %arg3: memref<128x512xf32, #tpu.memory_space<vmem>>, %arg4: memref<1x512xf32, #tpu.memory_space<vmem>>, %arg5: memref<128x512xf32, #tpu.memory_space<vmem>>, %arg6: memref<128x512xf32, #tpu.memory_space<vmem>>, %arg7: memref<1x512xf32, #tpu.memory_space<vmem>>, %arg8: memref<128x128xf32, #tpu.memory_space<vmem>>, %arg9: memref<1x128xf32, #tpu.memory_space<vmem>>, %arg10: memref<8x128xf32, #tpu.memory_space<vmem>>, %arg11: memref<8x8x512xf32, #tpu.memory_space<vmem>>, %arg12: memref<8x8x128xf32, #tpu.memory_space<vmem>>, %arg13: memref<8x128xf32, #tpu.memory_space<vmem>>, %arg14: memref<8x128xf32, #tpu.memory_space<vmem>>, %arg15: memref<8x128xf32, #tpu.memory_space<vmem>>, %arg16: memref<8x128xf32, #tpu.memory_space<vmem>>) attributes {dimension_semantics = [#tpu.dimension_semantics<arbitrary>], iteration_bounds = array<i64: 1>, scalar_prefetch = 0 : i64, scratch_operands = 6 : i64, tpu.core_type = #tpu.core_type<tc>, window_params = [{transform_indices = @transform_0, window_bounds = array<i64: 8, 8, 16>}, {pipeline_mode = #tpu.pipeline_mode<synchronous>, transform_indices = @transform_1, window_bounds = array<i64: 16, 512>}, {pipeline_mode = #tpu.pipeline_mode<synchronous>, transform_indices = @transform_2, window_bounds = array<i64: 128, 512>}, {pipeline_mode = #tpu.pipeline_mode<synchronous>, transform_indices = @transform_3, window_bounds = array<i64: 1, 512>}, {pipeline_mode = #tpu.pipeline_mode<synchronous>, transform_indices = @transform_4, window_bounds = array<i64: 128, 512>}, {pipeline_mode = #tpu.pipeline_mode<synchronous>, transform_indices = @transform_5, window_bounds = array<i64: 128, 512>}, {pipeline_mode = #tpu.pipeline_mode<synchronous>, transform_indices = @transform_6, window_bounds = array<i64: 1, 512>}, {pipeline_mode = #tpu.pipeline_mode<synchronous>, transform_indices = @transform_7, window_bounds = array<i64: 128, 128>}, {pipeline_mode = #tpu.pipeline_mode<synchronous>, transform_indices = @transform_8, window_bounds = array<i64: 1, 128>}, {pipeline_mode = #tpu.pipeline_mode<synchronous>, transform_indices = @transform_9, window_bounds = array<i64: 8, 128>}]} {
    %c0_i32 = arith.constant 0 : i32
    %0 = arith.cmpi eq, %arg0, %c0_i32 : i32
    %1 = arith.extui %0 : i1 to i32
    %c0_i32_0 = arith.constant 0 : i32
    %2 = arith.cmpi ne, %1, %c0_i32_0 : i32
    scf.if %2 {
      %cst_133 = arith.constant 0.000000e+00 : f32
      %402 = vector.broadcast %cst_133 : f32 to vector<8x128xf32>
      %c0_134 = arith.constant 0 : index
      %c0_135 = arith.constant 0 : index
      %403 = vector.load %arg13[%c0_134, %c0_135] : memref<8x128xf32, #tpu.memory_space<vmem>>, vector<8x128xf32>
      tpu.vector_store %arg13[%c0_134, %c0_135], %402 {strides = array<i32>} : memref<8x128xf32, #tpu.memory_space<vmem>>, vector<8x128xf32>,
      %cst_136 = arith.constant 0.000000e+00 : f32
      %404 = vector.broadcast %cst_136 : f32 to vector<8x128xf32>
      %c0_137 = arith.constant 0 : index
      %c0_138 = arith.constant 0 : index
      %405 = vector.load %arg14[%c0_137, %c0_138] : memref<8x128xf32, #tpu.memory_space<vmem>>, vector<8x128xf32>
      tpu.vector_store %arg14[%c0_137, %c0_138], %404 {strides = array<i32>} : memref<8x128xf32, #tpu.memory_space<vmem>>, vector<8x128xf32>,
      %cst_139 = arith.constant 0.000000e+00 : f32
      %406 = vector.broadcast %cst_139 : f32 to vector<8x128xf32>
      %c0_140 = arith.constant 0 : index
      %c0_141 = arith.constant 0 : index
      %407 = vector.load %arg15[%c0_140, %c0_141] : memref<8x128xf32, #tpu.memory_space<vmem>>, vector<8x128xf32>
      tpu.vector_store %arg15[%c0_140, %c0_141], %406 {strides = array<i32>} : memref<8x128xf32, #tpu.memory_space<vmem>>, vector<8x128xf32>,
      %cst_142 = arith.constant 0.000000e+00 : f32
      %408 = vector.broadcast %cst_142 : f32 to vector<8x128xf32>
      %c0_143 = arith.constant 0 : index
      %c0_144 = arith.constant 0 : index
      %409 = vector.load %arg16[%c0_143, %c0_144] : memref<8x128xf32, #tpu.memory_space<vmem>>, vector<8x128xf32>
      tpu.vector_store %arg16[%c0_143, %c0_144], %408 {strides = array<i32>} : memref<8x128xf32, #tpu.memory_space<vmem>>, vector<8x128xf32>,
    } else {
    }
    %c0 = arith.constant 0 : index
    %c0_1 = arith.constant 0 : index
    %c0_2 = arith.constant 0 : index
    %3 = vector.load %arg1[%c0, %c0_1, %c0_2] : memref<8x8x16xf32, #tpu.memory_space<vmem>>, vector<8x8x16xf32>
    %4 = vector.shape_cast %3 : vector<8x8x16xf32> to vector<64x16xf32>
    %c0_3 = arith.constant 0 : index
    %c0_4 = arith.constant 0 : index
    %5 = vector.load %arg2[%c0_3, %c0_4] : memref<16x512xf32, #tpu.memory_space<vmem>>, vector<16x512xf32>
    %cst = arith.constant dense<0.000000e+00> : vector<64x512xf32>
    %6 = tpu.matmul %4, %5, %cst {dimension_numbers = #tpu.dot_dimension_numbers<[1], [0], [0], [1], [0, 0, 1, 1], [], []>} : vector<64x16xf32>, vector<16x512xf32>, vector<64x512xf32> -> vector<64x512xf32>
    %c0_5 = arith.constant 0 : index
    %c0_6 = arith.constant 0 : index
    %7 = vector.load %arg4[%c0_5, %c0_6] : memref<1x512xf32, #tpu.memory_space<vmem>>, vector<1x512xf32>
    %8 = vector.broadcast %7 : vector<1x512xf32> to vector<64x512xf32>
    %9 = arith.addf %6, %8 : vector<64x512xf32>
    %10 = vector.shape_cast %9 : vector<64x512xf32> to vector<8x8x512xf32>
    %c0_7 = arith.constant 0 : index
    %c0_8 = arith.constant 0 : index
    %c0_9 = arith.constant 0 : index
    %11 = vector.load %arg11[%c0_7, %c0_8, %c0_9] : memref<8x8x512xf32, #tpu.memory_space<vmem>>, vector<8x8x512xf32>
    tpu.vector_store %arg11[%c0_7, %c0_8, %c0_9], %10 {strides = array<i32>} : memref<8x8x512xf32, #tpu.memory_space<vmem>>, vector<8x8x512xf32>,
    %c0_10 = arith.constant 0 : index
    %c0_11 = arith.constant 0 : index
    %12 = vector.load %arg3[%c0_10, %c0_11] : memref<128x512xf32, #tpu.memory_space<vmem>>, vector<128x512xf32>
    %c0_12 = arith.constant 0 : index
    %c0_13 = arith.constant 0 : index
    %13 = vector.load %arg13[%c0_12, %c0_13] : memref<8x128xf32, #tpu.memory_space<vmem>>, vector<8x128xf32>
    %c0_14 = arith.constant 0 : index
    %c0_15 = arith.constant 0 : index
    %14 = vector.load %arg14[%c0_14, %c0_15] : memref<8x128xf32, #tpu.memory_space<vmem>>, vector<8x128xf32>
    %c0_i32_16 = arith.constant 0 : i32
    %cst_17 = arith.constant dense<0.000000e+00> : vector<8x512xf32>
    %15 = tpu.matmul %13, %12, %cst_17 {dimension_numbers = #tpu.dot_dimension_numbers<[1], [0], [0], [1], [0, 0, 1, 1], [], []>} : vector<8x128xf32>, vector<128x512xf32>, vector<8x512xf32> -> vector<8x512xf32>
    %16 = arith.index_cast %c0_i32_16 : i32 to index
    %c0_18 = arith.constant 0 : index
    %c0_19 = arith.constant 0 : index
    %17 = vector.load %arg11[%16, %c0_18, %c0_19] : memref<8x8x512xf32, #tpu.memory_space<vmem>>, vector<1x8x512xf32>
    %18 = vector.shape_cast %17 : vector<1x8x512xf32> to vector<8x512xf32>
    %19 = arith.addf %15, %18 : vector<8x512xf32>
    %20 = vector.extract_strided_slice %19 {offsets = [0, 0], sizes = [8, 384], strides = [1, 1]} : vector<8x512xf32> to vector<8x384xf32>
    %21 = arith.negf %20 : vector<8x384xf32>
    %22 = math.exp %21 : vector<8x384xf32>
    %cst_20 = arith.constant 1.000000e+00 : f32
    %23 = vector.broadcast %cst_20 : f32 to vector<8x384xf32>
    %24 = arith.addf %23, %22 : vector<8x384xf32>
    %25 = arith.divf %23, %24 : vector<8x384xf32>
    %26 = vector.extract_strided_slice %25 {offsets = [0, 0], sizes = [8, 128], strides = [1, 1]} : vector<8x384xf32> to vector<8x128xf32>
    %27 = vector.extract_strided_slice %25 {offsets = [0, 128], sizes = [8, 128], strides = [1, 1]} : vector<8x384xf32> to vector<8x128xf32>
    %28 = vector.extract_strided_slice %25 {offsets = [0, 256], sizes = [8, 128], strides = [1, 1]} : vector<8x384xf32> to vector<8x128xf32>
    %29 = vector.extract_strided_slice %19 {offsets = [0, 384], sizes = [8, 128], strides = [1, 1]} : vector<8x512xf32> to vector<8x128xf32>
    %30 = math.tanh %29 : vector<8x128xf32>
    %31 = arith.mulf %27, %14 : vector<8x128xf32>
    %32 = arith.mulf %26, %30 : vector<8x128xf32>
    %33 = arith.addf %31, %32 : vector<8x128xf32>
    %34 = math.tanh %33 : vector<8x128xf32>
    %35 = arith.mulf %28, %34 : vector<8x128xf32>
    %36 = arith.index_cast %c0_i32_16 : i32 to index
    %c0_21 = arith.constant 0 : index
    %c0_22 = arith.constant 0 : index
    %37 = vector.load %arg12[%36, %c0_21, %c0_22] : memref<8x8x128xf32, #tpu.memory_space<vmem>>, vector<1x8x128xf32>
    %38 = vector.shape_cast %37 : vector<1x8x128xf32> to vector<8x128xf32>
    %39 = vector.shape_cast %35 : vector<8x128xf32> to vector<1x8x128xf32>
    tpu.vector_store %arg12[%36, %c0_21, %c0_22], %39 {strides = array<i32>} : memref<8x8x128xf32, #tpu.memory_space<vmem>>, vector<1x8x128xf32>,
    %c1_i32 = arith.constant 1 : i32
    %cst_23 = arith.constant dense<0.000000e+00> : vector<8x512xf32>
    %40 = tpu.matmul %35, %12, %cst_23 {dimension_numbers = #tpu.dot_dimension_numbers<[1], [0], [0], [1], [0, 0, 1, 1], [], []>} : vector<8x128xf32>, vector<128x512xf32>, vector<8x512xf32> -> vector<8x512xf32>
    %41 = arith.index_cast %c1_i32 : i32 to index
    %c0_24 = arith.constant 0 : index
    %c0_25 = arith.constant 0 : index
    %42 = vector.load %arg11[%41, %c0_24, %c0_25] : memref<8x8x512xf32, #tpu.memory_space<vmem>>, vector<1x8x512xf32>
    %43 = vector.shape_cast %42 : vector<1x8x512xf32> to vector<8x512xf32>
    %44 = arith.addf %40, %43 : vector<8x512xf32>
    %45 = vector.extract_strided_slice %44 {offsets = [0, 0], sizes = [8, 384], strides = [1, 1]} : vector<8x512xf32> to vector<8x384xf32>
    %46 = arith.negf %45 : vector<8x384xf32>
    %47 = math.exp %46 : vector<8x384xf32>
    %cst_26 = arith.constant 1.000000e+00 : f32
    %48 = vector.broadcast %cst_26 : f32 to vector<8x384xf32>
    %49 = arith.addf %48, %47 : vector<8x384xf32>
    %50 = arith.divf %48, %49 : vector<8x384xf32>
    %51 = vector.extract_strided_slice %50 {offsets = [0, 0], sizes = [8, 128], strides = [1, 1]} : vector<8x384xf32> to vector<8x128xf32>
    %52 = vector.extract_strided_slice %50 {offsets = [0, 128], sizes = [8, 128], strides = [1, 1]} : vector<8x384xf32> to vector<8x128xf32>
    %53 = vector.extract_strided_slice %50 {offsets = [0, 256], sizes = [8, 128], strides = [1, 1]} : vector<8x384xf32> to vector<8x128xf32>
    %54 = vector.extract_strided_slice %44 {offsets = [0, 384], sizes = [8, 128], strides = [1, 1]} : vector<8x512xf32> to vector<8x128xf32>
    %55 = math.tanh %54 : vector<8x128xf32>
    %56 = arith.mulf %52, %33 : vector<8x128xf32>
    %57 = arith.mulf %51, %55 : vector<8x128xf32>
    %58 = arith.addf %56, %57 : vector<8x128xf32>
    %59 = math.tanh %58 : vector<8x128xf32>
    %60 = arith.mulf %53, %59 : vector<8x128xf32>
    %61 = arith.index_cast %c1_i32 : i32 to index
    %c0_27 = arith.constant 0 : index
    %c0_28 = arith.constant 0 : index
    %62 = vector.load %arg12[%61, %c0_27, %c0_28] : memref<8x8x128xf32, #tpu.memory_space<vmem>>, vector<1x8x128xf32>
    %63 = vector.shape_cast %62 : vector<1x8x128xf32> to vector<8x128xf32>
    %64 = vector.shape_cast %60 : vector<8x128xf32> to vector<1x8x128xf32>
    tpu.vector_store %arg12[%61, %c0_27, %c0_28], %64 {strides = array<i32>} : memref<8x8x128xf32, #tpu.memory_space<vmem>>, vector<1x8x128xf32>,
    %c2_i32 = arith.constant 2 : i32
    %cst_29 = arith.constant dense<0.000000e+00> : vector<8x512xf32>
    %65 = tpu.matmul %60, %12, %cst_29 {dimension_numbers = #tpu.dot_dimension_numbers<[1], [0], [0], [1], [0, 0, 1, 1], [], []>} : vector<8x128xf32>, vector<128x512xf32>, vector<8x512xf32> -> vector<8x512xf32>
    %66 = arith.index_cast %c2_i32 : i32 to index
    %c0_30 = arith.constant 0 : index
    %c0_31 = arith.constant 0 : index
    %67 = vector.load %arg11[%66, %c0_30, %c0_31] : memref<8x8x512xf32, #tpu.memory_space<vmem>>, vector<1x8x512xf32>
    %68 = vector.shape_cast %67 : vector<1x8x512xf32> to vector<8x512xf32>
    %69 = arith.addf %65, %68 : vector<8x512xf32>
    %70 = vector.extract_strided_slice %69 {offsets = [0, 0], sizes = [8, 384], strides = [1, 1]} : vector<8x512xf32> to vector<8x384xf32>
    %71 = arith.negf %70 : vector<8x384xf32>
    %72 = math.exp %71 : vector<8x384xf32>
    %cst_32 = arith.constant 1.000000e+00 : f32
    %73 = vector.broadcast %cst_32 : f32 to vector<8x384xf32>
    %74 = arith.addf %73, %72 : vector<8x384xf32>
    %75 = arith.divf %73, %74 : vector<8x384xf32>
    %76 = vector.extract_strided_slice %75 {offsets = [0, 0], sizes = [8, 128], strides = [1, 1]} : vector<8x384xf32> to vector<8x128xf32>
    %77 = vector.extract_strided_slice %75 {offsets = [0, 128], sizes = [8, 128], strides = [1, 1]} : vector<8x384xf32> to vector<8x128xf32>
    %78 = vector.extract_strided_slice %75 {offsets = [0, 256], sizes = [8, 128], strides = [1, 1]} : vector<8x384xf32> to vector<8x128xf32>
    %79 = vector.extract_strided_slice %69 {offsets = [0, 384], sizes = [8, 128], strides = [1, 1]} : vector<8x512xf32> to vector<8x128xf32>
    %80 = math.tanh %79 : vector<8x128xf32>
    %81 = arith.mulf %77, %58 : vector<8x128xf32>
    %82 = arith.mulf %76, %80 : vector<8x128xf32>
    %83 = arith.addf %81, %82 : vector<8x128xf32>
    %84 = math.tanh %83 : vector<8x128xf32>
    %85 = arith.mulf %78, %84 : vector<8x128xf32>
    %86 = arith.index_cast %c2_i32 : i32 to index
    %c0_33 = arith.constant 0 : index
    %c0_34 = arith.constant 0 : index
    %87 = vector.load %arg12[%86, %c0_33, %c0_34] : memref<8x8x128xf32, #tpu.memory_space<vmem>>, vector<1x8x128xf32>
    %88 = vector.shape_cast %87 : vector<1x8x128xf32> to vector<8x128xf32>
    %89 = vector.shape_cast %85 : vector<8x128xf32> to vector<1x8x128xf32>
    tpu.vector_store %arg12[%86, %c0_33, %c0_34], %89 {strides = array<i32>} : memref<8x8x128xf32, #tpu.memory_space<vmem>>, vector<1x8x128xf32>,
    %c3_i32 = arith.constant 3 : i32
    %cst_35 = arith.constant dense<0.000000e+00> : vector<8x512xf32>
    %90 = tpu.matmul %85, %12, %cst_35 {dimension_numbers = #tpu.dot_dimension_numbers<[1], [0], [0], [1], [0, 0, 1, 1], [], []>} : vector<8x128xf32>, vector<128x512xf32>, vector<8x512xf32> -> vector<8x512xf32>
    %91 = arith.index_cast %c3_i32 : i32 to index
    %c0_36 = arith.constant 0 : index
    %c0_37 = arith.constant 0 : index
    %92 = vector.load %arg11[%91, %c0_36, %c0_37] : memref<8x8x512xf32, #tpu.memory_space<vmem>>, vector<1x8x512xf32>
    %93 = vector.shape_cast %92 : vector<1x8x512xf32> to vector<8x512xf32>
    %94 = arith.addf %90, %93 : vector<8x512xf32>
    %95 = vector.extract_strided_slice %94 {offsets = [0, 0], sizes = [8, 384], strides = [1, 1]} : vector<8x512xf32> to vector<8x384xf32>
    %96 = arith.negf %95 : vector<8x384xf32>
    %97 = math.exp %96 : vector<8x384xf32>
    %cst_38 = arith.constant 1.000000e+00 : f32
    %98 = vector.broadcast %cst_38 : f32 to vector<8x384xf32>
    %99 = arith.addf %98, %97 : vector<8x384xf32>
    %100 = arith.divf %98, %99 : vector<8x384xf32>
    %101 = vector.extract_strided_slice %100 {offsets = [0, 0], sizes = [8, 128], strides = [1, 1]} : vector<8x384xf32> to vector<8x128xf32>
    %102 = vector.extract_strided_slice %100 {offsets = [0, 128], sizes = [8, 128], strides = [1, 1]} : vector<8x384xf32> to vector<8x128xf32>
    %103 = vector.extract_strided_slice %100 {offsets = [0, 256], sizes = [8, 128], strides = [1, 1]} : vector<8x384xf32> to vector<8x128xf32>
    %104 = vector.extract_strided_slice %94 {offsets = [0, 384], sizes = [8, 128], strides = [1, 1]} : vector<8x512xf32> to vector<8x128xf32>
    %105 = math.tanh %104 : vector<8x128xf32>
    %106 = arith.mulf %102, %83 : vector<8x128xf32>
    %107 = arith.mulf %101, %105 : vector<8x128xf32>
    %108 = arith.addf %106, %107 : vector<8x128xf32>
    %109 = math.tanh %108 : vector<8x128xf32>
    %110 = arith.mulf %103, %109 : vector<8x128xf32>
    %111 = arith.index_cast %c3_i32 : i32 to index
    %c0_39 = arith.constant 0 : index
    %c0_40 = arith.constant 0 : index
    %112 = vector.load %arg12[%111, %c0_39, %c0_40] : memref<8x8x128xf32, #tpu.memory_space<vmem>>, vector<1x8x128xf32>
    %113 = vector.shape_cast %112 : vector<1x8x128xf32> to vector<8x128xf32>
    %114 = vector.shape_cast %110 : vector<8x128xf32> to vector<1x8x128xf32>
    tpu.vector_store %arg12[%111, %c0_39, %c0_40], %114 {strides = array<i32>} : memref<8x8x128xf32, #tpu.memory_space<vmem>>, vector<1x8x128xf32>,
    %c4_i32 = arith.constant 4 : i32
    %cst_41 = arith.constant dense<0.000000e+00> : vector<8x512xf32>
    %115 = tpu.matmul %110, %12, %cst_41 {dimension_numbers = #tpu.dot_dimension_numbers<[1], [0], [0], [1], [0, 0, 1, 1], [], []>} : vector<8x128xf32>, vector<128x512xf32>, vector<8x512xf32> -> vector<8x512xf32>
    %116 = arith.index_cast %c4_i32 : i32 to index
    %c0_42 = arith.constant 0 : index
    %c0_43 = arith.constant 0 : index
    %117 = vector.load %arg11[%116, %c0_42, %c0_43] : memref<8x8x512xf32, #tpu.memory_space<vmem>>, vector<1x8x512xf32>
    %118 = vector.shape_cast %117 : vector<1x8x512xf32> to vector<8x512xf32>
    %119 = arith.addf %115, %118 : vector<8x512xf32>
    %120 = vector.extract_strided_slice %119 {offsets = [0, 0], sizes = [8, 384], strides = [1, 1]} : vector<8x512xf32> to vector<8x384xf32>
    %121 = arith.negf %120 : vector<8x384xf32>
    %122 = math.exp %121 : vector<8x384xf32>
    %cst_44 = arith.constant 1.000000e+00 : f32
    %123 = vector.broadcast %cst_44 : f32 to vector<8x384xf32>
    %124 = arith.addf %123, %122 : vector<8x384xf32>
    %125 = arith.divf %123, %124 : vector<8x384xf32>
    %126 = vector.extract_strided_slice %125 {offsets = [0, 0], sizes = [8, 128], strides = [1, 1]} : vector<8x384xf32> to vector<8x128xf32>
    %127 = vector.extract_strided_slice %125 {offsets = [0, 128], sizes = [8, 128], strides = [1, 1]} : vector<8x384xf32> to vector<8x128xf32>
    %128 = vector.extract_strided_slice %125 {offsets = [0, 256], sizes = [8, 128], strides = [1, 1]} : vector<8x384xf32> to vector<8x128xf32>
    %129 = vector.extract_strided_slice %119 {offsets = [0, 384], sizes = [8, 128], strides = [1, 1]} : vector<8x512xf32> to vector<8x128xf32>
    %130 = math.tanh %129 : vector<8x128xf32>
    %131 = arith.mulf %127, %108 : vector<8x128xf32>
    %132 = arith.mulf %126, %130 : vector<8x128xf32>
    %133 = arith.addf %131, %132 : vector<8x128xf32>
    %134 = math.tanh %133 : vector<8x128xf32>
    %135 = arith.mulf %128, %134 : vector<8x128xf32>
    %136 = arith.index_cast %c4_i32 : i32 to index
    %c0_45 = arith.constant 0 : index
    %c0_46 = arith.constant 0 : index
    %137 = vector.load %arg12[%136, %c0_45, %c0_46] : memref<8x8x128xf32, #tpu.memory_space<vmem>>, vector<1x8x128xf32>
    %138 = vector.shape_cast %137 : vector<1x8x128xf32> to vector<8x128xf32>
    %139 = vector.shape_cast %135 : vector<8x128xf32> to vector<1x8x128xf32>
    tpu.vector_store %arg12[%136, %c0_45, %c0_46], %139 {strides = array<i32>} : memref<8x8x128xf32, #tpu.memory_space<vmem>>, vector<1x8x128xf32>,
    %c5_i32 = arith.constant 5 : i32
    %cst_47 = arith.constant dense<0.000000e+00> : vector<8x512xf32>
    %140 = tpu.matmul %135, %12, %cst_47 {dimension_numbers = #tpu.dot_dimension_numbers<[1], [0], [0], [1], [0, 0, 1, 1], [], []>} : vector<8x128xf32>, vector<128x512xf32>, vector<8x512xf32> -> vector<8x512xf32>
    %141 = arith.index_cast %c5_i32 : i32 to index
    %c0_48 = arith.constant 0 : index
    %c0_49 = arith.constant 0 : index
    %142 = vector.load %arg11[%141, %c0_48, %c0_49] : memref<8x8x512xf32, #tpu.memory_space<vmem>>, vector<1x8x512xf32>
    %143 = vector.shape_cast %142 : vector<1x8x512xf32> to vector<8x512xf32>
    %144 = arith.addf %140, %143 : vector<8x512xf32>
    %145 = vector.extract_strided_slice %144 {offsets = [0, 0], sizes = [8, 384], strides = [1, 1]} : vector<8x512xf32> to vector<8x384xf32>
    %146 = arith.negf %145 : vector<8x384xf32>
    %147 = math.exp %146 : vector<8x384xf32>
    %cst_50 = arith.constant 1.000000e+00 : f32
    %148 = vector.broadcast %cst_50 : f32 to vector<8x384xf32>
    %149 = arith.addf %148, %147 : vector<8x384xf32>
    %150 = arith.divf %148, %149 : vector<8x384xf32>
    %151 = vector.extract_strided_slice %150 {offsets = [0, 0], sizes = [8, 128], strides = [1, 1]} : vector<8x384xf32> to vector<8x128xf32>
    %152 = vector.extract_strided_slice %150 {offsets = [0, 128], sizes = [8, 128], strides = [1, 1]} : vector<8x384xf32> to vector<8x128xf32>
    %153 = vector.extract_strided_slice %150 {offsets = [0, 256], sizes = [8, 128], strides = [1, 1]} : vector<8x384xf32> to vector<8x128xf32>
    %154 = vector.extract_strided_slice %144 {offsets = [0, 384], sizes = [8, 128], strides = [1, 1]} : vector<8x512xf32> to vector<8x128xf32>
    %155 = math.tanh %154 : vector<8x128xf32>
    %156 = arith.mulf %152, %133 : vector<8x128xf32>
    %157 = arith.mulf %151, %155 : vector<8x128xf32>
    %158 = arith.addf %156, %157 : vector<8x128xf32>
    %159 = math.tanh %158 : vector<8x128xf32>
    %160 = arith.mulf %153, %159 : vector<8x128xf32>
    %161 = arith.index_cast %c5_i32 : i32 to index
    %c0_51 = arith.constant 0 : index
    %c0_52 = arith.constant 0 : index
    %162 = vector.load %arg12[%161, %c0_51, %c0_52] : memref<8x8x128xf32, #tpu.memory_space<vmem>>, vector<1x8x128xf32>
    %163 = vector.shape_cast %162 : vector<1x8x128xf32> to vector<8x128xf32>
    %164 = vector.shape_cast %160 : vector<8x128xf32> to vector<1x8x128xf32>
    tpu.vector_store %arg12[%161, %c0_51, %c0_52], %164 {strides = array<i32>} : memref<8x8x128xf32, #tpu.memory_space<vmem>>, vector<1x8x128xf32>,
    %c6_i32 = arith.constant 6 : i32
    %cst_53 = arith.constant dense<0.000000e+00> : vector<8x512xf32>
    %165 = tpu.matmul %160, %12, %cst_53 {dimension_numbers = #tpu.dot_dimension_numbers<[1], [0], [0], [1], [0, 0, 1, 1], [], []>} : vector<8x128xf32>, vector<128x512xf32>, vector<8x512xf32> -> vector<8x512xf32>
    %166 = arith.index_cast %c6_i32 : i32 to index
    %c0_54 = arith.constant 0 : index
    %c0_55 = arith.constant 0 : index
    %167 = vector.load %arg11[%166, %c0_54, %c0_55] : memref<8x8x512xf32, #tpu.memory_space<vmem>>, vector<1x8x512xf32>
    %168 = vector.shape_cast %167 : vector<1x8x512xf32> to vector<8x512xf32>
    %169 = arith.addf %165, %168 : vector<8x512xf32>
    %170 = vector.extract_strided_slice %169 {offsets = [0, 0], sizes = [8, 384], strides = [1, 1]} : vector<8x512xf32> to vector<8x384xf32>
    %171 = arith.negf %170 : vector<8x384xf32>
    %172 = math.exp %171 : vector<8x384xf32>
    %cst_56 = arith.constant 1.000000e+00 : f32
    %173 = vector.broadcast %cst_56 : f32 to vector<8x384xf32>
    %174 = arith.addf %173, %172 : vector<8x384xf32>
    %175 = arith.divf %173, %174 : vector<8x384xf32>
    %176 = vector.extract_strided_slice %175 {offsets = [0, 0], sizes = [8, 128], strides = [1, 1]} : vector<8x384xf32> to vector<8x128xf32>
    %177 = vector.extract_strided_slice %175 {offsets = [0, 128], sizes = [8, 128], strides = [1, 1]} : vector<8x384xf32> to vector<8x128xf32>
    %178 = vector.extract_strided_slice %175 {offsets = [0, 256], sizes = [8, 128], strides = [1, 1]} : vector<8x384xf32> to vector<8x128xf32>
    %179 = vector.extract_strided_slice %169 {offsets = [0, 384], sizes = [8, 128], strides = [1, 1]} : vector<8x512xf32> to vector<8x128xf32>
    %180 = math.tanh %179 : vector<8x128xf32>
    %181 = arith.mulf %177, %158 : vector<8x128xf32>
    %182 = arith.mulf %176, %180 : vector<8x128xf32>
    %183 = arith.addf %181, %182 : vector<8x128xf32>
    %184 = math.tanh %183 : vector<8x128xf32>
    %185 = arith.mulf %178, %184 : vector<8x128xf32>
    %186 = arith.index_cast %c6_i32 : i32 to index
    %c0_57 = arith.constant 0 : index
    %c0_58 = arith.constant 0 : index
    %187 = vector.load %arg12[%186, %c0_57, %c0_58] : memref<8x8x128xf32, #tpu.memory_space<vmem>>, vector<1x8x128xf32>
    %188 = vector.shape_cast %187 : vector<1x8x128xf32> to vector<8x128xf32>
    %189 = vector.shape_cast %185 : vector<8x128xf32> to vector<1x8x128xf32>
    tpu.vector_store %arg12[%186, %c0_57, %c0_58], %189 {strides = array<i32>} : memref<8x8x128xf32, #tpu.memory_space<vmem>>, vector<1x8x128xf32>,
    %c7_i32 = arith.constant 7 : i32
    %cst_59 = arith.constant dense<0.000000e+00> : vector<8x512xf32>
    %190 = tpu.matmul %185, %12, %cst_59 {dimension_numbers = #tpu.dot_dimension_numbers<[1], [0], [0], [1], [0, 0, 1, 1], [], []>} : vector<8x128xf32>, vector<128x512xf32>, vector<8x512xf32> -> vector<8x512xf32>
    %191 = arith.index_cast %c7_i32 : i32 to index
    %c0_60 = arith.constant 0 : index
    %c0_61 = arith.constant 0 : index
    %192 = vector.load %arg11[%191, %c0_60, %c0_61] : memref<8x8x512xf32, #tpu.memory_space<vmem>>, vector<1x8x512xf32>
    %193 = vector.shape_cast %192 : vector<1x8x512xf32> to vector<8x512xf32>
    %194 = arith.addf %190, %193 : vector<8x512xf32>
    %195 = vector.extract_strided_slice %194 {offsets = [0, 0], sizes = [8, 384], strides = [1, 1]} : vector<8x512xf32> to vector<8x384xf32>
    %196 = arith.negf %195 : vector<8x384xf32>
    %197 = math.exp %196 : vector<8x384xf32>
    %cst_62 = arith.constant 1.000000e+00 : f32
    %198 = vector.broadcast %cst_62 : f32 to vector<8x384xf32>
    %199 = arith.addf %198, %197 : vector<8x384xf32>
    %200 = arith.divf %198, %199 : vector<8x384xf32>
    %201 = vector.extract_strided_slice %200 {offsets = [0, 0], sizes = [8, 128], strides = [1, 1]} : vector<8x384xf32> to vector<8x128xf32>
    %202 = vector.extract_strided_slice %200 {offsets = [0, 128], sizes = [8, 128], strides = [1, 1]} : vector<8x384xf32> to vector<8x128xf32>
    %203 = vector.extract_strided_slice %200 {offsets = [0, 256], sizes = [8, 128], strides = [1, 1]} : vector<8x384xf32> to vector<8x128xf32>
    %204 = vector.extract_strided_slice %194 {offsets = [0, 384], sizes = [8, 128], strides = [1, 1]} : vector<8x512xf32> to vector<8x128xf32>
    %205 = math.tanh %204 : vector<8x128xf32>
    %206 = arith.mulf %202, %183 : vector<8x128xf32>
    %207 = arith.mulf %201, %205 : vector<8x128xf32>
    %208 = arith.addf %206, %207 : vector<8x128xf32>
    %209 = math.tanh %208 : vector<8x128xf32>
    %210 = arith.mulf %203, %209 : vector<8x128xf32>
    %211 = arith.index_cast %c7_i32 : i32 to index
    %c0_63 = arith.constant 0 : index
    %c0_64 = arith.constant 0 : index
    %212 = vector.load %arg12[%211, %c0_63, %c0_64] : memref<8x8x128xf32, #tpu.memory_space<vmem>>, vector<1x8x128xf32>
    %213 = vector.shape_cast %212 : vector<1x8x128xf32> to vector<8x128xf32>
    %214 = vector.shape_cast %210 : vector<8x128xf32> to vector<1x8x128xf32>
    tpu.vector_store %arg12[%211, %c0_63, %c0_64], %214 {strides = array<i32>} : memref<8x8x128xf32, #tpu.memory_space<vmem>>, vector<1x8x128xf32>,
    %c8_i32 = arith.constant 8 : i32
    %c0_65 = arith.constant 0 : index
    %c0_66 = arith.constant 0 : index
    %215 = vector.load %arg13[%c0_65, %c0_66] : memref<8x128xf32, #tpu.memory_space<vmem>>, vector<8x128xf32>
    tpu.vector_store %arg13[%c0_65, %c0_66], %210 {strides = array<i32>} : memref<8x128xf32, #tpu.memory_space<vmem>>, vector<8x128xf32>,
    %c0_67 = arith.constant 0 : index
    %c0_68 = arith.constant 0 : index
    %216 = vector.load %arg14[%c0_67, %c0_68] : memref<8x128xf32, #tpu.memory_space<vmem>>, vector<8x128xf32>
    tpu.vector_store %arg14[%c0_67, %c0_68], %208 {strides = array<i32>} : memref<8x128xf32, #tpu.memory_space<vmem>>, vector<8x128xf32>,
    %c0_69 = arith.constant 0 : index
    %c0_70 = arith.constant 0 : index
    %c0_71 = arith.constant 0 : index
    %217 = vector.load %arg12[%c0_69, %c0_70, %c0_71] : memref<8x8x128xf32, #tpu.memory_space<vmem>>, vector<8x8x128xf32>
    %218 = vector.shape_cast %217 : vector<8x8x128xf32> to vector<64x128xf32>
    %c0_72 = arith.constant 0 : index
    %c0_73 = arith.constant 0 : index
    %219 = vector.load %arg5[%c0_72, %c0_73] : memref<128x512xf32, #tpu.memory_space<vmem>>, vector<128x512xf32>
    %cst_74 = arith.constant dense<0.000000e+00> : vector<64x512xf32>
    %220 = tpu.matmul %218, %219, %cst_74 {dimension_numbers = #tpu.dot_dimension_numbers<[1], [0], [0], [1], [0, 0, 1, 1], [], []>} : vector<64x128xf32>, vector<128x512xf32>, vector<64x512xf32> -> vector<64x512xf32>
    %c0_75 = arith.constant 0 : index
    %c0_76 = arith.constant 0 : index
    %221 = vector.load %arg7[%c0_75, %c0_76] : memref<1x512xf32, #tpu.memory_space<vmem>>, vector<1x512xf32>
    %222 = vector.broadcast %221 : vector<1x512xf32> to vector<64x512xf32>
    %223 = arith.addf %220, %222 : vector<64x512xf32>
    %224 = vector.shape_cast %223 : vector<64x512xf32> to vector<8x8x512xf32>
    %c0_77 = arith.constant 0 : index
    %c0_78 = arith.constant 0 : index
    %c0_79 = arith.constant 0 : index
    %225 = vector.load %arg11[%c0_77, %c0_78, %c0_79] : memref<8x8x512xf32, #tpu.memory_space<vmem>>, vector<8x8x512xf32>
    tpu.vector_store %arg11[%c0_77, %c0_78, %c0_79], %224 {strides = array<i32>} : memref<8x8x512xf32, #tpu.memory_space<vmem>>, vector<8x8x512xf32>,
    %c0_80 = arith.constant 0 : index
    %c0_81 = arith.constant 0 : index
    %226 = vector.load %arg6[%c0_80, %c0_81] : memref<128x512xf32, #tpu.memory_space<vmem>>, vector<128x512xf32>
    %c0_82 = arith.constant 0 : index
    %c0_83 = arith.constant 0 : index
    %227 = vector.load %arg15[%c0_82, %c0_83] : memref<8x128xf32, #tpu.memory_space<vmem>>, vector<8x128xf32>
    %c0_84 = arith.constant 0 : index
    %c0_85 = arith.constant 0 : index
    %228 = vector.load %arg16[%c0_84, %c0_85] : memref<8x128xf32, #tpu.memory_space<vmem>>, vector<8x128xf32>
    %c0_i32_86 = arith.constant 0 : i32
    %cst_87 = arith.constant dense<0.000000e+00> : vector<8x512xf32>
    %229 = tpu.matmul %227, %226, %cst_87 {dimension_numbers = #tpu.dot_dimension_numbers<[1], [0], [0], [1], [0, 0, 1, 1], [], []>} : vector<8x128xf32>, vector<128x512xf32>, vector<8x512xf32> -> vector<8x512xf32>
    %230 = arith.index_cast %c0_i32_86 : i32 to index
    %c0_88 = arith.constant 0 : index
    %c0_89 = arith.constant 0 : index
    %231 = vector.load %arg11[%230, %c0_88, %c0_89] : memref<8x8x512xf32, #tpu.memory_space<vmem>>, vector<1x8x512xf32>
    %232 = vector.shape_cast %231 : vector<1x8x512xf32> to vector<8x512xf32>
    %233 = arith.addf %229, %232 : vector<8x512xf32>
    %234 = vector.extract_strided_slice %233 {offsets = [0, 0], sizes = [8, 384], strides = [1, 1]} : vector<8x512xf32> to vector<8x384xf32>
    %235 = arith.negf %234 : vector<8x384xf32>
    %236 = math.exp %235 : vector<8x384xf32>
    %cst_90 = arith.constant 1.000000e+00 : f32
    %237 = vector.broadcast %cst_90 : f32 to vector<8x384xf32>
    %238 = arith.addf %237, %236 : vector<8x384xf32>
    %239 = arith.divf %237, %238 : vector<8x384xf32>
    %240 = vector.extract_strided_slice %239 {offsets = [0, 0], sizes = [8, 128], strides = [1, 1]} : vector<8x384xf32> to vector<8x128xf32>
    %241 = vector.extract_strided_slice %239 {offsets = [0, 128], sizes = [8, 128], strides = [1, 1]} : vector<8x384xf32> to vector<8x128xf32>
    %242 = vector.extract_strided_slice %239 {offsets = [0, 256], sizes = [8, 128], strides = [1, 1]} : vector<8x384xf32> to vector<8x128xf32>
    %243 = vector.extract_strided_slice %233 {offsets = [0, 384], sizes = [8, 128], strides = [1, 1]} : vector<8x512xf32> to vector<8x128xf32>
    %244 = math.tanh %243 : vector<8x128xf32>
    %245 = arith.mulf %241, %228 : vector<8x128xf32>
    %246 = arith.mulf %240, %244 : vector<8x128xf32>
    %247 = arith.addf %245, %246 : vector<8x128xf32>
    %248 = math.tanh %247 : vector<8x128xf32>
    %249 = arith.mulf %242, %248 : vector<8x128xf32>
    %c1_i32_91 = arith.constant 1 : i32
    %cst_92 = arith.constant dense<0.000000e+00> : vector<8x512xf32>
    %250 = tpu.matmul %249, %226, %cst_92 {dimension_numbers = #tpu.dot_dimension_numbers<[1], [0], [0], [1], [0, 0, 1, 1], [], []>} : vector<8x128xf32>, vector<128x512xf32>, vector<8x512xf32> -> vector<8x512xf32>
    %251 = arith.index_cast %c1_i32_91 : i32 to index
    %c0_93 = arith.constant 0 : index
    %c0_94 = arith.constant 0 : index
    %252 = vector.load %arg11[%251, %c0_93, %c0_94] : memref<8x8x512xf32, #tpu.memory_space<vmem>>, vector<1x8x512xf32>
    %253 = vector.shape_cast %252 : vector<1x8x512xf32> to vector<8x512xf32>
    %254 = arith.addf %250, %253 : vector<8x512xf32>
    %255 = vector.extract_strided_slice %254 {offsets = [0, 0], sizes = [8, 384], strides = [1, 1]} : vector<8x512xf32> to vector<8x384xf32>
    %256 = arith.negf %255 : vector<8x384xf32>
    %257 = math.exp %256 : vector<8x384xf32>
    %cst_95 = arith.constant 1.000000e+00 : f32
    %258 = vector.broadcast %cst_95 : f32 to vector<8x384xf32>
    %259 = arith.addf %258, %257 : vector<8x384xf32>
    %260 = arith.divf %258, %259 : vector<8x384xf32>
    %261 = vector.extract_strided_slice %260 {offsets = [0, 0], sizes = [8, 128], strides = [1, 1]} : vector<8x384xf32> to vector<8x128xf32>
    %262 = vector.extract_strided_slice %260 {offsets = [0, 128], sizes = [8, 128], strides = [1, 1]} : vector<8x384xf32> to vector<8x128xf32>
    %263 = vector.extract_strided_slice %260 {offsets = [0, 256], sizes = [8, 128], strides = [1, 1]} : vector<8x384xf32> to vector<8x128xf32>
    %264 = vector.extract_strided_slice %254 {offsets = [0, 384], sizes = [8, 128], strides = [1, 1]} : vector<8x512xf32> to vector<8x128xf32>
    %265 = math.tanh %264 : vector<8x128xf32>
    %266 = arith.mulf %262, %247 : vector<8x128xf32>
    %267 = arith.mulf %261, %265 : vector<8x128xf32>
    %268 = arith.addf %266, %267 : vector<8x128xf32>
    %269 = math.tanh %268 : vector<8x128xf32>
    %270 = arith.mulf %263, %269 : vector<8x128xf32>
    %c2_i32_96 = arith.constant 2 : i32
    %cst_97 = arith.constant dense<0.000000e+00> : vector<8x512xf32>
    %271 = tpu.matmul %270, %226, %cst_97 {dimension_numbers = #tpu.dot_dimension_numbers<[1], [0], [0], [1], [0, 0, 1, 1], [], []>} : vector<8x128xf32>, vector<128x512xf32>, vector<8x512xf32> -> vector<8x512xf32>
    %272 = arith.index_cast %c2_i32_96 : i32 to index
    %c0_98 = arith.constant 0 : index
    %c0_99 = arith.constant 0 : index
    %273 = vector.load %arg11[%272, %c0_98, %c0_99] : memref<8x8x512xf32, #tpu.memory_space<vmem>>, vector<1x8x512xf32>
    %274 = vector.shape_cast %273 : vector<1x8x512xf32> to vector<8x512xf32>
    %275 = arith.addf %271, %274 : vector<8x512xf32>
    %276 = vector.extract_strided_slice %275 {offsets = [0, 0], sizes = [8, 384], strides = [1, 1]} : vector<8x512xf32> to vector<8x384xf32>
    %277 = arith.negf %276 : vector<8x384xf32>
    %278 = math.exp %277 : vector<8x384xf32>
    %cst_100 = arith.constant 1.000000e+00 : f32
    %279 = vector.broadcast %cst_100 : f32 to vector<8x384xf32>
    %280 = arith.addf %279, %278 : vector<8x384xf32>
    %281 = arith.divf %279, %280 : vector<8x384xf32>
    %282 = vector.extract_strided_slice %281 {offsets = [0, 0], sizes = [8, 128], strides = [1, 1]} : vector<8x384xf32> to vector<8x128xf32>
    %283 = vector.extract_strided_slice %281 {offsets = [0, 128], sizes = [8, 128], strides = [1, 1]} : vector<8x384xf32> to vector<8x128xf32>
    %284 = vector.extract_strided_slice %281 {offsets = [0, 256], sizes = [8, 128], strides = [1, 1]} : vector<8x384xf32> to vector<8x128xf32>
    %285 = vector.extract_strided_slice %275 {offsets = [0, 384], sizes = [8, 128], strides = [1, 1]} : vector<8x512xf32> to vector<8x128xf32>
    %286 = math.tanh %285 : vector<8x128xf32>
    %287 = arith.mulf %283, %268 : vector<8x128xf32>
    %288 = arith.mulf %282, %286 : vector<8x128xf32>
    %289 = arith.addf %287, %288 : vector<8x128xf32>
    %290 = math.tanh %289 : vector<8x128xf32>
    %291 = arith.mulf %284, %290 : vector<8x128xf32>
    %c3_i32_101 = arith.constant 3 : i32
    %cst_102 = arith.constant dense<0.000000e+00> : vector<8x512xf32>
    %292 = tpu.matmul %291, %226, %cst_102 {dimension_numbers = #tpu.dot_dimension_numbers<[1], [0], [0], [1], [0, 0, 1, 1], [], []>} : vector<8x128xf32>, vector<128x512xf32>, vector<8x512xf32> -> vector<8x512xf32>
    %293 = arith.index_cast %c3_i32_101 : i32 to index
    %c0_103 = arith.constant 0 : index
    %c0_104 = arith.constant 0 : index
    %294 = vector.load %arg11[%293, %c0_103, %c0_104] : memref<8x8x512xf32, #tpu.memory_space<vmem>>, vector<1x8x512xf32>
    %295 = vector.shape_cast %294 : vector<1x8x512xf32> to vector<8x512xf32>
    %296 = arith.addf %292, %295 : vector<8x512xf32>
    %297 = vector.extract_strided_slice %296 {offsets = [0, 0], sizes = [8, 384], strides = [1, 1]} : vector<8x512xf32> to vector<8x384xf32>
    %298 = arith.negf %297 : vector<8x384xf32>
    %299 = math.exp %298 : vector<8x384xf32>
    %cst_105 = arith.constant 1.000000e+00 : f32
    %300 = vector.broadcast %cst_105 : f32 to vector<8x384xf32>
    %301 = arith.addf %300, %299 : vector<8x384xf32>
    %302 = arith.divf %300, %301 : vector<8x384xf32>
    %303 = vector.extract_strided_slice %302 {offsets = [0, 0], sizes = [8, 128], strides = [1, 1]} : vector<8x384xf32> to vector<8x128xf32>
    %304 = vector.extract_strided_slice %302 {offsets = [0, 128], sizes = [8, 128], strides = [1, 1]} : vector<8x384xf32> to vector<8x128xf32>
    %305 = vector.extract_strided_slice %302 {offsets = [0, 256], sizes = [8, 128], strides = [1, 1]} : vector<8x384xf32> to vector<8x128xf32>
    %306 = vector.extract_strided_slice %296 {offsets = [0, 384], sizes = [8, 128], strides = [1, 1]} : vector<8x512xf32> to vector<8x128xf32>
    %307 = math.tanh %306 : vector<8x128xf32>
    %308 = arith.mulf %304, %289 : vector<8x128xf32>
    %309 = arith.mulf %303, %307 : vector<8x128xf32>
    %310 = arith.addf %308, %309 : vector<8x128xf32>
    %311 = math.tanh %310 : vector<8x128xf32>
    %312 = arith.mulf %305, %311 : vector<8x128xf32>
    %c4_i32_106 = arith.constant 4 : i32
    %cst_107 = arith.constant dense<0.000000e+00> : vector<8x512xf32>
    %313 = tpu.matmul %312, %226, %cst_107 {dimension_numbers = #tpu.dot_dimension_numbers<[1], [0], [0], [1], [0, 0, 1, 1], [], []>} : vector<8x128xf32>, vector<128x512xf32>, vector<8x512xf32> -> vector<8x512xf32>
    %314 = arith.index_cast %c4_i32_106 : i32 to index
    %c0_108 = arith.constant 0 : index
    %c0_109 = arith.constant 0 : index
    %315 = vector.load %arg11[%314, %c0_108, %c0_109] : memref<8x8x512xf32, #tpu.memory_space<vmem>>, vector<1x8x512xf32>
    %316 = vector.shape_cast %315 : vector<1x8x512xf32> to vector<8x512xf32>
    %317 = arith.addf %313, %316 : vector<8x512xf32>
    %318 = vector.extract_strided_slice %317 {offsets = [0, 0], sizes = [8, 384], strides = [1, 1]} : vector<8x512xf32> to vector<8x384xf32>
    %319 = arith.negf %318 : vector<8x384xf32>
    %320 = math.exp %319 : vector<8x384xf32>
    %cst_110 = arith.constant 1.000000e+00 : f32
    %321 = vector.broadcast %cst_110 : f32 to vector<8x384xf32>
    %322 = arith.addf %321, %320 : vector<8x384xf32>
    %323 = arith.divf %321, %322 : vector<8x384xf32>
    %324 = vector.extract_strided_slice %323 {offsets = [0, 0], sizes = [8, 128], strides = [1, 1]} : vector<8x384xf32> to vector<8x128xf32>
    %325 = vector.extract_strided_slice %323 {offsets = [0, 128], sizes = [8, 128], strides = [1, 1]} : vector<8x384xf32> to vector<8x128xf32>
    %326 = vector.extract_strided_slice %323 {offsets = [0, 256], sizes = [8, 128], strides = [1, 1]} : vector<8x384xf32> to vector<8x128xf32>
    %327 = vector.extract_strided_slice %317 {offsets = [0, 384], sizes = [8, 128], strides = [1, 1]} : vector<8x512xf32> to vector<8x128xf32>
    %328 = math.tanh %327 : vector<8x128xf32>
    %329 = arith.mulf %325, %310 : vector<8x128xf32>
    %330 = arith.mulf %324, %328 : vector<8x128xf32>
    %331 = arith.addf %329, %330 : vector<8x128xf32>
    %332 = math.tanh %331 : vector<8x128xf32>
    %333 = arith.mulf %326, %332 : vector<8x128xf32>
    %c5_i32_111 = arith.constant 5 : i32
    %cst_112 = arith.constant dense<0.000000e+00> : vector<8x512xf32>
    %334 = tpu.matmul %333, %226, %cst_112 {dimension_numbers = #tpu.dot_dimension_numbers<[1], [0], [0], [1], [0, 0, 1, 1], [], []>} : vector<8x128xf32>, vector<128x512xf32>, vector<8x512xf32> -> vector<8x512xf32>
    %335 = arith.index_cast %c5_i32_111 : i32 to index
    %c0_113 = arith.constant 0 : index
    %c0_114 = arith.constant 0 : index
    %336 = vector.load %arg11[%335, %c0_113, %c0_114] : memref<8x8x512xf32, #tpu.memory_space<vmem>>, vector<1x8x512xf32>
    %337 = vector.shape_cast %336 : vector<1x8x512xf32> to vector<8x512xf32>
    %338 = arith.addf %334, %337 : vector<8x512xf32>
    %339 = vector.extract_strided_slice %338 {offsets = [0, 0], sizes = [8, 384], strides = [1, 1]} : vector<8x512xf32> to vector<8x384xf32>
    %340 = arith.negf %339 : vector<8x384xf32>
    %341 = math.exp %340 : vector<8x384xf32>
    %cst_115 = arith.constant 1.000000e+00 : f32
    %342 = vector.broadcast %cst_115 : f32 to vector<8x384xf32>
    %343 = arith.addf %342, %341 : vector<8x384xf32>
    %344 = arith.divf %342, %343 : vector<8x384xf32>
    %345 = vector.extract_strided_slice %344 {offsets = [0, 0], sizes = [8, 128], strides = [1, 1]} : vector<8x384xf32> to vector<8x128xf32>
    %346 = vector.extract_strided_slice %344 {offsets = [0, 128], sizes = [8, 128], strides = [1, 1]} : vector<8x384xf32> to vector<8x128xf32>
    %347 = vector.extract_strided_slice %344 {offsets = [0, 256], sizes = [8, 128], strides = [1, 1]} : vector<8x384xf32> to vector<8x128xf32>
    %348 = vector.extract_strided_slice %338 {offsets = [0, 384], sizes = [8, 128], strides = [1, 1]} : vector<8x512xf32> to vector<8x128xf32>
    %349 = math.tanh %348 : vector<8x128xf32>
    %350 = arith.mulf %346, %331 : vector<8x128xf32>
    %351 = arith.mulf %345, %349 : vector<8x128xf32>
    %352 = arith.addf %350, %351 : vector<8x128xf32>
    %353 = math.tanh %352 : vector<8x128xf32>
    %354 = arith.mulf %347, %353 : vector<8x128xf32>
    %c6_i32_116 = arith.constant 6 : i32
    %cst_117 = arith.constant dense<0.000000e+00> : vector<8x512xf32>
    %355 = tpu.matmul %354, %226, %cst_117 {dimension_numbers = #tpu.dot_dimension_numbers<[1], [0], [0], [1], [0, 0, 1, 1], [], []>} : vector<8x128xf32>, vector<128x512xf32>, vector<8x512xf32> -> vector<8x512xf32>
    %356 = arith.index_cast %c6_i32_116 : i32 to index
    %c0_118 = arith.constant 0 : index
    %c0_119 = arith.constant 0 : index
    %357 = vector.load %arg11[%356, %c0_118, %c0_119] : memref<8x8x512xf32, #tpu.memory_space<vmem>>, vector<1x8x512xf32>
    %358 = vector.shape_cast %357 : vector<1x8x512xf32> to vector<8x512xf32>
    %359 = arith.addf %355, %358 : vector<8x512xf32>
    %360 = vector.extract_strided_slice %359 {offsets = [0, 0], sizes = [8, 384], strides = [1, 1]} : vector<8x512xf32> to vector<8x384xf32>
    %361 = arith.negf %360 : vector<8x384xf32>
    %362 = math.exp %361 : vector<8x384xf32>
    %cst_120 = arith.constant 1.000000e+00 : f32
    %363 = vector.broadcast %cst_120 : f32 to vector<8x384xf32>
    %364 = arith.addf %363, %362 : vector<8x384xf32>
    %365 = arith.divf %363, %364 : vector<8x384xf32>
    %366 = vector.extract_strided_slice %365 {offsets = [0, 0], sizes = [8, 128], strides = [1, 1]} : vector<8x384xf32> to vector<8x128xf32>
    %367 = vector.extract_strided_slice %365 {offsets = [0, 128], sizes = [8, 128], strides = [1, 1]} : vector<8x384xf32> to vector<8x128xf32>
    %368 = vector.extract_strided_slice %365 {offsets = [0, 256], sizes = [8, 128], strides = [1, 1]} : vector<8x384xf32> to vector<8x128xf32>
    %369 = vector.extract_strided_slice %359 {offsets = [0, 384], sizes = [8, 128], strides = [1, 1]} : vector<8x512xf32> to vector<8x128xf32>
    %370 = math.tanh %369 : vector<8x128xf32>
    %371 = arith.mulf %367, %352 : vector<8x128xf32>
    %372 = arith.mulf %366, %370 : vector<8x128xf32>
    %373 = arith.addf %371, %372 : vector<8x128xf32>
    %374 = math.tanh %373 : vector<8x128xf32>
    %375 = arith.mulf %368, %374 : vector<8x128xf32>
    %c7_i32_121 = arith.constant 7 : i32
    %cst_122 = arith.constant dense<0.000000e+00> : vector<8x512xf32>
    %376 = tpu.matmul %375, %226, %cst_122 {dimension_numbers = #tpu.dot_dimension_numbers<[1], [0], [0], [1], [0, 0, 1, 1], [], []>} : vector<8x128xf32>, vector<128x512xf32>, vector<8x512xf32> -> vector<8x512xf32>
    %377 = arith.index_cast %c7_i32_121 : i32 to index
    %c0_123 = arith.constant 0 : index
    %c0_124 = arith.constant 0 : index
    %378 = vector.load %arg11[%377, %c0_123, %c0_124] : memref<8x8x512xf32, #tpu.memory_space<vmem>>, vector<1x8x512xf32>
    %379 = vector.shape_cast %378 : vector<1x8x512xf32> to vector<8x512xf32>
    %380 = arith.addf %376, %379 : vector<8x512xf32>
    %381 = vector.extract_strided_slice %380 {offsets = [0, 0], sizes = [8, 384], strides = [1, 1]} : vector<8x512xf32> to vector<8x384xf32>
    %382 = arith.negf %381 : vector<8x384xf32>
    %383 = math.exp %382 : vector<8x384xf32>
    %cst_125 = arith.constant 1.000000e+00 : f32
    %384 = vector.broadcast %cst_125 : f32 to vector<8x384xf32>
    %385 = arith.addf %384, %383 : vector<8x384xf32>
    %386 = arith.divf %384, %385 : vector<8x384xf32>
    %387 = vector.extract_strided_slice %386 {offsets = [0, 0], sizes = [8, 128], strides = [1, 1]} : vector<8x384xf32> to vector<8x128xf32>
    %388 = vector.extract_strided_slice %386 {offsets = [0, 128], sizes = [8, 128], strides = [1, 1]} : vector<8x384xf32> to vector<8x128xf32>
    %389 = vector.extract_strided_slice %386 {offsets = [0, 256], sizes = [8, 128], strides = [1, 1]} : vector<8x384xf32> to vector<8x128xf32>
    %390 = vector.extract_strided_slice %380 {offsets = [0, 384], sizes = [8, 128], strides = [1, 1]} : vector<8x512xf32> to vector<8x128xf32>
    %391 = math.tanh %390 : vector<8x128xf32>
    %392 = arith.mulf %388, %373 : vector<8x128xf32>
    %393 = arith.mulf %387, %391 : vector<8x128xf32>
    %394 = arith.addf %392, %393 : vector<8x128xf32>
    %395 = math.tanh %394 : vector<8x128xf32>
    %396 = arith.mulf %389, %395 : vector<8x128xf32>
    %c8_i32_126 = arith.constant 8 : i32
    %c0_127 = arith.constant 0 : index
    %c0_128 = arith.constant 0 : index
    %397 = vector.load %arg15[%c0_127, %c0_128] : memref<8x128xf32, #tpu.memory_space<vmem>>, vector<8x128xf32>
    tpu.vector_store %arg15[%c0_127, %c0_128], %396 {strides = array<i32>} : memref<8x128xf32, #tpu.memory_space<vmem>>, vector<8x128xf32>,
    %c0_129 = arith.constant 0 : index
    %c0_130 = arith.constant 0 : index
    %398 = vector.load %arg16[%c0_129, %c0_130] : memref<8x128xf32, #tpu.memory_space<vmem>>, vector<8x128xf32>
    tpu.vector_store %arg16[%c0_129, %c0_130], %394 {strides = array<i32>} : memref<8x128xf32, #tpu.memory_space<vmem>>, vector<8x128xf32>,
    %c0_i32_131 = arith.constant 0 : i32
    %399 = arith.cmpi eq, %arg0, %c0_i32_131 : i32
    %400 = arith.extui %399 : i1 to i32
    %c0_i32_132 = arith.constant 0 : i32
    %401 = arith.cmpi ne, %400, %c0_i32_132 : i32
    scf.if %401 {
      %c0_133 = arith.constant 0 : index
      %c0_134 = arith.constant 0 : index
      %402 = vector.load %arg8[%c0_133, %c0_134] : memref<128x128xf32, #tpu.memory_space<vmem>>, vector<128x128xf32>
      %cst_135 = arith.constant dense<0.000000e+00> : vector<8x128xf32>
      %403 = tpu.matmul %396, %402, %cst_135 {dimension_numbers = #tpu.dot_dimension_numbers<[1], [0], [0], [1], [0, 0, 1, 1], [], []>} : vector<8x128xf32>, vector<128x128xf32>, vector<8x128xf32> -> vector<8x128xf32>
      %c0_136 = arith.constant 0 : index
      %c0_137 = arith.constant 0 : index
      %404 = vector.load %arg9[%c0_136, %c0_137] : memref<1x128xf32, #tpu.memory_space<vmem>>, vector<1x128xf32>
      %405 = vector.broadcast %404 : vector<1x128xf32> to vector<8x128xf32>
      %406 = arith.addf %403, %405 : vector<8x128xf32>
      %c0_138 = arith.constant 0 : index
      %c0_139 = arith.constant 0 : index
      %407 = vector.load %arg10[%c0_138, %c0_139] : memref<8x128xf32, #tpu.memory_space<vmem>>, vector<8x128xf32>
      tpu.vector_store %arg10[%c0_138, %c0_139], %406 {strides = array<i32>} : memref<8x128xf32, #tpu.memory_space<vmem>>, vector<8x128xf32>,
    } else {
    }
    return
  }
  func.func @transform_0(%arg0: i32) -> (i32, i32, i32) {
    %c0_i32 = arith.constant 0 : i32
    %c0_i32_0 = arith.constant 0 : i32
    %c0_i32_1 = arith.constant 0 : i32
    return %arg0, %c0_i32, %c0_i32_0 : i32, i32, i32
  }
  func.func @transform_1(%arg0: i32) -> (i32, i32) {
    %c0_i32 = arith.constant 0 : i32
    %c0_i32_0 = arith.constant 0 : i32
    %c0_i32_1 = arith.constant 0 : i32
    return %c0_i32, %c0_i32_0 : i32, i32
  }
  func.func @transform_2(%arg0: i32) -> (i32, i32) {
    %c0_i32 = arith.constant 0 : i32
    %c0_i32_0 = arith.constant 0 : i32
    %c0_i32_1 = arith.constant 0 : i32
    return %c0_i32, %c0_i32_0 : i32, i32
  }
  func.func @transform_3(%arg0: i32) -> (i32, i32) {
    %c0_i32 = arith.constant 0 : i32
    %c0_i32_0 = arith.constant 0 : i32
    %c0_i32_1 = arith.constant 0 : i32
    return %c0_i32, %c0_i32_0 : i32, i32
  }
  func.func @transform_4(%arg0: i32) -> (i32, i32) {
    %c0_i32 = arith.constant 0 : i32
    %c0_i32_0 = arith.constant 0 : i32
    %c0_i32_1 = arith.constant 0 : i32
    return %c0_i32, %c0_i32_0 : i32, i32
  }
  func.func @transform_5(%arg0: i32) -> (i32, i32) {
    %c0_i32 = arith.constant 0 : i32
    %c0_i32_0 = arith.constant 0 : i32
    %c0_i32_1 = arith.constant 0 : i32
    return %c0_i32, %c0_i32_0 : i32, i32
  }
  func.func @transform_6(%arg0: i32) -> (i32, i32) {
    %c0_i32 = arith.constant 0 : i32
    %c0_i32_0 = arith.constant 0 : i32
    %c0_i32_1 = arith.constant 0 : i32
    return %c0_i32, %c0_i32_0 : i32, i32
  }
  func.func @transform_7(%arg0: i32) -> (i32, i32) {
    %c0_i32 = arith.constant 0 : i32
    %c0_i32_0 = arith.constant 0 : i32
    %c0_i32_1 = arith.constant 0 : i32
    return %c0_i32, %c0_i32_0 : i32, i32
  }
  func.func @transform_8(%arg0: i32) -> (i32, i32) {
    %c0_i32 = arith.constant 0 : i32
    %c0_i32_0 = arith.constant 0 : i32
    %c0_i32_1 = arith.constant 0 : i32
    return %c0_i32, %c0_i32_0 : i32, i32
  }
  func.func @transform_9(%arg0: i32) -> (i32, i32) {
    %c0_i32 = arith.constant 0 : i32
    %c0_i32_0 = arith.constant 0 : i32
    %c0_i32_1 = arith.constant 0 : i32
    return %c0_i32, %c0_i32_0 : i32, i32
  }
}

</mosaic_0001>

<bundles_post_ra>
// kernel: tpu_custom_call.1
= control target key start
LH: loop header
LB: loop body
LE: loop exit
PB: predicated region body
PF: predicated region fallthrough
CT: control target
= control target key end

     0   :  { %14 = vsyncpa [#allocation9], 0  ;;  %s6688_s0 = inlined_call_operand.hbm [shape: f32[8,8,16], index: 0, kind: input, shape index: {}]   ;;  %s6689_s1 = inlined_call_operand.hbm [shape: f32[16,512], index: 1, kind: input, shape index: {}]   ;;  %s6690_s2 = inlined_call_operand.hbm [shape: f32[128,512], index: 2, kind: input, shape index: {}]   ;;  %s6691_s3 = inlined_call_operand.vmem [shape: f32[1,512], index: 3, kind: input, shape index: {}]   ;;  %s6692_s4 = inlined_call_operand.hbm [shape: f32[128,512], index: 4, kind: input, shape index: {}]   ;;  %s6693_s5 = inlined_call_operand.hbm [shape: f32[128,512], index: 5, kind: input, shape index: {}]   ;;  %s6694_s6 = inlined_call_operand.vmem [shape: f32[1,512], index: 6, kind: input, shape index: {}]   ;;  %s6695_s7 = inlined_call_operand.hbm [shape: f32[128,128], index: 7, kind: input, shape index: {}]   ;;  %s6696_s8 = inlined_call_operand.vmem [shape: f32[1,128], index: 8, kind: input, shape index: {}]   ;;  %s6697_s9 = inlined_call_operand.hbm [shape: f32[8,128], index: 9, kind: output, shape index: {}]  }
   0x1   :  { %15 = vsyncpa [#allocation12], 0 }
   0x2   :  { %16 = vsyncpa [#allocation15], 0 }
   0x3   :  { %17 = vsyncpa [#allocation18], 0 }
   0x4   :  { %18 = vsyncpa [#allocation10], 0  ;;  %s5588_s30 = smov [#allocation11]   ;;  %s5424_s13 = scalar_lea.hbm %s6689_s1, 1024 }
   0x5   :  { %s36_s10 = sshll.u32 %s5588_s30, 4  ;;  %p5425_p0 = scmp.ne.s32.totalorder %s6689_s1, %s5424_s13  ;;  %s37_s10 = int_to_ptr.vmem [resolvable:$true] %s36_s10 }
   0x6   :  { %p5428_p1 = scmp.lt.u32.totalorder %s5424_s13, %s6689_s1 }
   0x8   :  { %p5430_p2 = pnand %p5428_p1, %p5425_p0 }
   0xa   :  { %5433 = shalt.err (!%p5430_p2)
}
   0xb   :  { %s5434_s18 = scalar_lea.vmem %s37_s10, 1024  ;;  %p5439_p4 = scmp.lt.s32.totalorder %s37_s10, %s37_s10 }
   0xc   :  { %p5435_p3 = scmp.ne.s32.totalorder %s37_s10, %s5434_s18  ;;  %p5440_p5 = scmp.lt.s32.totalorder %s5434_s18, %s5434_s18 }
   0xe   :  { %p5441_p6 = por %p5440_p5, %p5439_p4 }
  0x10   :  { %p5442_p7 = pnand %p5441_p6, %p5435_p3 }
  0x12   :  { %5445 = shalt.err (!%p5442_p7)
}
  0x13   :  { %s5589_s19 = smov 512   ;;  %s5590_s20 = smov 32  }
  0x14   :  { %42 = dma.hbm_to_vmem [thread:$0]  %s6689_s1, 1024, %s37_s10, [#allocation12], %s5589_s19, %s5589_s19, %s5590_s20  }
  0x15   :  { %s5591_s23 = smov [#allocation14]   ;;  %s5592_s25 = smov [#allocation8]  }
  0x16   :  { %s62_s24 = sshll.u32 %s5591_s23, 4  ;;  %s24_s26 = sshll.u32 %s5592_s25, 4  ;;  %s63_s24 = int_to_ptr.vmem [resolvable:$true] %s62_s24  ;;  %s25_s26 = int_to_ptr.vmem [resolvable:$true] %s24_s26 }
  0x17   :  { %s5446_s29 = scalar_lea.hbm %s6692_s4, 8192 }
  0x18   :  { %p5447_p8 = scmp.ne.s32.totalorder %s6692_s4, %s5446_s29  ;;  %p5450_p9 = scmp.lt.u32.totalorder %s5446_s29, %s6692_s4 }
  0x1a   :  { %p5452_p10 = pnand %p5450_p9, %p5447_p8 }
  0x1c   :  { %5455 = shalt.err (!%p5452_p10)
}
  0x1d   :  { %s5456_s1 = scalar_lea.vmem %s63_s24, 8192  ;;  %p5461_p12 = scmp.lt.s32.totalorder %s63_s24, %s63_s24 }
  0x1e   :  { %p5457_p11 = scmp.ne.s32.totalorder %s63_s24, %s5456_s1  ;;  %p5462_p13 = scmp.lt.s32.totalorder %s5456_s1, %s5456_s1 }
  0x20   :  { %p5463_p0 = por %p5462_p13, %p5461_p12 }
  0x22   :  { %p5464_p1 = pnand %p5463_p0, %p5457_p11 }
  0x24   :  { %5467 = shalt.err (!%p5464_p1)
}
  0x25   :  { %68 = dma.hbm_to_vmem [thread:$0]  %s6692_s4, 8192, %s63_s24, [#allocation15], %s5589_s19, %s5589_s19, %s5590_s20  }
  0x26   :  { %s5468_s17 = scalar_lea.hbm %s6688_s0, 1024 }
  0x27   :  { %p5469_p2 = scmp.ne.s32.totalorder %s6688_s0, %s5468_s17  ;;  %p5472_p3 = scmp.lt.u32.totalorder %s5468_s17, %s6688_s0 }
  0x29   :  { %p5474_p4 = pnand %p5472_p3, %p5469_p2 }
  0x2b   :  { %5477 = shalt.err (!%p5474_p4)
}
  0x2c   :  { %s5478_s25 = scalar_lea.vmem %s25_s26, 1024  ;;  %p5483_p6 = scmp.lt.s32.totalorder %s25_s26, %s25_s26 }
  0x2d   :  { %p5479_p5 = scmp.ne.s32.totalorder %s25_s26, %s5478_s25  ;;  %p5484_p7 = scmp.lt.s32.totalorder %s5478_s25, %s5478_s25 }
  0x2f   :  { %p5485_p8 = por %p5484_p7, %p5483_p6 }
  0x31   :  { %p5486_p9 = pnand %p5485_p8, %p5479_p5 }
  0x33   :  { %5489 = shalt.err (!%p5486_p9)
}
  0x34   :  { %s5593_s4 = smov 128   ;;  %s5594_s24 = smov 8  }
  0x35   :  { %30 = dma.hbm_to_vmem [thread:$0]  %s6688_s0, 1024, %s25_s26, [#allocation9], %s5593_s4, %s5593_s4, %s5594_s24  }
  0x36   :  { %s5595_s29 = smov [#allocation13]   ;;  %s5596_s11 = smov [#allocation16]  }
  0x37   :  { %s48_s30 = sshll.u32 %s5595_s29, 4  ;;  %s74_s12 = sshll.u32 %s5596_s11, 4  ;;  %s49_s30 = int_to_ptr.vmem [resolvable:$true] %s48_s30  ;;  %s75_s12 = int_to_ptr.vmem [resolvable:$true] %s74_s12 }
  0x38   :  { %s5490_s10 = scalar_lea.hbm %s6690_s2, 8192 }
  0x39   :  { %p5491_p10 = scmp.ne.s32.totalorder %s6690_s2, %s5490_s10  ;;  %p5494_p11 = scmp.lt.u32.totalorder %s5490_s10, %s6690_s2 }
  0x3b   :  { %p5496_p12 = pnand %p5494_p11, %p5491_p10 }
  0x3d   :  { %5499 = shalt.err (!%p5496_p12)
}
  0x3e   :  { %s5500_s0 = scalar_lea.vmem %s49_s30, 8192  ;;  %p5505_p0 = scmp.lt.s32.totalorder %s49_s30, %s49_s30 }
  0x3f   :  { %p5501_p13 = scmp.ne.s32.totalorder %s49_s30, %s5500_s0  ;;  %p5506_p1 = scmp.lt.s32.totalorder %s5500_s0, %s5500_s0 }
  0x41   :  { %p5507_p2 = por %p5506_p1, %p5505_p0 }
  0x43   :  { %p5508_p3 = pnand %p5507_p2, %p5501_p13 }
  0x45   :  { %5511 = shalt.err (!%p5508_p3)
}
  0x46   :  { %54 = dma.hbm_to_vmem [thread:$0]  %s6690_s2, 8192, %s49_s30, [#allocation12], %s5589_s19, %s5589_s19, %s5590_s20  }
  0x47   :  { %s5512_s23 = scalar_lea.hbm %s6693_s5, 8192 }
  0x48   :  { %p5513_p4 = scmp.ne.s32.totalorder %s6693_s5, %s5512_s23  ;;  %p5516_p5 = scmp.lt.u32.totalorder %s5512_s23, %s6693_s5 }
  0x4a   :  { %p5518_p6 = pnand %p5516_p5, %p5513_p4 }
  0x4c   :  { %5521 = shalt.err (!%p5518_p6)
}
  0x4d   :  { %s5522_s11 = scalar_lea.vmem %s75_s12, 8192  ;;  %p5527_p8 = scmp.lt.s32.totalorder %s75_s12, %s75_s12 }
  0x4e   :  { %p5523_p7 = scmp.ne.s32.totalorder %s75_s12, %s5522_s11  ;;  %p5528_p9 = scmp.lt.s32.totalorder %s5522_s11, %s5522_s11 }
  0x50   :  { %p5529_p10 = por %p5528_p9, %p5527_p8 }
  0x52   :  { %p5530_p11 = pnand %p5529_p10, %p5523_p7 }
  0x54   :  { %5533 = shalt.err (!%p5530_p11)
}
  0x55   :  { %80 = dma.hbm_to_vmem [thread:$0]  %s6693_s5, 8192, %s75_s12, [#allocation15], %s5589_s19, %s5589_s19, %s5590_s20  }
  0x56   :  { %s5597_s13 = smov [#allocation17]   ;;  %s5534_s15 = scalar_lea.hbm %s6695_s7, 2048 }
  0x57   :  { %s88_s1 = sshll.u32 %s5597_s13, 4  ;;  %p5535_p12 = scmp.ne.s32.totalorder %s6695_s7, %s5534_s15  ;;  %s89_s1 = int_to_ptr.vmem [resolvable:$true] %s88_s1 }
  0x58   :  { %p5538_p13 = scmp.lt.u32.totalorder %s5534_s15, %s6695_s7 }
  0x5a   :  { %p5540_p0 = pnand %p5538_p13, %p5535_p12 }
  0x5c   :  { %5543 = shalt.err (!%p5540_p0)
}
  0x5d   :  { %s5544_s18 = scalar_lea.vmem %s89_s1, 2048  ;;  %p5549_p2 = scmp.lt.s32.totalorder %s89_s1, %s89_s1 }
  0x5e   :  { %p5545_p1 = scmp.ne.s32.totalorder %s89_s1, %s5544_s18  ;;  %p5550_p3 = scmp.lt.s32.totalorder %s5544_s18, %s5544_s18 }
  0x60   :  { %p5551_p4 = por %p5550_p3, %p5549_p2 }
  0x62   :  { %p5552_p5 = pnand %p5551_p4, %p5545_p1 }
  0x64   :  { %5555 = shalt.err (!%p5552_p5)
}
  0x65   :  { %94 = dma.hbm_to_vmem [thread:$0]  %s6695_s7, 2048, %s89_s1, [#allocation18], %s5593_s4, %s5593_s4, %s5594_s24  }
  0x66   :  { %5578 = dma.done.wait [#allocation9], 1024  }
  0x67   :  { %5579 = vsyncadd [#allocation9], 4294966272 }
  0x68   :  { %5580 = dma.done.wait [#allocation12], 9216  }
  0x69   :  { %5581 = vsyncadd [#allocation12], 4294958080 }
  0x6a   :  { %5582 = dma.done.wait [#allocation15], 16384  }
  0x6b   :  { %5583 = vsyncadd [#allocation15], 4294950912 }
  0x6c   :  { %5584 = dma.done.wait [#allocation18], 2048  }
  0x6d   :  { %5585 = vsyncadd [#allocation18], 4294965248  ;;  %v5598_v0 = vmov 0.0   ;;  %v132_v1 = vld [vmem:[#allocation11 + $0x8] sm:$0xff]  ;;  %v134_v3 = vld [vmem:[#allocation11 + $0x18] sm:$0xff]  ;;  %vm161_vm0 = vcmask 130048  }
  0x6e   :  { %250 = vmatprep.mubr.f32.mxu0 %v5598_v0  ;;  %363 = vmatprep.mubr.f32.mxu1 %v5598_v0  ;;  %v136_v2 = vld [vmem:[#allocation11 + $0x28] sm:$0xff]  ;;  %v138_v5 = vld [vmem:[#allocation11 + $0x38] sm:$0xff]  ;;  %v131_v6 = vld [vmem:[#allocation11] sm:$0xff]  ;;  %vm5600_vm1 = vmmov 0   ;;  %s5601_s12 = smov [#allocation19]  }
  0x6f   :  { %v3906_v4 = vpack.c.bf16 %v136_v2, %v132_v1  ;;  %v135_v7 = vld [vmem:[#allocation11 + $0x20] sm:$0xff]  ;;  %v3910_v8 = vpack.c.bf16 %v138_v5, %v134_v3  ;;  %v133_v10 = vld [vmem:[#allocation11 + $0x10] sm:$0xff]  ;;  %v445_v14 = vld [vmem:[#allocation13 + $0x8] sm:$0xff]  ;;  %s3777_s21 = sshll.u32 %s5601_s12, 4  ;;  %s3778_s21 = int_to_ptr.vmem [resolvable:$true] %s3777_s21 }
  0x70   :  { %v3908_v9 = vpack.c.bf16 %v135_v7, %v131_v6  ;;  %v137_v11 = vld [vmem:[#allocation11 + $0x30] sm:$0xff]  ;;  %v123_v12 = vld [vmem:[#allocation8] sm:$0xff]  ;;  %v449_v15 = vld [vmem:[#allocation13 + $0x28] sm:$0xff]  ;;  %s5556_s22 = scalar_lea.vmem %s3778_s21, 128  ;;  %p5561_p7 = scmp.lt.s32.totalorder %s3778_s21, %s3778_s21 }
  0x71   :  { %3907 = vmatprep.subr.bf16.mxu0 %v3906_v4  ;;  %v3912_v13 = vpack.c.bf16 %v137_v11, %v133_v10  ;;  %v447_v16 = vld [vmem:[#allocation13 + $0x18] sm:$0xff]  ;;  %3911 = vmatprep.subr.bf16.mxu1 %v3910_v8  ;;  %v5744_v17 = vpack.c.bf16 %v449_v15, %v445_v14  ;;  %v444_v19 = vld [vmem:[#allocation13] sm:$0xff]  ;;  %v446_v23 = vld [vmem:[#allocation13 + $0x10] sm:$0xff]  ;;  %p5557_p6 = scmp.ne.s32.totalorder %s3778_s21, %s5556_s22  ;;  %p5562_p8 = scmp.lt.s32.totalorder %s5556_s22, %s5556_s22 }
  0x72   :  { %3909 = vmatpush1.bf16.msra.mxu0 %v3908_v9  ;;  %v451_v18 = vld [vmem:[#allocation13 + $0x38] sm:$0xff]  ;;  %v448_v20 = vld [vmem:[#allocation13 + $0x20] sm:$0xff]  ;;  %v450_v24 = vld [vmem:[#allocation13 + $0x30] sm:$0xff] }
  0x73   :  { %3913 = vmatpush1.bf16.msra.mxu1 %v3912_v13  ;;  %v5746_v21 = vpack.c.bf16 %v451_v18, %v447_v16  ;;  %v5748_v22 = vpack.c.bf16 %v448_v20, %v444_v19  ;;  %3915 = vmatprep.subr.bf16.mxu0 %v5744_v17  ;;  %v5751_v25 = vpack.c.bf16 %v450_v24, %v446_v23  ;;  %v453_v26 = vld [vmem:[#allocation13 + $0x48] sm:$0xff]  ;;  %v455_v28 = vld [vmem:[#allocation13 + $0x58] sm:$0xff]  ;;  %v452_v31 = vld [vmem:[#allocation13 + $0x40] sm:$0xff]  ;;  %p5563_p9 = por %p5562_p8, %p5561_p7 }
  0x74   :  { %v457_v27 = vld [vmem:[#allocation13 + $0x68] sm:$0xff]  ;;  %v459_v30 = vld [vmem:[#allocation13 + $0x78] sm:$0xff]  ;;  %v456_v32 = vld [vmem:[#allocation13 + $0x60] sm:$0xff] }
  0x75   :  { %3789 = vmatmul.mubr.msk.f32.vlgmr.msra.gmra.mrb[0].mxu0 %vm161_vm0, %v123_v12  ;;  %3947 = vmatprep.subr.bf16.mxu1 %v5746_v21  ;;  %v5755_v29 = vpack.c.bf16 %v457_v27, %v453_v26  ;;  %v124_v33 = vld [vmem:[#allocation8 + $0x8] sm:$0xff]  ;;  %v5759_v34 = vpack.c.bf16 %v459_v30, %v455_v28  ;;  %v5761_v35 = vpack.c.bf16 %v456_v32, %v452_v31  ;;  %v454_v36 = vld [vmem:[#allocation13 + $0x50] sm:$0xff]  ;;  %v463_v41 = vld [vmem:[#allocation13 + $0x98] sm:$0xff]  ;;  %p5564_p10 = pnand %p5563_p9, %p5557_p6 }
  0x76   :  { %3797 = vmatmul.mubr.msk.f32.vlgmr.msra.gmra.mrb[0].mxu1 %vm161_vm0, %v123_v12  ;;  %3917 = vmatpush1.bf16.msra.mxu0 %v5748_v22  ;;  %v458_v37 = vld [vmem:[#allocation13 + $0x70] sm:$0xff]  ;;  %v461_v39 = vld [vmem:[#allocation13 + $0x88] sm:$0xff]  ;;  %v467_v43 = vld [vmem:[#allocation13 + $0xb8] sm:$0xff] }
  0x77   :  { %3949 = vmatpush1.bf16.msra.mxu1 %v5751_v25  ;;  %256 = vmatprep.mubr.f32.mxu0 %v5598_v0  ;;  %v5765_v38 = vpack.c.bf16 %v458_v37, %v454_v36  ;;  %v465_v40 = vld [vmem:[#allocation13 + $0xa8] sm:$0xff]  ;;  %v460_v44 = vld [vmem:[#allocation13 + $0x80] sm:$0xff]  ;;  %v125_v46 = vld [vmem:[#allocation8 + $0x10] sm:$0xff]  ;;  %v5773_v47 = vpack.c.bf16 %v467_v43, %v463_v41 }
  0x78   :  { %369 = vmatprep.mubr.f32.mxu1 %v5598_v0  ;;  %3919 = vmatprep.subr.bf16.mxu0 %v5755_v29  ;;  %v5769_v42 = vpack.c.bf16 %v465_v40, %v461_v39  ;;  %v464_v45 = vld [vmem:[#allocation13 + $0xa0] sm:$0xff]  ;;  %v462_v48 = vld [vmem:[#allocation13 + $0x90] sm:$0xff]  ;;  %v469_v51 = vld [vmem:[#allocation13 + $0xc8] sm:$0xff] }
  0x79   :  { %3790 = vmatmul.mubr.msk.f32.gmra.mrb[2].mxu0 %vm161_vm0, %v124_v33  ;;  %3951 = vmatprep.subr.bf16.mxu1 %v5759_v34  ;;  %v466_v49 = vld [vmem:[#allocation13 + $0xb0] sm:$0xff]  ;;  %v5777_v50 = vpack.c.bf16 %v464_v45, %v460_v44  ;;  %v473_v52 = vld [vmem:[#allocation13 + $0xe8] sm:$0xff]  ;;  %v471_v53 = vld [vmem:[#allocation13 + $0xd8] sm:$0xff] }
  0x7a   :  { %3798 = vmatmul.mubr.msk.f32.gmra.mrb[2].mxu1 %vm161_vm0, %v124_v33  ;;  %3921 = vmatpush1.bf16.msra.mxu0 %v5761_v35  ;;  %v5781_v54 = vpack.c.bf16 %v466_v49, %v462_v48  ;;  %v475_v55 = vld [vmem:[#allocation13 + $0xf8] sm:$0xff]  ;;  %v468_v56 = vld [vmem:[#allocation13 + $0xc0] sm:$0xff]  ;;  %v5785_v58 = vpack.c.bf16 %v473_v52, %v469_v51  ;;  %v470_v59 = vld [vmem:[#allocation13 + $0xd0] sm:$0xff] }
  0x7b   :  { %3953 = vmatpush1.bf16.msra.mxu1 %v5765_v38  ;;  %262 = vmatprep.mubr.f32.mxu0 %v5598_v0  ;;  %v472_v57 = vld [vmem:[#allocation13 + $0xe0] sm:$0xff]  ;;  %v474_v60 = vld [vmem:[#allocation13 + $0xf0] sm:$0xff]  ;;  %v5789_v61 = vpack.c.bf16 %v475_v55, %v471_v53  ;;  %v477_v62 = vld [vmem:[#allocation13 + $0x108] sm:$0xff] }
  0x7c   :  { %375 = vmatprep.mubr.f32.mxu1 %v5598_v0  ;;  %3923 = vmatprep.subr.bf16.mxu0 %v5769_v42  ;;  %v481_v63 = vld [vmem:[#allocation13 + $0x128] sm:$0xff]  ;;  %v126_v1 = vld [vmem:[#allocation8 + $0x18] sm:$0xff]  ;;  %v5793_v2 = vpack.c.bf16 %v472_v57, %v468_v56  ;;  %v5797_v5 = vpack.c.bf16 %v474_v60, %v470_v59  ;;  %v476_v6 = vld [vmem:[#allocation13 + $0x100] sm:$0xff] }
  0x7d   :  { %3791 = vmatmul.mubr.msk.f32.gmra.mrb[4].mxu0 %vm161_vm0, %v125_v46  ;;  %3955 = vmatprep.subr.bf16.mxu1 %v5773_v47  ;;  %v479_v3 = vld [vmem:[#allocation13 + $0x118] sm:$0xff]  ;;  %v480_v7 = vld [vmem:[#allocation13 + $0x120] sm:$0xff]  ;;  %v5801_v8 = vpack.c.bf16 %v481_v63, %v477_v62  ;;  %v478_v9 = vld [vmem:[#allocation13 + $0x110] sm:$0xff] }
  0x7e   :  { %3799 = vmatmul.mubr.msk.f32.gmra.mrb[4].mxu1 %vm161_vm0, %v125_v46  ;;  %3925 = vmatpush1.bf16.msra.mxu0 %v5777_v50  ;;  %v483_v4 = vld [vmem:[#allocation13 + $0x138] sm:$0xff]  ;;  %v482_v10 = vld [vmem:[#allocation13 + $0x130] sm:$0xff]  ;;  %v485_v12 = vld [vmem:[#allocation13 + $0x148] sm:$0xff]  ;;  %v5809_v15 = vpack.c.bf16 %v480_v7, %v476_v6  ;;  %v141_v7 = vlaneseq }
  0x7f   :  { %3957 = vmatpush1.bf16.msra.mxu1 %v5781_v54  ;;  %268 = vmatprep.mubr.f32.mxu0 %v5598_v0  ;;  %v5805_v11 = vpack.c.bf16 %v483_v4, %v479_v3  ;;  %v489_v13 = vld [vmem:[#allocation13 + $0x168] sm:$0xff]  ;;  %v127_v14 = vld [vmem:[#allocation8 + $0x20] sm:$0xff]  ;;  %v487_v16 = vld [vmem:[#allocation13 + $0x158] sm:$0xff]  ;;  %v5813_v19 = vpack.c.bf16 %v482_v10, %v478_v9 }
  0x80   :  { %381 = vmatprep.mubr.f32.mxu1 %v5598_v0  ;;  %3927 = vmatprep.subr.bf16.mxu0 %v5785_v58  ;;  %v491_v18 = vld [vmem:[#allocation13 + $0x178] sm:$0xff]  ;;  %v484_v20 = vld [vmem:[#allocation13 + $0x140] sm:$0xff]  ;;  %v5817_v24 = vpack.c.bf16 %v489_v13, %v485_v12  ;;  %v486_v26 = vld [vmem:[#allocation13 + $0x150] sm:$0xff]  ;;  %v5910_v9 = vshrl.u32 %v141_v7, 7 }
  0x81   :  { %3792 = vmatmul.mubr.msk.f32.gmra.mrb[6].mxu0 %vm161_vm0, %v126_v1  ;;  %3959 = vmatprep.subr.bf16.mxu1 %v5789_v61  ;;  %v488_v23 = vld [vmem:[#allocation13 + $0x160] sm:$0xff]  ;;  %v490_v27 = vld [vmem:[#allocation13 + $0x170] sm:$0xff]  ;;  %v5821_v28 = vpack.c.bf16 %v491_v18, %v487_v16  ;;  %v493_v30 = vld [vmem:[#allocation13 + $0x188] sm:$0xff] }
  0x82   :  { %3800 = vmatmul.mubr.msk.f32.gmra.mrb[6].mxu1 %vm161_vm0, %v126_v1  ;;  %3929 = vmatpush1.bf16.msra.mxu0 %v5793_v2  ;;  %v497_v31 = vld [vmem:[#allocation13 + $0x1a8] sm:$0xff]  ;;  %v5825_v33 = vpack.c.bf16 %v488_v23, %v484_v20  ;;  %v495_v36 = vld [vmem:[#allocation13 + $0x198] sm:$0xff]  ;;  %v5829_v39 = vpack.c.bf16 %v490_v27, %v486_v26  ;;  %v492_v40 = vld [vmem:[#allocation13 + $0x180] sm:$0xff]  ;;  %v143_v10 = vsub.s32 0, %v5910_v9  ;;  %v147_v13 = vsub.s32 1, %v5910_v9 }
  0x83   :  { %3961 = vmatpush1.bf16.msra.mxu1 %v5797_v5  ;;  %274 = vmatprep.mubr.f32.mxu0 %v5598_v0  ;;  %v128_v32 = vld [vmem:[#allocation8 + $0x28] sm:$0xff]  ;;  %v499_v37 = vld [vmem:[#allocation13 + $0x1b8] sm:$0xff]  ;;  %v496_v41 = vld [vmem:[#allocation13 + $0x1a0] sm:$0xff]  ;;  %v5833_v43 = vpack.c.bf16 %v497_v31, %v493_v30  ;;  %v151_v20 = vsub.s32 2, %v5910_v9 }
  0x84   :  { %387 = vmatprep.mubr.f32.mxu1 %v5598_v0  ;;  %3931 = vmatprep.subr.bf16.mxu0 %v5801_v8  ;;  %v494_v44 = vld [vmem:[#allocation13 + $0x190] sm:$0xff]  ;;  %v5837_v46 = vpack.c.bf16 %v499_v37, %v495_v36  ;;  %v501_v48 = vld [vmem:[#allocation13 + $0x1c8] sm:$0xff]  ;;  %v5841_v52 = vpack.c.bf16 %v496_v41, %v492_v40  ;;  %v503_v53 = vld [vmem:[#allocation13 + $0x1d8] sm:$0xff]  ;;  %v155_v40 = vsub.s32 3, %v5910_v9 }
  0x85   :  { %3793 = vmatmul.mubr.msk.f32.gmra.mrb[8].mxu0 %vm161_vm0, %v127_v14  ;;  %3963 = vmatprep.subr.bf16.mxu1 %v5805_v11  ;;  %v498_v45 = vld [vmem:[#allocation13 + $0x1b0] sm:$0xff]  ;;  %v505_v49 = vld [vmem:[#allocation13 + $0x1e8] sm:$0xff]  ;;  %v507_v55 = vld [vmem:[#allocation13 + $0x1f8] sm:$0xff] }
  0x86   :  { %3801 = vmatmul.mubr.msk.f32.gmra.mrb[8].mxu1 %vm161_vm0, %v127_v14  ;;  %3933 = vmatpush1.bf16.msra.mxu0 %v5809_v15  ;;  %v129_v51 = vld [vmem:[#allocation8 + $0x30] sm:$0xff]  ;;  %v5845_v56 = vpack.c.bf16 %v498_v45, %v494_v44  ;;  %v500_v57 = vld [vmem:[#allocation13 + $0x1c0] sm:$0xff]  ;;  %v5849_v60 = vpack.c.bf16 %v505_v49, %v501_v48  ;;  %v5853_v1 = vpack.c.bf16 %v507_v55, %v503_v53  ;;  %v130_v3 = vld [vmem:[#allocation8 + $0x38] sm:$0xff] }
  0x87   :  { %3965 = vmatpush1.bf16.msra.mxu1 %v5813_v19  ;;  %280 = vmatprep.mubr.f32.mxu0 %v5598_v0  ;;  %v504_v59 = vld [vmem:[#allocation13 + $0x1e0] sm:$0xff]  ;;  %v502_v62 = vld [vmem:[#allocation13 + $0x1d0] sm:$0xff] }
  0x88   :  { %393 = vmatprep.mubr.f32.mxu1 %v5598_v0  ;;  %3935 = vmatprep.subr.bf16.mxu0 %v5817_v24  ;;  %v506_v63 = vld [vmem:[#allocation13 + $0x1f0] sm:$0xff]  ;;  %v5857_v4 = vpack.c.bf16 %v504_v59, %v500_v57  ;;  %v139_v12 = vld [vmem:[%s6691_s3] sm:$0xf] }
  0x89   :  { %3794 = vmatmul.mubr.msk.f32.gmra.mrb[10].mxu0 %vm161_vm0, %v128_v32  ;;  %3967 = vmatprep.subr.bf16.mxu1 %v5821_v28  ;;  %v5861_v6 = vpack.c.bf16 %v506_v63, %v502_v62  ;;  %v5919_v14 = vrot.slane %v139_v12, %v143_v10  ;;  %v5923_v16 = vrot.slane %v139_v12, %v147_v13 }
  0x8a   :  { %3802 = vmatmul.mubr.msk.f32.gmra.mrb[10].mxu1 %vm161_vm0, %v128_v32  ;;  %3937 = vmatpush1.bf16.msra.mxu0 %v5825_v33  ;;  %v5930_v36 = vrot.slane %v139_v12, %v151_v20  ;;  %v5936_v44 = vrot.slane %v139_v12, %v155_v40 }
  0x8b   :  { %3969 = vmatpush1.bf16.msra.mxu1 %v5829_v39  ;;  %286 = vmatprep.mubr.f32.mxu0 %v5598_v0 }
  0x8c   :  { %399 = vmatprep.mubr.f32.mxu1 %v5598_v0  ;;  %3939 = vmatprep.subr.bf16.mxu0 %v5833_v43 }
  0x8d   :  { %3795 = vmatmul.mubr.msk.f32.gmra.mrb[12].mxu0 %vm161_vm0, %v129_v51  ;;  %3971 = vmatprep.subr.bf16.mxu1 %v5837_v46 }
  0x8e   :  { %3803 = vmatmul.mubr.msk.f32.gmra.mrb[12].mxu1 %vm161_vm0, %v129_v51  ;;  %3941 = vmatpush1.bf16.msra.mxu0 %v5841_v52 }
  0x8f   :  { %3973 = vmatpush1.bf16.msra.mxu1 %v5845_v56  ;;  %292 = vmatprep.mubr.f32.mxu0 %v5598_v0 }
  0x90   :  { %405 = vmatprep.mubr.f32.mxu1 %v5598_v0  ;;  %3943 = vmatprep.subr.bf16.mxu0 %v5849_v60 }
  0x91   :  { %3796 = vmatmul.mubr.msk.f32.gmra.mrb[14].mxu0 %vm161_vm0, %v130_v3  ;;  %3975 = vmatprep.subr.bf16.mxu1 %v5853_v1 }
  0x92   :  { %3804 = vmatmul.mubr.msk.f32.gmra.mrb[14].mxu1 %vm161_vm0, %v130_v3  ;;  %3945 = vmatpush1.bf16.msra.mxu0 %v5857_v4 }
  0x93   :  { %3977 = vmatpush1.bf16.msra.mxu1 %v5861_v6  ;;  %578 = vmatprep.mubr.f32.mxu0 %v5598_v0 }
  0x94   :  { %649 = vmatprep.mubr.f32.mxu1 %v5598_v0  ;;  %3979 = vmatprep.subr.bf16.mxu0 %v5744_v17 }
  0x95   :  { %579 = vmatmul.mubr.f32.vlgmr.msra.gmra.mrb[0].mxu0 %v5598_v0  ;;  %4011 = vmatprep.subr.bf16.mxu1 %v5746_v21 }
  0x96   :  { %650 = vmatmul.mubr.f32.vlgmr.msra.gmra.mrb[0].mxu1 %v5598_v0  ;;  %3981 = vmatpush1.bf16.msra.mxu0 %v5748_v22 }
  0x97   :  { %4013 = vmatpush1.bf16.msra.mxu1 %v5751_v25  ;;  %3983 = vmatprep.subr.bf16.mxu0 %v5755_v29 }
  0x98   :  { %4015 = vmatprep.subr.bf16.mxu1 %v5759_v34  ;;  %750 = vmatprep.mubr.f32.mxu0 %v5598_v0 }
  0x99   :  { %821 = vmatprep.mubr.f32.mxu1 %v5598_v0 }
  0x9a   :  { %3985 = vmatpush1.bf16.msra.mxu0 %v5761_v35 }
  0x9b   :  { %4017 = vmatpush1.bf16.msra.mxu1 %v5765_v38  ;;  %3987 = vmatprep.subr.bf16.mxu0 %v5769_v42 }
  0x9c   :  { %4019 = vmatprep.subr.bf16.mxu1 %v5773_v47 }
  0x9e   :  { %3989 = vmatpush1.bf16.msra.mxu0 %v5777_v50 }
  0x9f   :  { %4021 = vmatpush1.bf16.msra.mxu1 %v5781_v54  ;;  %3991 = vmatprep.subr.bf16.mxu0 %v5785_v58 }
  0xa0   :  { %4023 = vmatprep.subr.bf16.mxu1 %v5789_v61 }
  0xa2   :  { %3993 = vmatpush1.bf16.msra.mxu0 %v5793_v2 }
  0xa3   :  { %4025 = vmatpush1.bf16.msra.mxu1 %v5797_v5  ;;  %3995 = vmatprep.subr.bf16.mxu0 %v5801_v8 }
  0xa4   :  { %4027 = vmatprep.subr.bf16.mxu1 %v5805_v11 }
  0xa6   :  { %3997 = vmatpush1.bf16.msra.mxu0 %v5809_v15 }
  0xa7   :  { %4029 = vmatpush1.bf16.msra.mxu1 %v5813_v19  ;;  %3999 = vmatprep.subr.bf16.mxu0 %v5817_v24 }
  0xa8   :  { %4031 = vmatprep.subr.bf16.mxu1 %v5821_v28 }
  0xaa   :  { %4001 = vmatpush1.bf16.msra.mxu0 %v5825_v33 }
  0xab   :  { %4033 = vmatpush1.bf16.msra.mxu1 %v5829_v39  ;;  %4003 = vmatprep.subr.bf16.mxu0 %v5833_v43 }
  0xac   :  { %4035 = vmatprep.subr.bf16.mxu1 %v5837_v46 }
  0xae   :  { %4005 = vmatpush1.bf16.msra.mxu0 %v5841_v52 }
  0xaf   :  { %4037 = vmatpush1.bf16.msra.mxu1 %v5845_v56  ;;  %4007 = vmatprep.subr.bf16.mxu0 %v5849_v60 }
  0xb0   :  { %4039 = vmatprep.subr.bf16.mxu1 %v5853_v1 }
  0xb2   :  { %4009 = vmatpush1.bf16.msra.mxu0 %v5857_v4 }
  0xb3   :  { %4041 = vmatpush1.bf16.msra.mxu1 %v5861_v6  ;;  %4043 = vmatprep.subr.bf16.mxu0 %v5744_v17 }
  0xb4   :  { %4075 = vmatprep.subr.bf16.mxu1 %v5746_v21 }
 0x168   :  { %v580_v18 = vpop.f32.mrb[0].mxu0 }
 0x169   :  { %v5026_v23 = vadd.f32 %v580_v18, %v5919_v14  ;;  %v651_v26 = vpop.f32.mrb[0].mxu1  ;;  %v582_v27 = vpop.f32.mrb[1].mxu0 }
 0x16a   :  { %v5027_v30 = vadd.f32 %v582_v27, %v5923_v16  ;;  %v653_v31 = vpop.f32.mrb[1].mxu1  ;;  %v5042_v41 = vadd.f32 %v651_v26, %v5930_v36 }
 0x16b   :  { %v3805_v32 = vmul.f32 -1.442695, %v5026_v23  ;;  %v5043_v48 = vadd.f32 %v653_v31, %v5936_v44 }
 0x16c   :  { %v3806_v37 = vmul.f32 -1.442695, %v5027_v30  ;;  %v3807_v45 = vmul.f32 -1.442695, %v5042_v41 }
 0x16d   :  { %5168 = vpow2.f32 %v3805_v32 }
 0x16e   :  { %5170 = vpow2.f32 %v3806_v37 }
 0x16f   :  { %5172 = vpow2.f32 %v3807_v45 }
 0x170   :  { %5174 = vtanh.f32 %v5043_v48 }
 0x177   :  { %v5169_v49 = vpop.eup %5168 }
 0x178   :  { %v665_v51 = vadd.f32 1.0, %v5169_v49  ;;  %v5171_v53 = vpop.eup %5170 }
 0x179   :  { %v666_v55 = vadd.f32 1.0, %v5171_v53  ;;  %v5173_v57 = vpop.eup %5172 }
 0x17a   :  { %5176 = vrcp.f32 %v665_v51  ;;  %v5175_v59 = vpop.eup %5174  ;;  %v667_v7 = vadd.f32 1.0, %v5173_v57 }
 0x17b   :  { %5178 = vrcp.f32 %v666_v55 }
 0x17c   :  { %5180 = vrcp.f32 %v667_v7 }
 0x184   :  { %v5177_v62 = vpop.eup %5176 }
 0x185   :  { %v676_v63 = vmul.f32 %v5177_v62, %v5175_v59  ;;  %v5179_v3 = vpop.eup %5178 }
 0x186   :  { %v675_v18 = vmul.f32 0.0, %v5179_v3  ;;  %v5181_v23 = vpop.eup %5180 }
 0x188   :  { %v5939_v12 = vadd.f32 %v676_v63, %v675_v18 }
 0x18a   :  { %5182 = vtanh.f32 %v5939_v12 }
 0x194   :  { %v5183_v26 = vpop.eup %5182 }
 0x195   :  { %v5942_v27 = vmul.f32 %v5183_v26, %v5181_v23 }
 0x197   :  { %751 = vmatmul.mubr.f32.vlgmr.msra.gmra.mrb[2].mxu0 %v5942_v27  ;;  %822 = vmatmul.mubr.f32.vlgmr.msra.gmra.mrb[2].mxu1 %v5942_v27 }
 0x198   :  { %4045 = vmatpush1.bf16.msra.mxu0 %v5748_v22  ;;  %4077 = vmatpush1.bf16.msra.mxu1 %v5751_v25 }
 0x199   :  { %4047 = vmatprep.subr.bf16.mxu0 %v5755_v29  ;;  %4079 = vmatprep.subr.bf16.mxu1 %v5759_v34 }
 0x19a   :  { %923 = vmatprep.mubr.f32.mxu0 %v5598_v0  ;;  %994 = vmatprep.mubr.f32.mxu1 %v5598_v0 }
 0x19c   :  { %4049 = vmatpush1.bf16.msra.mxu0 %v5761_v35  ;;  %4081 = vmatpush1.bf16.msra.mxu1 %v5765_v38 }
 0x19d   :  { %4051 = vmatprep.subr.bf16.mxu0 %v5769_v42  ;;  %4083 = vmatprep.subr.bf16.mxu1 %v5773_v47 }
 0x1a0   :  { %4053 = vmatpush1.bf16.msra.mxu0 %v5777_v50  ;;  %4085 = vmatpush1.bf16.msra.mxu1 %v5781_v54 }
 0x1a1   :  { %4055 = vmatprep.subr.bf16.mxu0 %v5785_v58  ;;  %4087 = vmatprep.subr.bf16.mxu1 %v5789_v61 }
 0x1a4   :  { %4057 = vmatpush1.bf16.msra.mxu0 %v5793_v2  ;;  %4089 = vmatpush1.bf16.msra.mxu1 %v5797_v5 }
 0x1a5   :  { %4059 = vmatprep.subr.bf16.mxu0 %v5801_v8  ;;  %4091 = vmatprep.subr.bf16.mxu1 %v5805_v11 }
 0x1a8   :  { %4061 = vmatpush1.bf16.msra.mxu0 %v5809_v15  ;;  %4093 = vmatpush1.bf16.msra.mxu1 %v5813_v19 }
 0x1a9   :  { %4063 = vmatprep.subr.bf16.mxu0 %v5817_v24  ;;  %4095 = vmatprep.subr.bf16.mxu1 %v5821_v28 }
 0x1ac   :  { %4065 = vmatpush1.bf16.msra.mxu0 %v5825_v33  ;;  %4097 = vmatpush1.bf16.msra.mxu1 %v5829_v39 }
 0x1ad   :  { %4067 = vmatprep.subr.bf16.mxu0 %v5833_v43  ;;  %4099 = vmatprep.subr.bf16.mxu1 %v5837_v46 }
 0x1b0   :  { %4069 = vmatpush1.bf16.msra.mxu0 %v5841_v52  ;;  %4101 = vmatpush1.bf16.msra.mxu1 %v5845_v56 }
 0x1b1   :  { %4071 = vmatprep.subr.bf16.mxu0 %v5849_v60  ;;  %4103 = vmatprep.subr.bf16.mxu1 %v5853_v1 }
 0x1b4   :  { %4073 = vmatpush1.bf16.msra.mxu0 %v5857_v4  ;;  %4105 = vmatpush1.bf16.msra.mxu1 %v5861_v6 }
 0x1b5   :  { %4107 = vmatprep.subr.bf16.mxu0 %v5744_v17  ;;  %4139 = vmatprep.subr.bf16.mxu1 %v5746_v21 }
 0x26a   :  { %v752_v30 = vpop.f32.mrb[2].mxu0  ;;  %v823_v31 = vpop.f32.mrb[2].mxu1 }
 0x26b   :  { %v5028_v32 = vadd.f32 %v752_v30, %v5919_v14  ;;  %v754_v37 = vpop.f32.mrb[3].mxu0  ;;  %v825_v41 = vpop.f32.mrb[3].mxu1  ;;  %v5044_v51 = vadd.f32 %v823_v31, %v5930_v36 }
 0x26c   :  { %v5029_v45 = vadd.f32 %v754_v37, %v5923_v16  ;;  %v5045_v53 = vadd.f32 %v825_v41, %v5936_v44 }
 0x26d   :  { %v3808_v48 = vmul.f32 -1.442695, %v5028_v32  ;;  %v3810_v55 = vmul.f32 -1.442695, %v5044_v51 }
 0x26e   :  { %v3809_v49 = vmul.f32 -1.442695, %v5029_v45 }
 0x26f   :  { %5184 = vpow2.f32 %v3808_v48 }
 0x270   :  { %5186 = vpow2.f32 %v3809_v49 }
 0x271   :  { %5188 = vtanh.f32 %v5045_v53 }
 0x272   :  { %5190 = vpow2.f32 %v3810_v55 }
 0x279   :  { %v5185_v57 = vpop.eup %5184 }
 0x27a   :  { %v837_v59 = vadd.f32 1.0, %v5185_v57  ;;  %v5187_v62 = vpop.eup %5186 }
 0x27b   :  { %v838_v63 = vadd.f32 1.0, %v5187_v62  ;;  %v5189_v3 = vpop.eup %5188 }
 0x27c   :  { %5192 = vrcp.f32 %v837_v59  ;;  %v5191_v7 = vpop.eup %5190 }
 0x27d   :  { %5194 = vrcp.f32 %v838_v63  ;;  %v839_v30 = vadd.f32 1.0, %v5191_v7 }
 0x27f   :  { %5196 = vrcp.f32 %v839_v30 }
 0x286   :  { %v5193_v18 = vpop.eup %5192 }
 0x287   :  { %v848_v23 = vmul.f32 %v5193_v18, %v5189_v3  ;;  %v5195_v26 = vpop.eup %5194 }
 0x288   :  { %v847_v32 = vmul.f32 %v5195_v26, %v5939_v12 }
 0x289   :  { %v5197_v37 = vpop.eup %5196 }
 0x28a   :  { %v5985_v31 = vadd.f32 %v848_v23, %v847_v32 }
 0x28c   :  { %5198 = vtanh.f32 %v5985_v31 }
 0x296   :  { %v5199_v41 = vpop.eup %5198 }
 0x297   :  { %v5988_v45 = vmul.f32 %v5199_v41, %v5197_v37 }
 0x299   :  { %924 = vmatmul.mubr.f32.vlgmr.msra.gmra.mrb[4].mxu0 %v5988_v45  ;;  %995 = vmatmul.mubr.f32.vlgmr.msra.gmra.mrb[4].mxu1 %v5988_v45 }
 0x29a   :  { %4109 = vmatpush1.bf16.msra.mxu0 %v5748_v22  ;;  %4141 = vmatpush1.bf16.msra.mxu1 %v5751_v25 }
 0x29b   :  { %4111 = vmatprep.subr.bf16.mxu0 %v5755_v29  ;;  %4143 = vmatprep.subr.bf16.mxu1 %v5759_v34 }
 0x29c   :  { %1096 = vmatprep.mubr.f32.mxu0 %v5598_v0  ;;  %1167 = vmatprep.mubr.f32.mxu1 %v5598_v0 }
 0x29e   :  { %4113 = vmatpush1.bf16.msra.mxu0 %v5761_v35  ;;  %4145 = vmatpush1.bf16.msra.mxu1 %v5765_v38 }
 0x29f   :  { %4115 = vmatprep.subr.bf16.mxu0 %v5769_v42  ;;  %4147 = vmatprep.subr.bf16.mxu1 %v5773_v47 }
 0x2a2   :  { %4117 = vmatpush1.bf16.msra.mxu0 %v5777_v50  ;;  %4149 = vmatpush1.bf16.msra.mxu1 %v5781_v54 }
 0x2a3   :  { %4119 = vmatprep.subr.bf16.mxu0 %v5785_v58  ;;  %4151 = vmatprep.subr.bf16.mxu1 %v5789_v61 }
 0x2a6   :  { %4121 = vmatpush1.bf16.msra.mxu0 %v5793_v2  ;;  %4153 = vmatpush1.bf16.msra.mxu1 %v5797_v5 }
 0x2a7   :  { %4123 = vmatprep.subr.bf16.mxu0 %v5801_v8  ;;  %4155 = vmatprep.subr.bf16.mxu1 %v5805_v11 }
 0x2aa   :  { %4125 = vmatpush1.bf16.msra.mxu0 %v5809_v15  ;;  %4157 = vmatpush1.bf16.msra.mxu1 %v5813_v19 }
 0x2ab   :  { %4127 = vmatprep.subr.bf16.mxu0 %v5817_v24  ;;  %4159 = vmatprep.subr.bf16.mxu1 %v5821_v28 }
 0x2ae   :  { %4129 = vmatpush1.bf16.msra.mxu0 %v5825_v33  ;;  %4161 = vmatpush1.bf16.msra.mxu1 %v5829_v39 }
 0x2af   :  { %4131 = vmatprep.subr.bf16.mxu0 %v5833_v43  ;;  %4163 = vmatprep.subr.bf16.mxu1 %v5837_v46 }
 0x2b2   :  { %4133 = vmatpush1.bf16.msra.mxu0 %v5841_v52  ;;  %4165 = vmatpush1.bf16.msra.mxu1 %v5845_v56 }
 0x2b3   :  { %4135 = vmatprep.subr.bf16.mxu0 %v5849_v60  ;;  %4167 = vmatprep.subr.bf16.mxu1 %v5853_v1 }
 0x2b6   :  { %4137 = vmatpush1.bf16.msra.mxu0 %v5857_v4  ;;  %4169 = vmatpush1.bf16.msra.mxu1 %v5861_v6 }
 0x2b7   :  { %4171 = vmatprep.subr.bf16.mxu0 %v5744_v17  ;;  %4203 = vmatprep.subr.bf16.mxu1 %v5746_v21 }
 0x36c   :  { %v925_v12 = vpop.f32.mrb[4].mxu0  ;;  %v996_v48 = vpop.f32.mrb[4].mxu1 }
 0x36d   :  { %v5030_v49 = vadd.f32 %v925_v12, %v5919_v14  ;;  %v927_v51 = vpop.f32.mrb[5].mxu0  ;;  %v998_v53 = vpop.f32.mrb[5].mxu1  ;;  %v5046_v62 = vadd.f32 %v996_v48, %v5930_v36 }
 0x36e   :  { %v5031_v55 = vadd.f32 %v927_v51, %v5923_v16  ;;  %v5047_v63 = vadd.f32 %v998_v53, %v5936_v44 }
 0x36f   :  { %v3811_v57 = vmul.f32 -1.442695, %v5030_v49  ;;  %v3813_v3 = vmul.f32 -1.442695, %v5046_v62 }
 0x370   :  { %v3812_v59 = vmul.f32 -1.442695, %v5031_v55 }
 0x371   :  { %5200 = vpow2.f32 %v3811_v57 }
 0x372   :  { %5202 = vpow2.f32 %v3812_v59 }
 0x373   :  { %5204 = vtanh.f32 %v5047_v63 }
 0x374   :  { %5206 = vpow2.f32 %v3813_v3 }
 0x37b   :  { %v5201_v7 = vpop.eup %5200 }
 0x37c   :  { %v1010_v18 = vadd.f32 1.0, %v5201_v7  ;;  %v5203_v23 = vpop.eup %5202 }
 0x37d   :  { %v1011_v26 = vadd.f32 1.0, %v5203_v23  ;;  %v5205_v30 = vpop.eup %5204 }
 0x37e   :  { %5208 = vrcp.f32 %v1010_v18  ;;  %v5207_v32 = vpop.eup %5206 }
 0x37f   :  { %5210 = vrcp.f32 %v1011_v26  ;;  %v1012_v49 = vadd.f32 1.0, %v5207_v32 }
 0x381   :  { %5212 = vrcp.f32 %v1012_v49 }
 0x388   :  { %v5209_v37 = vpop.eup %5208 }
 0x389   :  { %v1021_v41 = vmul.f32 %v5209_v37, %v5205_v30  ;;  %v5211_v12 = vpop.eup %5210 }
 0x38a   :  { %v1020_v51 = vmul.f32 %v5211_v12, %v5985_v31 }
 0x38b   :  { %v5213_v53 = vpop.eup %5212 }
 0x38c   :  { %v6031_v48 = vadd.f32 %v1021_v41, %v1020_v51 }
 0x38e   :  { %5214 = vtanh.f32 %v6031_v48 }
 0x398   :  { %v5215_v55 = vpop.eup %5214 }
 0x399   :  { %v6034_v57 = vmul.f32 %v5215_v55, %v5213_v53 }
 0x39b   :  { %1097 = vmatmul.mubr.f32.vlgmr.msra.gmra.mrb[6].mxu0 %v6034_v57  ;;  %1168 = vmatmul.mubr.f32.vlgmr.msra.gmra.mrb[6].mxu1 %v6034_v57 }
 0x39c   :  { %4173 = vmatpush1.bf16.msra.mxu0 %v5748_v22  ;;  %4205 = vmatpush1.bf16.msra.mxu1 %v5751_v25 }
 0x39d   :  { %4175 = vmatprep.subr.bf16.mxu0 %v5755_v29  ;;  %4207 = vmatprep.subr.bf16.mxu1 %v5759_v34 }
 0x39e   :  { %1269 = vmatprep.mubr.f32.mxu0 %v5598_v0  ;;  %1340 = vmatprep.mubr.f32.mxu1 %v5598_v0 }
 0x3a0   :  { %4177 = vmatpush1.bf16.msra.mxu0 %v5761_v35  ;;  %4209 = vmatpush1.bf16.msra.mxu1 %v5765_v38 }
 0x3a1   :  { %4179 = vmatprep.subr.bf16.mxu0 %v5769_v42  ;;  %4211 = vmatprep.subr.bf16.mxu1 %v5773_v47 }
 0x3a4   :  { %4181 = vmatpush1.bf16.msra.mxu0 %v5777_v50  ;;  %4213 = vmatpush1.bf16.msra.mxu1 %v5781_v54 }
 0x3a5   :  { %4183 = vmatprep.subr.bf16.mxu0 %v5785_v58  ;;  %4215 = vmatprep.subr.bf16.mxu1 %v5789_v61 }
 0x3a8   :  { %4185 = vmatpush1.bf16.msra.mxu0 %v5793_v2  ;;  %4217 = vmatpush1.bf16.msra.mxu1 %v5797_v5 }
 0x3a9   :  { %4187 = vmatprep.subr.bf16.mxu0 %v5801_v8  ;;  %4219 = vmatprep.subr.bf16.mxu1 %v5805_v11 }
 0x3ac   :  { %4189 = vmatpush1.bf16.msra.mxu0 %v5809_v15  ;;  %4221 = vmatpush1.bf16.msra.mxu1 %v5813_v19 }
 0x3ad   :  { %4191 = vmatprep.subr.bf16.mxu0 %v5817_v24  ;;  %4223 = vmatprep.subr.bf16.mxu1 %v5821_v28 }
 0x3b0   :  { %4193 = vmatpush1.bf16.msra.mxu0 %v5825_v33  ;;  %4225 = vmatpush1.bf16.msra.mxu1 %v5829_v39 }
 0x3b1   :  { %4195 = vmatprep.subr.bf16.mxu0 %v5833_v43  ;;  %4227 = vmatprep.subr.bf16.mxu1 %v5837_v46 }
 0x3b4   :  { %4197 = vmatpush1.bf16.msra.mxu0 %v5841_v52  ;;  %4229 = vmatpush1.bf16.msra.mxu1 %v5845_v56 }
 0x3b5   :  { %4199 = vmatprep.subr.bf16.mxu0 %v5849_v60  ;;  %4231 = vmatprep.subr.bf16.mxu1 %v5853_v1 }
 0x3b8   :  { %4201 = vmatpush1.bf16.msra.mxu0 %v5857_v4  ;;  %4233 = vmatpush1.bf16.msra.mxu1 %v5861_v6 }
 0x3b9   :  { %4235 = vmatprep.subr.bf16.mxu0 %v5744_v17  ;;  %4267 = vmatprep.subr.bf16.mxu1 %v5746_v21 }
 0x46e   :  { %v1098_v31 = vpop.f32.mrb[6].mxu0  ;;  %v1169_v59 = vpop.f32.mrb[6].mxu1 }
 0x46f   :  { %v5032_v62 = vadd.f32 %v1098_v31, %v5919_v14  ;;  %v1100_v63 = vpop.f32.mrb[7].mxu0  ;;  %v1171_v3 = vpop.f32.mrb[7].mxu1  ;;  %v5048_v26 = vadd.f32 %v1169_v59, %v5930_v36 }
 0x470   :  { %v5033_v7 = vadd.f32 %v1100_v63, %v5923_v16  ;;  %v5049_v30 = vadd.f32 %v1171_v3, %v5936_v44 }
 0x471   :  { %v3814_v18 = vmul.f32 -1.442695, %v5032_v62  ;;  %v3816_v32 = vmul.f32 -1.442695, %v5048_v26 }
 0x472   :  { %v3815_v23 = vmul.f32 -1.442695, %v5033_v7 }
 0x473   :  { %5216 = vpow2.f32 %v3814_v18 }
 0x474   :  { %5218 = vpow2.f32 %v3815_v23 }
 0x475   :  { %5220 = vtanh.f32 %v5049_v30 }
 0x476   :  { %5222 = vpow2.f32 %v3816_v32 }
 0x47d   :  { %v5217_v37 = vpop.eup %5216 }
 0x47e   :  { %v1183_v41 = vadd.f32 1.0, %v5217_v37  ;;  %v5219_v12 = vpop.eup %5218 }
 0x47f   :  { %v1184_v49 = vadd.f32 1.0, %v5219_v12  ;;  %v5221_v51 = vpop.eup %5220 }
 0x480   :  { %5224 = vrcp.f32 %v1183_v41  ;;  %v5223_v53 = vpop.eup %5222 }
 0x481   :  { %5226 = vrcp.f32 %v1184_v49  ;;  %v1185_v63 = vadd.f32 1.0, %v5223_v53 }
 0x483   :  { %5228 = vrcp.f32 %v1185_v63 }
 0x48a   :  { %v5225_v55 = vpop.eup %5224 }
 0x48b   :  { %v1194_v31 = vmul.f32 %v5225_v55, %v5221_v51  ;;  %v5227_v62 = vpop.eup %5226 }
 0x48c   :  { %v1193_v7 = vmul.f32 %v5227_v62, %v6031_v48 }
 0x48d   :  { %v5229_v3 = vpop.eup %5228 }
 0x48e   :  { %v6077_v59 = vadd.f32 %v1194_v31, %v1193_v7 }
 0x490   :  { %5230 = vtanh.f32 %v6077_v59 }
 0x49a   :  { %v5231_v18 = vpop.eup %5230 }
 0x49b   :  { %v6080_v23 = vmul.f32 %v5231_v18, %v5229_v3 }
 0x49d   :  { %1270 = vmatmul.mubr.f32.vlgmr.msra.gmra.mrb[8].mxu0 %v6080_v23  ;;  %1341 = vmatmul.mubr.f32.vlgmr.msra.gmra.mrb[8].mxu1 %v6080_v23 }
 0x49e   :  { %4237 = vmatpush1.bf16.msra.mxu0 %v5748_v22  ;;  %4269 = vmatpush1.bf16.msra.mxu1 %v5751_v25 }
 0x49f   :  { %4239 = vmatprep.subr.bf16.mxu0 %v5755_v29  ;;  %4271 = vmatprep.subr.bf16.mxu1 %v5759_v34 }
 0x4a0   :  { %1442 = vmatprep.mubr.f32.mxu0 %v5598_v0  ;;  %1513 = vmatprep.mubr.f32.mxu1 %v5598_v0 }
 0x4a2   :  { %4241 = vmatpush1.bf16.msra.mxu0 %v5761_v35  ;;  %4273 = vmatpush1.bf16.msra.mxu1 %v5765_v38 }
 0x4a3   :  { %4243 = vmatprep.subr.bf16.mxu0 %v5769_v42  ;;  %4275 = vmatprep.subr.bf16.mxu1 %v5773_v47 }
 0x4a6   :  { %4245 = vmatpush1.bf16.msra.mxu0 %v5777_v50  ;;  %4277 = vmatpush1.bf16.msra.mxu1 %v5781_v54 }
 0x4a7   :  { %4247 = vmatprep.subr.bf16.mxu0 %v5785_v58  ;;  %4279 = vmatprep.subr.bf16.mxu1 %v5789_v61 }
 0x4aa   :  { %4249 = vmatpush1.bf16.msra.mxu0 %v5793_v2  ;;  %4281 = vmatpush1.bf16.msra.mxu1 %v5797_v5 }
 0x4ab   :  { %4251 = vmatprep.subr.bf16.mxu0 %v5801_v8  ;;  %4283 = vmatprep.subr.bf16.mxu1 %v5805_v11 }
 0x4ae   :  { %4253 = vmatpush1.bf16.msra.mxu0 %v5809_v15  ;;  %4285 = vmatpush1.bf16.msra.mxu1 %v5813_v19 }
 0x4af   :  { %4255 = vmatprep.subr.bf16.mxu0 %v5817_v24  ;;  %4287 = vmatprep.subr.bf16.mxu1 %v5821_v28 }
 0x4b2   :  { %4257 = vmatpush1.bf16.msra.mxu0 %v5825_v33  ;;  %4289 = vmatpush1.bf16.msra.mxu1 %v5829_v39 }
 0x4b3   :  { %4259 = vmatprep.subr.bf16.mxu0 %v5833_v43  ;;  %4291 = vmatprep.subr.bf16.mxu1 %v5837_v46 }
 0x4b6   :  { %4261 = vmatpush1.bf16.msra.mxu0 %v5841_v52  ;;  %4293 = vmatpush1.bf16.msra.mxu1 %v5845_v56 }
 0x4b7   :  { %4263 = vmatprep.subr.bf16.mxu0 %v5849_v60  ;;  %4295 = vmatprep.subr.bf16.mxu1 %v5853_v1 }
 0x4ba   :  { %4265 = vmatpush1.bf16.msra.mxu0 %v5857_v4  ;;  %4297 = vmatpush1.bf16.msra.mxu1 %v5861_v6 }
 0x4bb   :  { %4299 = vmatprep.subr.bf16.mxu0 %v5744_v17  ;;  %4331 = vmatprep.subr.bf16.mxu1 %v5746_v21 }
 0x570   :  { %v1271_v48 = vpop.f32.mrb[8].mxu0  ;;  %v1342_v26 = vpop.f32.mrb[8].mxu1 }
 0x571   :  { %v5034_v30 = vadd.f32 %v1271_v48, %v5919_v14  ;;  %v1273_v32 = vpop.f32.mrb[9].mxu0  ;;  %v1344_v37 = vpop.f32.mrb[9].mxu1  ;;  %v5050_v51 = vadd.f32 %v1342_v26, %v5930_v36 }
 0x572   :  { %v5035_v41 = vadd.f32 %v1273_v32, %v5923_v16  ;;  %v5051_v53 = vadd.f32 %v1344_v37, %v5936_v44 }
 0x573   :  { %v3817_v12 = vmul.f32 -1.442695, %v5034_v30  ;;  %v3819_v55 = vmul.f32 -1.442695, %v5050_v51 }
 0x574   :  { %v3818_v49 = vmul.f32 -1.442695, %v5035_v41 }
 0x575   :  { %5232 = vpow2.f32 %v3817_v12 }
 0x576   :  { %5234 = vpow2.f32 %v3818_v49 }
 0x577   :  { %5236 = vtanh.f32 %v5051_v53 }
 0x578   :  { %5238 = vpow2.f32 %v3819_v55 }
 0x57f   :  { %v5233_v31 = vpop.eup %5232 }
 0x580   :  { %v1356_v62 = vadd.f32 1.0, %v5233_v31  ;;  %v5235_v63 = vpop.eup %5234 }
 0x581   :  { %v1357_v7 = vadd.f32 1.0, %v5235_v63  ;;  %v5237_v3 = vpop.eup %5236 }
 0x582   :  { %5240 = vrcp.f32 %v1356_v62  ;;  %v5239_v18 = vpop.eup %5238 }
 0x583   :  { %5242 = vrcp.f32 %v1357_v7  ;;  %v1358_v41 = vadd.f32 1.0, %v5239_v18 }
 0x585   :  { %5244 = vrcp.f32 %v1358_v41 }
 0x58c   :  { %v5241_v48 = vpop.eup %5240 }
 0x58d   :  { %v1367_v30 = vmul.f32 %v5241_v48, %v5237_v3  ;;  %v5243_v32 = vpop.eup %5242 }
 0x58e   :  { %v1366_v12 = vmul.f32 %v5243_v32, %v6077_v59 }
 0x58f   :  { %v5245_v37 = vpop.eup %5244 }
 0x590   :  { %v6123_v26 = vadd.f32 %v1367_v30, %v1366_v12 }
 0x592   :  { %5246 = vtanh.f32 %v6123_v26 }
 0x59c   :  { %v5247_v49 = vpop.eup %5246 }
 0x59d   :  { %v6126_v51 = vmul.f32 %v5247_v49, %v5245_v37 }
 0x59f   :  { %1443 = vmatmul.mubr.f32.vlgmr.msra.gmra.mrb[10].mxu0 %v6126_v51  ;;  %1514 = vmatmul.mubr.f32.vlgmr.msra.gmra.mrb[10].mxu1 %v6126_v51 }
 0x5a0   :  { %4301 = vmatpush1.bf16.msra.mxu0 %v5748_v22  ;;  %4333 = vmatpush1.bf16.msra.mxu1 %v5751_v25 }
 0x5a1   :  { %4303 = vmatprep.subr.bf16.mxu0 %v5755_v29  ;;  %4335 = vmatprep.subr.bf16.mxu1 %v5759_v34 }
 0x5a2   :  { %1615 = vmatprep.mubr.f32.mxu0 %v5598_v0  ;;  %1686 = vmatprep.mubr.f32.mxu1 %v5598_v0 }
 0x5a4   :  { %4305 = vmatpush1.bf16.msra.mxu0 %v5761_v35  ;;  %4337 = vmatpush1.bf16.msra.mxu1 %v5765_v38 }
 0x5a5   :  { %4307 = vmatprep.subr.bf16.mxu0 %v5769_v42  ;;  %4339 = vmatprep.subr.bf16.mxu1 %v5773_v47 }
 0x5a8   :  { %4309 = vmatpush1.bf16.msra.mxu0 %v5777_v50  ;;  %4341 = vmatpush1.bf16.msra.mxu1 %v5781_v54 }
 0x5a9   :  { %4311 = vmatprep.subr.bf16.mxu0 %v5785_v58  ;;  %4343 = vmatprep.subr.bf16.mxu1 %v5789_v61 }
 0x5ac   :  { %4313 = vmatpush1.bf16.msra.mxu0 %v5793_v2  ;;  %4345 = vmatpush1.bf16.msra.mxu1 %v5797_v5 }
 0x5ad   :  { %4315 = vmatprep.subr.bf16.mxu0 %v5801_v8  ;;  %4347 = vmatprep.subr.bf16.mxu1 %v5805_v11 }
 0x5b0   :  { %4317 = vmatpush1.bf16.msra.mxu0 %v5809_v15  ;;  %4349 = vmatpush1.bf16.msra.mxu1 %v5813_v19 }
 0x5b1   :  { %4319 = vmatprep.subr.bf16.mxu0 %v5817_v24  ;;  %4351 = vmatprep.subr.bf16.mxu1 %v5821_v28 }
 0x5b4   :  { %4321 = vmatpush1.bf16.msra.mxu0 %v5825_v33  ;;  %4353 = vmatpush1.bf16.msra.mxu1 %v5829_v39 }
 0x5b5   :  { %4323 = vmatprep.subr.bf16.mxu0 %v5833_v43  ;;  %4355 = vmatprep.subr.bf16.mxu1 %v5837_v46 }
 0x5b8   :  { %4325 = vmatpush1.bf16.msra.mxu0 %v5841_v52  ;;  %4357 = vmatpush1.bf16.msra.mxu1 %v5845_v56 }
 0x5b9   :  { %4327 = vmatprep.subr.bf16.mxu0 %v5849_v60  ;;  %4359 = vmatprep.subr.bf16.mxu1 %v5853_v1 }
 0x5bc   :  { %4329 = vmatpush1.bf16.msra.mxu0 %v5857_v4  ;;  %4361 = vmatpush1.bf16.msra.mxu1 %v5861_v6 }
 0x5bd   :  { %4363 = vmatprep.subr.bf16.mxu0 %v5744_v17  ;;  %4395 = vmatprep.subr.bf16.mxu1 %v5746_v21 }
 0x672   :  { %v1444_v59 = vpop.f32.mrb[10].mxu0  ;;  %v1515_v53 = vpop.f32.mrb[10].mxu1 }
 0x673   :  { %v5036_v55 = vadd.f32 %v1444_v59, %v5919_v14  ;;  %v1446_v31 = vpop.f32.mrb[11].mxu0  ;;  %v1517_v62 = vpop.f32.mrb[11].mxu1  ;;  %v5052_v18 = vadd.f32 %v1515_v53, %v5930_v36 }
 0x674   :  { %v5037_v63 = vadd.f32 %v1446_v31, %v5923_v16  ;;  %v5053_v48 = vadd.f32 %v1517_v62, %v5936_v44 }
 0x675   :  { %v3820_v7 = vmul.f32 -1.442695, %v5036_v55  ;;  %v3822_v30 = vmul.f32 -1.442695, %v5052_v18  ;;  %v1904_v18 = vld [vmem:[#allocation14 + $0x10] sm:$0xff] }
 0x676   :  { %v3821_v3 = vmul.f32 -1.442695, %v5037_v63 }
 0x677   :  { %5248 = vpow2.f32 %v3820_v7 }
 0x678   :  { %5250 = vpow2.f32 %v3821_v3 }
 0x679   :  { %5252 = vtanh.f32 %v5053_v48  ;;  %v1908_v48 = vld [vmem:[#allocation14 + $0x30] sm:$0xff] }
 0x67a   :  { %5254 = vpow2.f32 %v3822_v30  ;;  %v1911_v30 = vld [vmem:[#allocation14 + $0x48] sm:$0xff] }
 0x681   :  { %v5249_v17 = vpop.eup %5248 }
 0x682   :  { %v1529_v32 = vadd.f32 1.0, %v5249_v17  ;;  %v5251_v21 = vpop.eup %5250  ;;  %v1915_v17 = vld [vmem:[#allocation14 + $0x68] sm:$0xff] }
 0x683   :  { %v1530_v41 = vadd.f32 1.0, %v5251_v21  ;;  %v5253_v12 = vpop.eup %5252  ;;  %v1917_v21 = vld [vmem:[#allocation14 + $0x78] sm:$0xff] }
 0x684   :  { %5256 = vrcp.f32 %v1529_v32  ;;  %v5255_v37 = vpop.eup %5254  ;;  %v1913_v32 = vld [vmem:[#allocation14 + $0x58] sm:$0xff] }
 0x685   :  { %5258 = vrcp.f32 %v1530_v41  ;;  %v1531_v31 = vadd.f32 1.0, %v5255_v37 }
 0x687   :  { %5260 = vrcp.f32 %v1531_v31 }
 0x68e   :  { %v5257_v49 = vpop.eup %5256 }
 0x68f   :  { %v1540_v59 = vmul.f32 %v5257_v49, %v5253_v12  ;;  %v5259_v55 = vpop.eup %5258  ;;  %v4460_v49 = vpack.c.bf16 %v1908_v48, %v1904_v18  ;;  %v1934_v18 = vld [vmem:[#allocation14 + $0x100] sm:$0xff] }
 0x690   :  { %v1539_v63 = vmul.f32 %v5259_v55, %v6123_v26  ;;  %v1906_v26 = vld [vmem:[#allocation14 + $0x20] sm:$0xff] }
 0x691   :  { %v5261_v62 = vpop.eup %5260  ;;  %v1914_v55 = vld [vmem:[#allocation14 + $0x60] sm:$0xff] }
 0x692   :  { %v6169_v53 = vadd.f32 %v1540_v59, %v1539_v63  ;;  %v1910_v59 = vld [vmem:[#allocation14 + $0x40] sm:$0xff]  ;;  %v4430_v63 = vpack.c.bf16 %v1915_v17, %v1911_v30 }
 0x693   :  { %v1938_v48 = vld [vmem:[#allocation14 + $0x120] sm:$0xff] }
 0x694   :  { %5262 = vtanh.f32 %v6169_v53 }
 0x69e   :  { %v5263_v7 = vpop.eup %5262 }
 0x69f   :  { %v6172_v3 = vmul.f32 %v5263_v7, %v5261_v62  ;;  %v1912_v62 = vld [vmem:[#allocation14 + $0x50] sm:$0xff] }
 0x6a0   :  { %v1916_v7 = vld [vmem:[#allocation14 + $0x70] sm:$0xff] }
 0x6a1   :  { %1616 = vmatmul.mubr.f32.vlgmr.msra.gmra.mrb[12].mxu0 %v6172_v3  ;;  %1687 = vmatmul.mubr.f32.vlgmr.msra.gmra.mrb[12].mxu1 %v6172_v3 }
 0x6a2   :  { %4365 = vmatpush1.bf16.msra.mxu0 %v5748_v22  ;;  %4397 = vmatpush1.bf16.msra.mxu1 %v5751_v25  ;;  %v1903_v22 = vld [vmem:[#allocation14 + $0x8] sm:$0xff] }
 0x6a3   :  { %4367 = vmatprep.subr.bf16.mxu0 %v5755_v29  ;;  %4399 = vmatprep.subr.bf16.mxu1 %v5759_v34  ;;  %v1907_v25 = vld [vmem:[#allocation14 + $0x28] sm:$0xff]  ;;  %v1905_v29 = vld [vmem:[#allocation14 + $0x18] sm:$0xff] }
 0x6a4   :  { %1788 = vmatprep.mubr.f32.mxu0 %v5598_v0  ;;  %1859 = vmatprep.mubr.f32.mxu1 %v5598_v0  ;;  %v4426_v34 = vpack.c.bf16 %v1907_v25, %v1903_v22  ;;  %v1919_v22 = vld [vmem:[#allocation14 + $0x88] sm:$0xff] }
 0x6a5   :  { %v1923_v25 = vld [vmem:[#allocation14 + $0xa8] sm:$0xff] }
 0x6a6   :  { %4369 = vmatpush1.bf16.msra.mxu0 %v5761_v35  ;;  %4401 = vmatpush1.bf16.msra.mxu1 %v5765_v38  ;;  %v1909_v35 = vld [vmem:[#allocation14 + $0x38] sm:$0xff] }
 0x6a7   :  { %4371 = vmatprep.subr.bf16.mxu0 %v5769_v42  ;;  %4403 = vmatprep.subr.bf16.mxu1 %v5773_v47  ;;  %v4458_v38 = vpack.c.bf16 %v1909_v35, %v1905_v29  ;;  %v1921_v29 = vld [vmem:[#allocation14 + $0x98] sm:$0xff]  ;;  %v4432_v35 = vpack.c.bf16 %v1914_v55, %v1910_v59  ;;  %v4444_v59 = vpack.c.bf16 %v1938_v48, %v1934_v18  ;;  %v2248_v48 = vld [vmem:[#allocation16 + $0x10] sm:$0xff] }
 0x6aa   :  { %4373 = vmatpush1.bf16.msra.mxu0 %v5777_v50  ;;  %4405 = vmatpush1.bf16.msra.mxu1 %v5781_v54 }
 0x6ab   :  { %4375 = vmatprep.subr.bf16.mxu0 %v5785_v58  ;;  %4407 = vmatprep.subr.bf16.mxu1 %v5789_v61 }
 0x6ae   :  { %4377 = vmatpush1.bf16.msra.mxu0 %v5793_v2  ;;  %4409 = vmatpush1.bf16.msra.mxu1 %v5797_v5 }
 0x6af   :  { %4379 = vmatprep.subr.bf16.mxu0 %v5801_v8  ;;  %4411 = vmatprep.subr.bf16.mxu1 %v5805_v11 }
 0x6b2   :  { %4381 = vmatpush1.bf16.msra.mxu0 %v5809_v15  ;;  %4413 = vmatpush1.bf16.msra.mxu1 %v5813_v19 }
 0x6b3   :  { %4383 = vmatprep.subr.bf16.mxu0 %v5817_v24  ;;  %4415 = vmatprep.subr.bf16.mxu1 %v5821_v28 }
 0x6b6   :  { %4385 = vmatpush1.bf16.msra.mxu0 %v5825_v33  ;;  %4417 = vmatpush1.bf16.msra.mxu1 %v5829_v39 }
 0x6b7   :  { %4387 = vmatprep.subr.bf16.mxu0 %v5833_v43  ;;  %4419 = vmatprep.subr.bf16.mxu1 %v5837_v46 }
 0x6ba   :  { %4389 = vmatpush1.bf16.msra.mxu0 %v5841_v52  ;;  %4421 = vmatpush1.bf16.msra.mxu1 %v5845_v56 }
 0x6bb   :  { %4391 = vmatprep.subr.bf16.mxu0 %v5849_v60  ;;  %4423 = vmatprep.subr.bf16.mxu1 %v5853_v1 }
 0x6be   :  { %4393 = vmatpush1.bf16.msra.mxu0 %v5857_v4  ;;  %4425 = vmatpush1.bf16.msra.mxu1 %v5861_v6  ;;  %v1902_v6 = vld [vmem:[#allocation14] sm:$0xff] }
 0x6bf   :  { %4427 = vmatprep.subr.bf16.mxu0 %v4426_v34  ;;  %4459 = vmatprep.subr.bf16.mxu1 %v4458_v38  ;;  %v4428_v37 = vpack.c.bf16 %v1906_v26, %v1902_v6  ;;  %v1925_v34 = vld [vmem:[#allocation14 + $0xb8] sm:$0xff]  ;;  %v4464_v38 = vpack.c.bf16 %v1916_v7, %v1912_v62 }
 0x774   :  { %v1617_v42 = vpop.f32.mrb[12].mxu0  ;;  %v1688_v47 = vpop.f32.mrb[12].mxu1 }
 0x775   :  { %v5038_v50 = vadd.f32 %v1617_v42, %v5919_v14  ;;  %v1619_v54 = vpop.f32.mrb[13].mxu0  ;;  %v1690_v58 = vpop.f32.mrb[13].mxu1  ;;  %v5054_v8 = vadd.f32 %v1688_v47, %v5930_v36  ;;  %v1918_v42 = vld [vmem:[#allocation14 + $0x80] sm:$0xff] }
 0x776   :  { %v5039_v61 = vadd.f32 %v1619_v54, %v5923_v16  ;;  %v5055_v11 = vadd.f32 %v1690_v58, %v5936_v44  ;;  %v1922_v47 = vld [vmem:[#allocation14 + $0xa0] sm:$0xff]  ;;  %v4466_v54 = vpack.c.bf16 %v1925_v34, %v1921_v29  ;;  %v1920_v58 = vld [vmem:[#allocation14 + $0x90] sm:$0xff]  ;;  %v1951_v29 = vld [vmem:[#allocation14 + $0x188] sm:$0xff] }
 0x777   :  { %v3823_v2 = vmul.f32 -1.442695, %v5038_v50  ;;  %v3825_v15 = vmul.f32 -1.442695, %v5054_v8  ;;  %v4434_v50 = vpack.c.bf16 %v1923_v25, %v1919_v22  ;;  %v1929_v8 = vld [vmem:[#allocation14 + $0xd8] sm:$0xff]  ;;  %v1944_v22 = vld [vmem:[#allocation14 + $0x150] sm:$0xff] }
 0x778   :  { %v3824_v5 = vmul.f32 -1.442695, %v5039_v61  ;;  %v1924_v61 = vld [vmem:[#allocation14 + $0xb0] sm:$0xff]  ;;  %v1955_v34 = vld [vmem:[#allocation14 + $0x1a8] sm:$0xff] }
 0x779   :  { %5264 = vpow2.f32 %v3823_v2  ;;  %v1927_v2 = vld [vmem:[#allocation14 + $0xc8] sm:$0xff]  ;;  %v1948_v25 = vld [vmem:[#allocation14 + $0x170] sm:$0xff] }
 0x77a   :  { %5266 = vpow2.f32 %v3824_v5  ;;  %v1931_v5 = vld [vmem:[#allocation14 + $0xe8] sm:$0xff] }
 0x77b   :  { %5268 = vtanh.f32 %v5055_v11  ;;  %v1933_v11 = vld [vmem:[#allocation14 + $0xf8] sm:$0xff] }
 0x77c   :  { %5270 = vpow2.f32 %v3825_v15  ;;  %v4436_v15 = vpack.c.bf16 %v1922_v47, %v1918_v42  ;;  %v4480_v47 = vpack.c.bf16 %v1948_v25, %v1944_v22  ;;  %v2267_v22 = vld [vmem:[#allocation16 + $0xa8] sm:$0xff]  ;;  %v2265_v25 = vld [vmem:[#allocation16 + $0x98] sm:$0xff] }
 0x783   :  { %v5265_v19 = vpop.eup %5264 }
 0x784   :  { %v1702_v24 = vadd.f32 1.0, %v5265_v19  ;;  %v5267_v28 = vpop.eup %5266  ;;  %v4468_v19 = vpack.c.bf16 %v1924_v61, %v1920_v58  ;;  %v4450_v58 = vpack.c.bf16 %v1955_v34, %v1951_v29  ;;  %v2269_v34 = vld [vmem:[#allocation16 + $0xb8] sm:$0xff] }
 0x785   :  { %v1703_v33 = vadd.f32 1.0, %v5267_v28  ;;  %v5269_v39 = vpop.eup %5268  ;;  %v1930_v28 = vld [vmem:[#allocation14 + $0xe0] sm:$0xff] }
 0x786   :  { %5272 = vrcp.f32 %v1702_v24  ;;  %v5271_v43 = vpop.eup %5270  ;;  %v1926_v24 = vld [vmem:[#allocation14 + $0xc0] sm:$0xff] }
 0x787   :  { %5274 = vrcp.f32 %v1703_v33  ;;  %v1704_v60 = vadd.f32 1.0, %v5271_v43  ;;  %v4438_v33 = vpack.c.bf16 %v1931_v5, %v1927_v2  ;;  %v1928_v43 = vld [vmem:[#allocation14 + $0xd0] sm:$0xff]  ;;  %v4440_v6 = vpack.c.bf16 %v1930_v28, %v1926_v24 }
 0x788   :  { %v1952_v2 = vld [vmem:[#allocation14 + $0x190] sm:$0xff] }
 0x789   :  { %5276 = vrcp.f32 %v1704_v60  ;;  %v1937_v60 = vld [vmem:[#allocation14 + $0x118] sm:$0xff]  ;;  %v1956_v5 = vld [vmem:[#allocation14 + $0x1b0] sm:$0xff] }
 0x78a   :  { %v4484_v28 = vpack.c.bf16 %v1956_v5, %v1952_v2  ;;  %v2275_v2 = vld [vmem:[#allocation16 + $0xe8] sm:$0xff]  ;;  %v2273_v5 = vld [vmem:[#allocation16 + $0xd8] sm:$0xff] }
 0x790   :  { %v5273_v46 = vpop.eup %5272 }
 0x791   :  { %v1713_v52 = vmul.f32 %v5273_v46, %v5269_v39  ;;  %v5275_v56 = vpop.eup %5274  ;;  %v4470_v39 = vpack.c.bf16 %v1933_v11, %v1929_v8  ;;  %v1932_v46 = vld [vmem:[#allocation14 + $0xf0] sm:$0xff]  ;;  %v1959_v8 = vld [vmem:[#allocation14 + $0x1c8] sm:$0xff] }
 0x792   :  { %v1712_v1 = vmul.f32 %v5275_v56, %v6169_v53  ;;  %v4462_v53 = vpack.c.bf16 %v1917_v21, %v1913_v32  ;;  %v1939_v56 = vld [vmem:[#allocation14 + $0x128] sm:$0xff]  ;;  %v4472_v26 = vpack.c.bf16 %v1932_v46, %v1928_v43  ;;  %v1936_v32 = vld [vmem:[#allocation14 + $0x110] sm:$0xff]  ;;  %v1962_v46 = vld [vmem:[#allocation14 + $0x1e0] sm:$0xff] }
 0x793   :  { %v5277_v41 = vpop.eup %5276  ;;  %v1940_v21 = vld [vmem:[#allocation14 + $0x130] sm:$0xff]  ;;  %v1963_v11 = vld [vmem:[#allocation14 + $0x1e8] sm:$0xff] }
 0x794   :  { %v6213_v4 = vadd.f32 %v1713_v52, %v1712_v1  ;;  %v1935_v52 = vld [vmem:[#allocation14 + $0x108] sm:$0xff]  ;;  %v1941_v1 = vld [vmem:[#allocation14 + $0x138] sm:$0xff]  ;;  %v4476_v55 = vpack.c.bf16 %v1940_v21, %v1936_v32 }
 0x795   :  { %v4442_v30 = vpack.c.bf16 %v1939_v56, %v1935_v52  ;;  %v4474_v17 = vpack.c.bf16 %v1941_v1, %v1937_v60  ;;  %v1960_v52 = vld [vmem:[#allocation14 + $0x1d0] sm:$0xff]  ;;  %v2259_v32 = vld [vmem:[#allocation16 + $0x68] sm:$0xff]  ;;  %v2257_v21 = vld [vmem:[#allocation16 + $0x58] sm:$0xff] }
 0x796   :  { %5278 = vtanh.f32 %v6213_v4  ;;  %v1964_v56 = vld [vmem:[#allocation14 + $0x1f0] sm:$0xff] }
 0x797   :  { %v4488_v1 = vpack.c.bf16 %v1964_v56, %v1960_v52  ;;  %v2283_v52 = vld [vmem:[#allocation16 + $0x128] sm:$0xff]  ;;  %v2281_v56 = vld [vmem:[#allocation16 + $0x118] sm:$0xff] }
 0x7a0   :  { %v5279_v12 = vpop.eup %5278 }
 0x7a1   :  { %v6216_v31 = vmul.f32 %v5279_v12, %v5277_v41  ;;  %v1943_v41 = vld [vmem:[#allocation14 + $0x148] sm:$0xff] }
 0x7a2   :  { %v1947_v12 = vld [vmem:[#allocation14 + $0x168] sm:$0xff] }
 0x7a3   :  { %1789 = vmatmul.mubr.f32.vlgmr.msra.gmra.mrb[14].mxu0 %v6216_v31  ;;  %1860 = vmatmul.mubr.f32.vlgmr.msra.gmra.mrb[14].mxu1 %v6216_v31  ;;  %v4446_v62 = vpack.c.bf16 %v1947_v12, %v1943_v41  ;;  %v2261_v12 = vld [vmem:[#allocation16 + $0x78] sm:$0xff] }
 0x7a4   :  { %4429 = vmatpush1.bf16.msra.mxu0 %v4428_v37  ;;  %4461 = vmatpush1.bf16.msra.mxu1 %v4460_v49  ;;  %v1945_v37 = vld [vmem:[#allocation14 + $0x158] sm:$0xff] }
 0x7a5   :  { %4431 = vmatprep.subr.bf16.mxu0 %v4430_v63  ;;  %4463 = vmatprep.subr.bf16.mxu1 %v4462_v53  ;;  %v1949_v49 = vld [vmem:[#allocation14 + $0x178] sm:$0xff]  ;;  %v1942_v63 = vld [vmem:[#allocation14 + $0x140] sm:$0xff] }
 0x7a6   :  { %2052 = vmatprep.mubr.f32.mxu0 %v5598_v0  ;;  %2165 = vmatprep.mubr.f32.mxu1 %v5598_v0  ;;  %v1946_v53 = vld [vmem:[#allocation14 + $0x160] sm:$0xff]  ;;  %v4478_v7 = vpack.c.bf16 %v1949_v49, %v1945_v37 }
 0x7a7   :  { %v4448_v42 = vpack.c.bf16 %v1946_v53, %v1942_v63  ;;  %v2254_v37 = vld [vmem:[#allocation16 + $0x40] sm:$0xff]  ;;  %v2256_v63 = vld [vmem:[#allocation16 + $0x50] sm:$0xff] }
 0x7a8   :  { %4433 = vmatpush1.bf16.msra.mxu0 %v4432_v35  ;;  %4465 = vmatpush1.bf16.msra.mxu1 %v4464_v38  ;;  %v1953_v35 = vld [vmem:[#allocation14 + $0x198] sm:$0xff]  ;;  %v2258_v49 = vld [vmem:[#allocation16 + $0x60] sm:$0xff]  ;;  %v2260_v53 = vld [vmem:[#allocation16 + $0x70] sm:$0xff] }
 0x7a9   :  { %4435 = vmatprep.subr.bf16.mxu0 %v4434_v50  ;;  %4467 = vmatprep.subr.bf16.mxu1 %v4466_v54  ;;  %v1957_v38 = vld [vmem:[#allocation14 + $0x1b8] sm:$0xff]  ;;  %v1950_v50 = vld [vmem:[#allocation14 + $0x180] sm:$0xff] }
 0x7aa   :  { %v1954_v54 = vld [vmem:[#allocation14 + $0x1a0] sm:$0xff]  ;;  %v4482_v61 = vpack.c.bf16 %v1957_v38, %v1953_v35 }
 0x7ab   :  { %v4452_v24 = vpack.c.bf16 %v1954_v54, %v1950_v50  ;;  %v2262_v35 = vld [vmem:[#allocation16 + $0x80] sm:$0xff]  ;;  %v2264_v50 = vld [vmem:[#allocation16 + $0x90] sm:$0xff] }
 0x7ac   :  { %4437 = vmatpush1.bf16.msra.mxu0 %v4436_v15  ;;  %4469 = vmatpush1.bf16.msra.mxu1 %v4468_v19  ;;  %v1961_v15 = vld [vmem:[#allocation14 + $0x1d8] sm:$0xff]  ;;  %v2266_v38 = vld [vmem:[#allocation16 + $0xa0] sm:$0xff]  ;;  %v2268_v54 = vld [vmem:[#allocation16 + $0xb0] sm:$0xff] }
 0x7ad   :  { %4439 = vmatprep.subr.bf16.mxu0 %v4438_v33  ;;  %4471 = vmatprep.subr.bf16.mxu1 %v4470_v39  ;;  %v1965_v19 = vld [vmem:[#allocation14 + $0x1f8] sm:$0xff]  ;;  %v1958_v33 = vld [vmem:[#allocation14 + $0x1c0] sm:$0xff]  ;;  %v4454_v39 = vpack.c.bf16 %v1963_v11, %v1959_v8 }
 0x7ae   :  { %v4486_v43 = vpack.c.bf16 %v1965_v19, %v1961_v15  ;;  %v4456_v60 = vpack.c.bf16 %v1962_v46, %v1958_v33  ;;  %v2277_v11 = vld [vmem:[#allocation16 + $0xf8] sm:$0xff]  ;;  %v2270_v15 = vld [vmem:[#allocation16 + $0xc0] sm:$0xff]  ;;  %v2272_v33 = vld [vmem:[#allocation16 + $0xd0] sm:$0xff] }
 0x7af   :  { %v2274_v19 = vld [vmem:[#allocation16 + $0xe0] sm:$0xff]  ;;  %v2279_v46 = vld [vmem:[#allocation16 + $0x108] sm:$0xff] }
 0x7b0   :  { %4441 = vmatpush1.bf16.msra.mxu0 %v4440_v6  ;;  %4473 = vmatpush1.bf16.msra.mxu1 %v4472_v26  ;;  %v2246_v6 = vld [vmem:[#allocation16] sm:$0xff] }
 0x7b1   :  { %4443 = vmatprep.subr.bf16.mxu0 %v4442_v30  ;;  %4475 = vmatprep.subr.bf16.mxu1 %v4474_v17  ;;  %v2252_v30 = vld [vmem:[#allocation16 + $0x30] sm:$0xff]  ;;  %v2255_v17 = vld [vmem:[#allocation16 + $0x48] sm:$0xff] }
 0x7b2   :  { %v6262_v41 = vpack.c.bf16 %v2259_v32, %v2255_v17  ;;  %v2291_v17 = vld [vmem:[#allocation16 + $0x168] sm:$0xff]  ;;  %v2289_v32 = vld [vmem:[#allocation16 + $0x158] sm:$0xff] }
 0x7b4   :  { %4445 = vmatpush1.bf16.msra.mxu0 %v4444_v59  ;;  %4477 = vmatpush1.bf16.msra.mxu1 %v4476_v55  ;;  %v6264_v59 = vpack.c.bf16 %v2261_v12, %v2257_v21  ;;  %v6266_v55 = vpack.c.bf16 %v2258_v49, %v2254_v37  ;;  %v2293_v21 = vld [vmem:[#allocation16 + $0x178] sm:$0xff]  ;;  %v2286_v49 = vld [vmem:[#allocation16 + $0x140] sm:$0xff] }
 0x7b5   :  { %4447 = vmatprep.subr.bf16.mxu0 %v4446_v62  ;;  %4479 = vmatprep.subr.bf16.mxu1 %v4478_v7  ;;  %v6269_v62 = vpack.c.bf16 %v2260_v53, %v2256_v63  ;;  %v2263_v7 = vld [vmem:[#allocation16 + $0x88] sm:$0xff]  ;;  %v6311_v37 = vpack.c.bf16 %v2293_v21, %v2289_v32  ;;  %v2290_v63 = vld [vmem:[#allocation16 + $0x160] sm:$0xff]  ;;  %v2288_v53 = vld [vmem:[#allocation16 + $0x150] sm:$0xff] }
 0x7b6   :  { %v6274_v29 = vpack.c.bf16 %v2267_v22, %v2263_v7  ;;  %v6314_v7 = vpack.c.bf16 %v2290_v63, %v2286_v49  ;;  %v2292_v22 = vld [vmem:[#allocation16 + $0x170] sm:$0xff] }
 0x7b8   :  { %4449 = vmatpush1.bf16.msra.mxu0 %v4448_v42  ;;  %4481 = vmatpush1.bf16.msra.mxu1 %v4480_v47  ;;  %v6276_v42 = vpack.c.bf16 %v2269_v34, %v2265_v25  ;;  %v6278_v47 = vpack.c.bf16 %v2266_v38, %v2262_v35  ;;  %v2295_v25 = vld [vmem:[#allocation16 + $0x188] sm:$0xff]  ;;  %v6318_v35 = vpack.c.bf16 %v2292_v22, %v2288_v53 }
 0x7b9   :  { %4451 = vmatprep.subr.bf16.mxu0 %v4450_v58  ;;  %4483 = vmatprep.subr.bf16.mxu1 %v4482_v61  ;;  %v6281_v58 = vpack.c.bf16 %v2268_v54, %v2264_v50  ;;  %v2271_v61 = vld [vmem:[#allocation16 + $0xc8] sm:$0xff]  ;;  %v2297_v50 = vld [vmem:[#allocation16 + $0x198] sm:$0xff] }
 0x7ba   :  { %v6286_v8 = vpack.c.bf16 %v2275_v2, %v2271_v61  ;;  %v2299_v34 = vld [vmem:[#allocation16 + $0x1a8] sm:$0xff]  ;;  %v2301_v54 = vld [vmem:[#allocation16 + $0x1b8] sm:$0xff]  ;;  %v2294_v61 = vld [vmem:[#allocation16 + $0x180] sm:$0xff] }
 0x7bb   :  { %v6320_v38 = vpack.c.bf16 %v2299_v34, %v2295_v25  ;;  %v6322_v2 = vpack.c.bf16 %v2301_v54, %v2297_v50 }
 0x7bc   :  { %4453 = vmatpush1.bf16.msra.mxu0 %v4452_v24  ;;  %4485 = vmatpush1.bf16.msra.mxu1 %v4484_v28  ;;  %v6288_v24 = vpack.c.bf16 %v2277_v11, %v2273_v5  ;;  %v6290_v28 = vpack.c.bf16 %v2274_v19, %v2270_v15  ;;  %v2298_v5 = vld [vmem:[#allocation16 + $0x1a0] sm:$0xff]  ;;  %v2296_v11 = vld [vmem:[#allocation16 + $0x190] sm:$0xff] }
 0x7bd   :  { %4455 = vmatprep.subr.bf16.mxu0 %v4454_v39  ;;  %4487 = vmatprep.subr.bf16.mxu1 %v4486_v43  ;;  %v2276_v39 = vld [vmem:[#allocation16 + $0xf0] sm:$0xff]  ;;  %v6325_v19 = vpack.c.bf16 %v2298_v5, %v2294_v61 }
 0x7be   :  { %v6293_v43 = vpack.c.bf16 %v2276_v39, %v2272_v33  ;;  %v2300_v15 = vld [vmem:[#allocation16 + $0x1b0] sm:$0xff]  ;;  %v2303_v39 = vld [vmem:[#allocation16 + $0x1c8] sm:$0xff] }
 0x7bf   :  { %v6329_v33 = vpack.c.bf16 %v2300_v15, %v2296_v11 }
 0x7c0   :  { %4457 = vmatpush1.bf16.msra.mxu0 %v4456_v60  ;;  %4489 = vmatpush1.bf16.msra.mxu1 %v4488_v1  ;;  %v6298_v60 = vpack.c.bf16 %v2283_v52, %v2279_v46  ;;  %v2285_v1 = vld [vmem:[#allocation16 + $0x138] sm:$0xff]  ;;  %v2307_v46 = vld [vmem:[#allocation16 + $0x1e8] sm:$0xff] }
 0x7c1   :  { %v2305_v52 = vld [vmem:[#allocation16 + $0x1d8] sm:$0xff] }
 0x7c3   :  { %2053 = vmatmul.mubr.f32.vlgmr.msra.gmra.mrb[16].mxu0 %v5942_v27  ;;  %2166 = vmatmul.mubr.f32.vlgmr.msra.gmra.mrb[16].mxu1 %v5942_v27  ;;  %v2247_v27 = vld [vmem:[#allocation16 + $0x8] sm:$0xff] }
 0x7c4   :  { %2058 = vmatprep.mubr.f32.mxu0 %v5598_v0  ;;  %2171 = vmatprep.mubr.f32.mxu1 %v5598_v0 }
 0x7c7   :  { %2059 = vmatmul.mubr.f32.gmra.mrb[18].mxu0 %v5988_v45  ;;  %2172 = vmatmul.mubr.f32.gmra.mrb[18].mxu1 %v5988_v45  ;;  %v2251_v45 = vld [vmem:[#allocation16 + $0x28] sm:$0xff] }
 0x7c8   :  { %2064 = vmatprep.mubr.f32.mxu0 %v5598_v0  ;;  %2177 = vmatprep.mubr.f32.mxu1 %v5598_v0 }
 0x7cb   :  { %2065 = vmatmul.mubr.f32.gmra.mrb[20].mxu0 %v6034_v57  ;;  %2178 = vmatmul.mubr.f32.gmra.mrb[20].mxu1 %v6034_v57  ;;  %v2249_v57 = vld [vmem:[#allocation16 + $0x18] sm:$0xff] }
 0x7cc   :  { %2070 = vmatprep.mubr.f32.mxu0 %v5598_v0  ;;  %2183 = vmatprep.mubr.f32.mxu1 %v5598_v0 }
 0x7cf   :  { %2071 = vmatmul.mubr.f32.gmra.mrb[22].mxu0 %v6080_v23  ;;  %2184 = vmatmul.mubr.f32.gmra.mrb[22].mxu1 %v6080_v23  ;;  %v6250_v23 = vpack.c.bf16 %v2251_v45, %v2247_v27  ;;  %v2278_v27 = vld [vmem:[#allocation16 + $0x100] sm:$0xff] }
 0x7d0   :  { %2076 = vmatprep.mubr.f32.mxu0 %v5598_v0  ;;  %2189 = vmatprep.mubr.f32.mxu1 %v5598_v0  ;;  %v2282_v45 = vld [vmem:[#allocation16 + $0x120] sm:$0xff] }
 0x7d1   :  { %4491 = vmatprep.subr.bf16.mxu0 %v6250_v23 }
 0x7d3   :  { %2077 = vmatmul.mubr.f32.gmra.mrb[24].mxu0 %v6126_v51  ;;  %2190 = vmatmul.mubr.f32.gmra.mrb[24].mxu1 %v6126_v51  ;;  %v2253_v51 = vld [vmem:[#allocation16 + $0x38] sm:$0xff] }
 0x7d4   :  { %2082 = vmatprep.mubr.f32.mxu0 %v5598_v0  ;;  %2195 = vmatprep.mubr.f32.mxu1 %v5598_v0  ;;  %v6252_v26 = vpack.c.bf16 %v2253_v51, %v2249_v57  ;;  %v6300_v57 = vpack.c.bf16 %v2285_v1, %v2281_v56  ;;  %v6302_v51 = vpack.c.bf16 %v2282_v45, %v2278_v27  ;;  %v2309_v1 = vld [vmem:[#allocation16 + $0x1f8] sm:$0xff]  ;;  %v2302_v27 = vld [vmem:[#allocation16 + $0x1c0] sm:$0xff] }
 0x7d5   :  { %v6334_v56 = vpack.c.bf16 %v2307_v46, %v2303_v39  ;;  %v2306_v45 = vld [vmem:[#allocation16 + $0x1e0] sm:$0xff] }
 0x7d6   :  { %4523 = vmatprep.subr.bf16.mxu1 %v6252_v26 }
 0x7d7   :  { %2083 = vmatmul.mubr.f32.gmra.mrb[26].mxu0 %v6172_v3  ;;  %2196 = vmatmul.mubr.f32.gmra.mrb[26].mxu1 %v6172_v3  ;;  %v2250_v3 = vld [vmem:[#allocation16 + $0x20] sm:$0xff] }
 0x7d8   :  { %2088 = vmatprep.mubr.f32.mxu0 %v5598_v0  ;;  %2201 = vmatprep.mubr.f32.mxu1 %v5598_v0  ;;  %v6254_v18 = vpack.c.bf16 %v2250_v3, %v2246_v6  ;;  %v2280_v6 = vld [vmem:[#allocation16 + $0x110] sm:$0xff] }
 0x7d9   :  { %v2284_v3 = vld [vmem:[#allocation16 + $0x130] sm:$0xff] }
 0x7da   :  { %4493 = vmatpush1.bf16.msra.mxu0 %v6254_v18 }
 0x7db   :  { %2089 = vmatmul.mubr.f32.gmra.mrb[28].mxu0 %v6216_v31  ;;  %2202 = vmatmul.mubr.f32.gmra.mrb[28].mxu1 %v6216_v31  ;;  %v6257_v31 = vpack.c.bf16 %v2252_v30, %v2248_v48  ;;  %v2287_v48 = vld [vmem:[#allocation16 + $0x148] sm:$0xff]  ;;  %v6305_v30 = vpack.c.bf16 %v2284_v3, %v2280_v6  ;;  %v6336_v6 = vpack.c.bf16 %v2309_v1, %v2305_v52 }
 0x7dc   :  { %2094 = vmatprep.mubr.f32.mxu0 %v5598_v0  ;;  %2207 = vmatprep.mubr.f32.mxu1 %v5598_v0  ;;  %v6309_v12 = vpack.c.bf16 %v2291_v17, %v2287_v48  ;;  %v6338_v3 = vpack.c.bf16 %v2306_v45, %v2302_v27  ;;  %v2304_v48 = vld [vmem:[#allocation16 + $0x1d0] sm:$0xff] }
 0x7dd   :  { %4525 = vmatpush1.bf16.msra.mxu1 %v6257_v31  ;;  %4495 = vmatprep.subr.bf16.mxu0 %v6262_v41  ;;  %v2308_v17 = vld [vmem:[#allocation16 + $0x1f0] sm:$0xff] }
 0x7de   :  { %4527 = vmatprep.subr.bf16.mxu1 %v6264_v59  ;;  %4497 = vmatpush1.bf16.msra.mxu0 %v6266_v55  ;;  %v6341_v32 = vpack.c.bf16 %v2308_v17, %v2304_v48 }
 0x7df   :  { %4499 = vmatprep.subr.bf16.mxu0 %v6274_v29 }
 0x7e1   :  { %4529 = vmatpush1.bf16.msra.mxu1 %v6269_v62 }
 0x7e2   :  { %4531 = vmatprep.subr.bf16.mxu1 %v6276_v42  ;;  %4501 = vmatpush1.bf16.msra.mxu0 %v6278_v47 }
 0x7e3   :  { %4503 = vmatprep.subr.bf16.mxu0 %v6286_v8 }
 0x7e5   :  { %4533 = vmatpush1.bf16.msra.mxu1 %v6281_v58 }
 0x7e6   :  { %4535 = vmatprep.subr.bf16.mxu1 %v6288_v24  ;;  %4505 = vmatpush1.bf16.msra.mxu0 %v6290_v28 }
 0x7e7   :  { %4507 = vmatprep.subr.bf16.mxu0 %v6298_v60 }
 0x7e9   :  { %4537 = vmatpush1.bf16.msra.mxu1 %v6293_v43 }
 0x7ea   :  { %4539 = vmatprep.subr.bf16.mxu1 %v6300_v57  ;;  %4509 = vmatpush1.bf16.msra.mxu0 %v6302_v51 }
 0x7eb   :  { %4511 = vmatprep.subr.bf16.mxu0 %v6309_v12 }
 0x7ed   :  { %4541 = vmatpush1.bf16.msra.mxu1 %v6305_v30 }
 0x7ee   :  { %4543 = vmatprep.subr.bf16.mxu1 %v6311_v37  ;;  %4513 = vmatpush1.bf16.msra.mxu0 %v6314_v7 }
 0x7ef   :  { %4515 = vmatprep.subr.bf16.mxu0 %v6320_v38 }
 0x7f1   :  { %4545 = vmatpush1.bf16.msra.mxu1 %v6318_v35 }
 0x7f2   :  { %4547 = vmatprep.subr.bf16.mxu1 %v6322_v2  ;;  %4517 = vmatpush1.bf16.msra.mxu0 %v6325_v19 }
 0x7f3   :  { %4519 = vmatprep.subr.bf16.mxu0 %v6334_v56 }
 0x7f5   :  { %4549 = vmatpush1.bf16.msra.mxu1 %v6329_v33 }
 0x7f6   :  { %4551 = vmatprep.subr.bf16.mxu1 %v6336_v6  ;;  %4521 = vmatpush1.bf16.msra.mxu0 %v6338_v3 }
 0x7f7   :  { %4555 = vmatprep.subr.bf16.mxu0 %v6250_v23 }
 0x7f9   :  { %4553 = vmatpush1.bf16.msra.mxu1 %v6341_v32 }
 0x7fa   :  { %4587 = vmatprep.subr.bf16.mxu1 %v6252_v26 }
 0x876   :  { %v1790_v21 = vpop.f32.mrb[14].mxu0  ;;  %v1861_v49 = vpop.f32.mrb[14].mxu1 }
 0x877   :  { %v5040_v63 = vadd.f32 %v1790_v21, %v5919_v14  ;;  %v1792_v53 = vpop.f32.mrb[15].mxu0  ;;  %v1863_v22 = vpop.f32.mrb[15].mxu1  ;;  %v5056_v54 = vadd.f32 %v1861_v49, %v5930_v36 }
 0x878   :  { %v5041_v25 = vadd.f32 %v1792_v53, %v5923_v16  ;;  %v5057_v61 = vadd.f32 %v1863_v22, %v5936_v44 }
 0x879   :  { %v3826_v34 = vmul.f32 -1.442695, %v5040_v63  ;;  %v3828_v5 = vmul.f32 -1.442695, %v5056_v54 }
 0x87a   :  { %v3827_v50 = vmul.f32 -1.442695, %v5041_v25 }
 0x87b   :  { %5280 = vpow2.f32 %v3826_v34 }
 0x87c   :  { %5282 = vpow2.f32 %v3827_v50 }
 0x87d   :  { %5284 = vtanh.f32 %v5057_v61 }
 0x87e   :  { %5286 = vpow2.f32 %v3828_v5 }
 0x885   :  { %v5281_v11 = vpop.eup %5280 }
 0x886   :  { %v1875_v15 = vadd.f32 1.0, %v5281_v11  ;;  %v5283_v39 = vpop.eup %5282 }
 0x887   :  { %v1876_v14 = vadd.f32 1.0, %v5283_v39  ;;  %v5285_v46 = vpop.eup %5284 }
 0x888   :  { %5288 = vrcp.f32 %v1875_v15  ;;  %v5287_v52 = vpop.eup %5286 }
 0x889   :  { %5290 = vrcp.f32 %v1876_v14  ;;  %v1877_v45 = vadd.f32 1.0, %v5287_v52 }
 0x88b   :  { %5292 = vrcp.f32 %v1877_v45 }
 0x892   :  { %v5289_v16 = vpop.eup %5288 }
 0x893   :  { %v1886_v1 = vmul.f32 %v5289_v16, %v5285_v46  ;;  %v5291_v27 = vpop.eup %5290 }
 0x894   :  { %v1885_v48 = vmul.f32 %v5291_v27, %v6213_v4  ;;  %v1966_v4 = vld [vmem:[%s6694_s6] sm:$0xf] }
 0x895   :  { %v5293_v44 = vpop.eup %5292  ;;  %v6396_v49 = vrot.slane %v1966_v4, %v143_v10  ;;  %v6400_v63 = vrot.slane %v1966_v4, %v147_v13  ;;  %v6406_v11 = vrot.slane %v1966_v4, %v151_v20  ;;  %v6410_v10 = vrot.slane %v1966_v4, %v155_v40 }
 0x896   :  { %v1887_v36 = vadd.f32 %v1886_v1, %v1885_v48 }
 0x898   :  { %5294 = vtanh.f32 %v1887_v36 }
 0x8a2   :  { %v5295_v17 = vpop.eup %5294 }
 0x8a3   :  { %v1889_v21 = vmul.f32 %v5295_v17, %v5293_v44 }
 0x8a5   :  { %2095 = vmatmul.mubr.f32.gmra.mrb[30].mxu0 %v1889_v21  ;;  %2208 = vmatmul.mubr.f32.gmra.mrb[30].mxu1 %v1889_v21 }
 0x8a6   :  { %2380 = vmatprep.mubr.f32.mxu0 %v5598_v0  ;;  %2451 = vmatprep.mubr.f32.mxu1 %v5598_v0 }
 0x8a9   :  { %2381 = vmatmul.mubr.f32.vlgmr.msra.gmra.mrb[16].mxu0 %v5598_v0  ;;  %2452 = vmatmul.mubr.f32.vlgmr.msra.gmra.mrb[16].mxu1 %v5598_v0 }
 0x8aa   :  { %4557 = vmatpush1.bf16.msra.mxu0 %v6254_v18  ;;  %4589 = vmatpush1.bf16.msra.mxu1 %v6257_v31 }
 0x8ab   :  { %4559 = vmatprep.subr.bf16.mxu0 %v6262_v41  ;;  %4591 = vmatprep.subr.bf16.mxu1 %v6264_v59 }
 0x8ac   :  { %2550 = vmatprep.mubr.f32.mxu0 %v5598_v0  ;;  %2621 = vmatprep.mubr.f32.mxu1 %v5598_v0 }
 0x8ae   :  { %4561 = vmatpush1.bf16.msra.mxu0 %v6266_v55  ;;  %4593 = vmatpush1.bf16.msra.mxu1 %v6269_v62 }
 0x8af   :  { %4563 = vmatprep.subr.bf16.mxu0 %v6274_v29  ;;  %4595 = vmatprep.subr.bf16.mxu1 %v6276_v42 }
 0x8b2   :  { %4565 = vmatpush1.bf16.msra.mxu0 %v6278_v47  ;;  %4597 = vmatpush1.bf16.msra.mxu1 %v6281_v58 }
 0x8b3   :  { %4567 = vmatprep.subr.bf16.mxu0 %v6286_v8  ;;  %4599 = vmatprep.subr.bf16.mxu1 %v6288_v24 }
 0x8b6   :  { %4569 = vmatpush1.bf16.msra.mxu0 %v6290_v28  ;;  %4601 = vmatpush1.bf16.msra.mxu1 %v6293_v43 }
 0x8b7   :  { %4571 = vmatprep.subr.bf16.mxu0 %v6298_v60  ;;  %4603 = vmatprep.subr.bf16.mxu1 %v6300_v57 }
 0x8ba   :  { %4573 = vmatpush1.bf16.msra.mxu0 %v6302_v51  ;;  %4605 = vmatpush1.bf16.msra.mxu1 %v6305_v30 }
 0x8bb   :  { %4575 = vmatprep.subr.bf16.mxu0 %v6309_v12  ;;  %4607 = vmatprep.subr.bf16.mxu1 %v6311_v37 }
 0x8be   :  { %4577 = vmatpush1.bf16.msra.mxu0 %v6314_v7  ;;  %4609 = vmatpush1.bf16.msra.mxu1 %v6318_v35 }
 0x8bf   :  { %4579 = vmatprep.subr.bf16.mxu0 %v6320_v38  ;;  %4611 = vmatprep.subr.bf16.mxu1 %v6322_v2 }
 0x8c2   :  { %4581 = vmatpush1.bf16.msra.mxu0 %v6325_v19  ;;  %4613 = vmatpush1.bf16.msra.mxu1 %v6329_v33 }
 0x8c3   :  { %4583 = vmatprep.subr.bf16.mxu0 %v6334_v56  ;;  %4615 = vmatprep.subr.bf16.mxu1 %v6336_v6 }
 0x8c6   :  { %4585 = vmatpush1.bf16.msra.mxu0 %v6338_v3  ;;  %4617 = vmatpush1.bf16.msra.mxu1 %v6341_v32 }
 0x8c7   :  { %4619 = vmatprep.subr.bf16.mxu0 %v6250_v23  ;;  %4651 = vmatprep.subr.bf16.mxu1 %v6252_v26 }
 0x97c   :  { %v2382_v53 = vpop.f32.mrb[16].mxu0  ;;  %v2453_v22 = vpop.f32.mrb[16].mxu1 }
 0x97d   :  { %v5058_v25 = vadd.f32 %v2382_v53, %v6396_v49  ;;  %v2384_v34 = vpop.f32.mrb[17].mxu0  ;;  %v2455_v50 = vpop.f32.mrb[17].mxu1  ;;  %v5074_v13 = vadd.f32 %v2453_v22, %v6406_v11 }
 0x97e   :  { %v5059_v54 = vadd.f32 %v2384_v34, %v6400_v63  ;;  %v5075_v15 = vadd.f32 %v2455_v50, %v6410_v10 }
 0x97f   :  { %v3829_v61 = vmul.f32 -1.442695, %v5058_v25  ;;  %v3831_v39 = vmul.f32 -1.442695, %v5074_v13 }
 0x980   :  { %v3830_v5 = vmul.f32 -1.442695, %v5059_v54 }
 0x981   :  { %5296 = vpow2.f32 %v3829_v61 }
 0x982   :  { %5298 = vpow2.f32 %v3830_v5 }
 0x983   :  { %5300 = vtanh.f32 %v5075_v15 }
 0x984   :  { %5302 = vpow2.f32 %v3831_v39 }
 0x98b   :  { %v5297_v14 = vpop.eup %5296 }
 0x98c   :  { %v2467_v46 = vadd.f32 1.0, %v5297_v14  ;;  %v5299_v52 = vpop.eup %5298 }
 0x98d   :  { %v2468_v16 = vadd.f32 1.0, %v5299_v52  ;;  %v5301_v20 = vpop.eup %5300 }
 0x98e   :  { %5304 = vrcp.f32 %v2467_v46  ;;  %v5303_v1 = vpop.eup %5302 }
 0x98f   :  { %5306 = vrcp.f32 %v2468_v16  ;;  %v2469_v40 = vadd.f32 1.0, %v5303_v1 }
 0x991   :  { %5308 = vrcp.f32 %v2469_v40 }
 0x998   :  { %v5305_v27 = vpop.eup %5304 }
 0x999   :  { %v2478_v45 = vmul.f32 %v5305_v27, %v5301_v20  ;;  %v5307_v9 = vpop.eup %5306 }
 0x99a   :  { %v2477_v48 = vmul.f32 0.0, %v5307_v9 }
 0x99b   :  { %v5309_v44 = vpop.eup %5308 }
 0x99c   :  { %v6414_v36 = vadd.f32 %v2478_v45, %v2477_v48 }
 0x99e   :  { %5310 = vtanh.f32 %v6414_v36 }
 0x9a8   :  { %v5311_v17 = vpop.eup %5310 }
 0x9a9   :  { %v2481_v21 = vmul.f32 %v5311_v17, %v5309_v44 }
 0x9ab   :  { %2551 = vmatmul.mubr.f32.vlgmr.msra.gmra.mrb[18].mxu0 %v2481_v21  ;;  %2622 = vmatmul.mubr.f32.vlgmr.msra.gmra.mrb[18].mxu1 %v2481_v21 }
 0x9ac   :  { %4621 = vmatpush1.bf16.msra.mxu0 %v6254_v18  ;;  %4653 = vmatpush1.bf16.msra.mxu1 %v6257_v31 }
 0x9ad   :  { %4623 = vmatprep.subr.bf16.mxu0 %v6262_v41  ;;  %4655 = vmatprep.subr.bf16.mxu1 %v6264_v59 }
 0x9ae   :  { %2720 = vmatprep.mubr.f32.mxu0 %v5598_v0  ;;  %2791 = vmatprep.mubr.f32.mxu1 %v5598_v0 }
 0x9b0   :  { %4625 = vmatpush1.bf16.msra.mxu0 %v6266_v55  ;;  %4657 = vmatpush1.bf16.msra.mxu1 %v6269_v62 }
 0x9b1   :  { %4627 = vmatprep.subr.bf16.mxu0 %v6274_v29  ;;  %4659 = vmatprep.subr.bf16.mxu1 %v6276_v42 }
 0x9b4   :  { %4629 = vmatpush1.bf16.msra.mxu0 %v6278_v47  ;;  %4661 = vmatpush1.bf16.msra.mxu1 %v6281_v58 }
 0x9b5   :  { %4631 = vmatprep.subr.bf16.mxu0 %v6286_v8  ;;  %4663 = vmatprep.subr.bf16.mxu1 %v6288_v24 }
 0x9b8   :  { %4633 = vmatpush1.bf16.msra.mxu0 %v6290_v28  ;;  %4665 = vmatpush1.bf16.msra.mxu1 %v6293_v43 }
 0x9b9   :  { %4635 = vmatprep.subr.bf16.mxu0 %v6298_v60  ;;  %4667 = vmatprep.subr.bf16.mxu1 %v6300_v57 }
 0x9bc   :  { %4637 = vmatpush1.bf16.msra.mxu0 %v6302_v51  ;;  %4669 = vmatpush1.bf16.msra.mxu1 %v6305_v30 }
 0x9bd   :  { %4639 = vmatprep.subr.bf16.mxu0 %v6309_v12  ;;  %4671 = vmatprep.subr.bf16.mxu1 %v6311_v37 }
 0x9c0   :  { %4641 = vmatpush1.bf16.msra.mxu0 %v6314_v7  ;;  %4673 = vmatpush1.bf16.msra.mxu1 %v6318_v35 }
 0x9c1   :  { %4643 = vmatprep.subr.bf16.mxu0 %v6320_v38  ;;  %4675 = vmatprep.subr.bf16.mxu1 %v6322_v2 }
 0x9c4   :  { %4645 = vmatpush1.bf16.msra.mxu0 %v6325_v19  ;;  %4677 = vmatpush1.bf16.msra.mxu1 %v6329_v33 }
 0x9c5   :  { %4647 = vmatprep.subr.bf16.mxu0 %v6334_v56  ;;  %4679 = vmatprep.subr.bf16.mxu1 %v6336_v6 }
 0x9c8   :  { %4649 = vmatpush1.bf16.msra.mxu0 %v6338_v3  ;;  %4681 = vmatpush1.bf16.msra.mxu1 %v6341_v32 }
 0x9c9   :  { %4683 = vmatprep.subr.bf16.mxu0 %v6250_v23  ;;  %4715 = vmatprep.subr.bf16.mxu1 %v6252_v26 }
 0xa7e   :  { %v2552_v4 = vpop.f32.mrb[18].mxu0  ;;  %v2623_v53 = vpop.f32.mrb[18].mxu1 }
 0xa7f   :  { %v5060_v22 = vadd.f32 %v2552_v4, %v6396_v49  ;;  %v2554_v25 = vpop.f32.mrb[19].mxu0  ;;  %v2625_v34 = vpop.f32.mrb[19].mxu1  ;;  %v5076_v5 = vadd.f32 %v2623_v53, %v6406_v11 }
 0xa80   :  { %v5061_v50 = vadd.f32 %v2554_v25, %v6400_v63  ;;  %v5077_v13 = vadd.f32 %v2625_v34, %v6410_v10 }
 0xa81   :  { %v3832_v54 = vmul.f32 -1.442695, %v5060_v22  ;;  %v3834_v15 = vmul.f32 -1.442695, %v5076_v5 }
 0xa82   :  { %v3833_v61 = vmul.f32 -1.442695, %v5061_v50 }
 0xa83   :  { %5312 = vpow2.f32 %v3832_v54 }
 0xa84   :  { %5314 = vpow2.f32 %v3833_v61 }
 0xa85   :  { %5316 = vtanh.f32 %v5077_v13 }
 0xa86   :  { %5318 = vpow2.f32 %v3834_v15 }
 0xa8d   :  { %v5313_v39 = vpop.eup %5312 }
 0xa8e   :  { %v2637_v14 = vadd.f32 1.0, %v5313_v39  ;;  %v5315_v46 = vpop.eup %5314 }
 0xa8f   :  { %v2638_v52 = vadd.f32 1.0, %v5315_v46  ;;  %v5317_v16 = vpop.eup %5316 }
 0xa90   :  { %5320 = vrcp.f32 %v2637_v14  ;;  %v5319_v20 = vpop.eup %5318 }
 0xa91   :  { %5322 = vrcp.f32 %v2638_v52  ;;  %v2639_v9 = vadd.f32 1.0, %v5319_v20 }
 0xa93   :  { %5324 = vrcp.f32 %v2639_v9 }
 0xa9a   :  { %v5321_v1 = vpop.eup %5320 }
 0xa9b   :  { %v2648_v27 = vmul.f32 %v5321_v1, %v5317_v16  ;;  %v5323_v45 = vpop.eup %5322 }
 0xa9c   :  { %v2647_v40 = vmul.f32 %v5323_v45, %v6414_v36 }
 0xa9d   :  { %v5325_v44 = vpop.eup %5324 }
 0xa9e   :  { %v6456_v48 = vadd.f32 %v2648_v27, %v2647_v40 }
 0xaa0   :  { %5326 = vtanh.f32 %v6456_v48 }
 0xaaa   :  { %v5327_v17 = vpop.eup %5326 }
 0xaab   :  { %v2651_v21 = vmul.f32 %v5327_v17, %v5325_v44 }
 0xaad   :  { %2721 = vmatmul.mubr.f32.vlgmr.msra.gmra.mrb[20].mxu0 %v2651_v21  ;;  %2792 = vmatmul.mubr.f32.vlgmr.msra.gmra.mrb[20].mxu1 %v2651_v21 }
 0xaae   :  { %4685 = vmatpush1.bf16.msra.mxu0 %v6254_v18  ;;  %4717 = vmatpush1.bf16.msra.mxu1 %v6257_v31 }
 0xaaf   :  { %4687 = vmatprep.subr.bf16.mxu0 %v6262_v41  ;;  %4719 = vmatprep.subr.bf16.mxu1 %v6264_v59 }
 0xab0   :  { %2890 = vmatprep.mubr.f32.mxu0 %v5598_v0  ;;  %2961 = vmatprep.mubr.f32.mxu1 %v5598_v0 }
 0xab2   :  { %4689 = vmatpush1.bf16.msra.mxu0 %v6266_v55  ;;  %4721 = vmatpush1.bf16.msra.mxu1 %v6269_v62 }
 0xab3   :  { %4691 = vmatprep.subr.bf16.mxu0 %v6274_v29  ;;  %4723 = vmatprep.subr.bf16.mxu1 %v6276_v42 }
 0xab6   :  { %4693 = vmatpush1.bf16.msra.mxu0 %v6278_v47  ;;  %4725 = vmatpush1.bf16.msra.mxu1 %v6281_v58 }
 0xab7   :  { %4695 = vmatprep.subr.bf16.mxu0 %v6286_v8  ;;  %4727 = vmatprep.subr.bf16.mxu1 %v6288_v24 }
 0xaba   :  { %4697 = vmatpush1.bf16.msra.mxu0 %v6290_v28  ;;  %4729 = vmatpush1.bf16.msra.mxu1 %v6293_v43 }
 0xabb   :  { %4699 = vmatprep.subr.bf16.mxu0 %v6298_v60  ;;  %4731 = vmatprep.subr.bf16.mxu1 %v6300_v57 }
 0xabe   :  { %4701 = vmatpush1.bf16.msra.mxu0 %v6302_v51  ;;  %4733 = vmatpush1.bf16.msra.mxu1 %v6305_v30 }
 0xabf   :  { %4703 = vmatprep.subr.bf16.mxu0 %v6309_v12  ;;  %4735 = vmatprep.subr.bf16.mxu1 %v6311_v37 }
 0xac2   :  { %4705 = vmatpush1.bf16.msra.mxu0 %v6314_v7  ;;  %4737 = vmatpush1.bf16.msra.mxu1 %v6318_v35 }
 0xac3   :  { %4707 = vmatprep.subr.bf16.mxu0 %v6320_v38  ;;  %4739 = vmatprep.subr.bf16.mxu1 %v6322_v2 }
 0xac6   :  { %4709 = vmatpush1.bf16.msra.mxu0 %v6325_v19  ;;  %4741 = vmatpush1.bf16.msra.mxu1 %v6329_v33 }
 0xac7   :  { %4711 = vmatprep.subr.bf16.mxu0 %v6334_v56  ;;  %4743 = vmatprep.subr.bf16.mxu1 %v6336_v6 }
 0xaca   :  { %4713 = vmatpush1.bf16.msra.mxu0 %v6338_v3  ;;  %4745 = vmatpush1.bf16.msra.mxu1 %v6341_v32 }
 0xacb   :  { %4747 = vmatprep.subr.bf16.mxu0 %v6250_v23  ;;  %4779 = vmatprep.subr.bf16.mxu1 %v6252_v26 }
 0xb80   :  { %v2722_v36 = vpop.f32.mrb[20].mxu0  ;;  %v2793_v4 = vpop.f32.mrb[20].mxu1 }
 0xb81   :  { %v5062_v53 = vadd.f32 %v2722_v36, %v6396_v49  ;;  %v2724_v22 = vpop.f32.mrb[21].mxu0  ;;  %v2795_v25 = vpop.f32.mrb[21].mxu1  ;;  %v5078_v61 = vadd.f32 %v2793_v4, %v6406_v11 }
 0xb82   :  { %v5063_v34 = vadd.f32 %v2724_v22, %v6400_v63  ;;  %v5079_v5 = vadd.f32 %v2795_v25, %v6410_v10 }
 0xb83   :  { %v3835_v50 = vmul.f32 -1.442695, %v5062_v53  ;;  %v3837_v13 = vmul.f32 -1.442695, %v5078_v61 }
 0xb84   :  { %v3836_v54 = vmul.f32 -1.442695, %v5063_v34 }
 0xb85   :  { %5328 = vpow2.f32 %v3835_v50 }
 0xb86   :  { %5330 = vpow2.f32 %v3836_v54 }
 0xb87   :  { %5332 = vtanh.f32 %v5079_v5 }
 0xb88   :  { %5334 = vpow2.f32 %v3837_v13 }
 0xb8f   :  { %v5329_v15 = vpop.eup %5328 }
 0xb90   :  { %v2807_v39 = vadd.f32 1.0, %v5329_v15  ;;  %v5331_v14 = vpop.eup %5330 }
 0xb91   :  { %v2808_v46 = vadd.f32 1.0, %v5331_v14  ;;  %v5333_v52 = vpop.eup %5332 }
 0xb92   :  { %5336 = vrcp.f32 %v2807_v39  ;;  %v5335_v16 = vpop.eup %5334 }
 0xb93   :  { %5338 = vrcp.f32 %v2808_v46  ;;  %v2809_v45 = vadd.f32 1.0, %v5335_v16 }
 0xb95   :  { %5340 = vrcp.f32 %v2809_v45 }
 0xb9c   :  { %v5337_v20 = vpop.eup %5336 }
 0xb9d   :  { %v2818_v1 = vmul.f32 %v5337_v20, %v5333_v52  ;;  %v5339_v27 = vpop.eup %5338 }
 0xb9e   :  { %v2817_v9 = vmul.f32 %v5339_v27, %v6456_v48 }
 0xb9f   :  { %v5341_v44 = vpop.eup %5340 }
 0xba0   :  { %v6498_v40 = vadd.f32 %v2818_v1, %v2817_v9 }
 0xba2   :  { %5342 = vtanh.f32 %v6498_v40 }
 0xbac   :  { %v5343_v17 = vpop.eup %5342 }
 0xbad   :  { %v2821_v21 = vmul.f32 %v5343_v17, %v5341_v44 }
 0xbaf   :  { %2891 = vmatmul.mubr.f32.vlgmr.msra.gmra.mrb[22].mxu0 %v2821_v21  ;;  %2962 = vmatmul.mubr.f32.vlgmr.msra.gmra.mrb[22].mxu1 %v2821_v21 }
 0xbb0   :  { %4749 = vmatpush1.bf16.msra.mxu0 %v6254_v18  ;;  %4781 = vmatpush1.bf16.msra.mxu1 %v6257_v31 }
 0xbb1   :  { %4751 = vmatprep.subr.bf16.mxu0 %v6262_v41  ;;  %4783 = vmatprep.subr.bf16.mxu1 %v6264_v59 }
 0xbb2   :  { %3060 = vmatprep.mubr.f32.mxu0 %v5598_v0  ;;  %3131 = vmatprep.mubr.f32.mxu1 %v5598_v0 }
 0xbb4   :  { %4753 = vmatpush1.bf16.msra.mxu0 %v6266_v55  ;;  %4785 = vmatpush1.bf16.msra.mxu1 %v6269_v62 }
 0xbb5   :  { %4755 = vmatprep.subr.bf16.mxu0 %v6274_v29  ;;  %4787 = vmatprep.subr.bf16.mxu1 %v6276_v42 }
 0xbb8   :  { %4757 = vmatpush1.bf16.msra.mxu0 %v6278_v47  ;;  %4789 = vmatpush1.bf16.msra.mxu1 %v6281_v58 }
 0xbb9   :  { %4759 = vmatprep.subr.bf16.mxu0 %v6286_v8  ;;  %4791 = vmatprep.subr.bf16.mxu1 %v6288_v24 }
 0xbbc   :  { %4761 = vmatpush1.bf16.msra.mxu0 %v6290_v28  ;;  %4793 = vmatpush1.bf16.msra.mxu1 %v6293_v43 }
 0xbbd   :  { %4763 = vmatprep.subr.bf16.mxu0 %v6298_v60  ;;  %4795 = vmatprep.subr.bf16.mxu1 %v6300_v57 }
 0xbc0   :  { %4765 = vmatpush1.bf16.msra.mxu0 %v6302_v51  ;;  %4797 = vmatpush1.bf16.msra.mxu1 %v6305_v30 }
 0xbc1   :  { %4767 = vmatprep.subr.bf16.mxu0 %v6309_v12  ;;  %4799 = vmatprep.subr.bf16.mxu1 %v6311_v37 }
 0xbc4   :  { %4769 = vmatpush1.bf16.msra.mxu0 %v6314_v7  ;;  %4801 = vmatpush1.bf16.msra.mxu1 %v6318_v35 }
 0xbc5   :  { %4771 = vmatprep.subr.bf16.mxu0 %v6320_v38  ;;  %4803 = vmatprep.subr.bf16.mxu1 %v6322_v2 }
 0xbc8   :  { %4773 = vmatpush1.bf16.msra.mxu0 %v6325_v19  ;;  %4805 = vmatpush1.bf16.msra.mxu1 %v6329_v33 }
 0xbc9   :  { %4775 = vmatprep.subr.bf16.mxu0 %v6334_v56  ;;  %4807 = vmatprep.subr.bf16.mxu1 %v6336_v6 }
 0xbcc   :  { %4777 = vmatpush1.bf16.msra.mxu0 %v6338_v3  ;;  %4809 = vmatpush1.bf16.msra.mxu1 %v6341_v32 }
 0xbcd   :  { %4811 = vmatprep.subr.bf16.mxu0 %v6250_v23  ;;  %4843 = vmatprep.subr.bf16.mxu1 %v6252_v26 }
 0xc82   :  { %v2892_v48 = vpop.f32.mrb[22].mxu0  ;;  %v2963_v36 = vpop.f32.mrb[22].mxu1 }
 0xc83   :  { %v5064_v4 = vadd.f32 %v2892_v48, %v6396_v49  ;;  %v2894_v53 = vpop.f32.mrb[23].mxu0  ;;  %v2965_v22 = vpop.f32.mrb[23].mxu1  ;;  %v5080_v54 = vadd.f32 %v2963_v36, %v6406_v11 }
 0xc84   :  { %v5065_v25 = vadd.f32 %v2894_v53, %v6400_v63  ;;  %v5081_v61 = vadd.f32 %v2965_v22, %v6410_v10 }
 0xc85   :  { %v3838_v34 = vmul.f32 -1.442695, %v5064_v4  ;;  %v3840_v5 = vmul.f32 -1.442695, %v5080_v54 }
 0xc86   :  { %v3839_v50 = vmul.f32 -1.442695, %v5065_v25 }
 0xc87   :  { %5344 = vpow2.f32 %v3838_v34 }
 0xc88   :  { %5346 = vpow2.f32 %v3839_v50 }
 0xc89   :  { %5348 = vtanh.f32 %v5081_v61 }
 0xc8a   :  { %5350 = vpow2.f32 %v3840_v5 }
 0xc91   :  { %v5345_v13 = vpop.eup %5344 }
 0xc92   :  { %v2977_v15 = vadd.f32 1.0, %v5345_v13  ;;  %v5347_v39 = vpop.eup %5346 }
 0xc93   :  { %v2978_v14 = vadd.f32 1.0, %v5347_v39  ;;  %v5349_v46 = vpop.eup %5348 }
 0xc94   :  { %5352 = vrcp.f32 %v2977_v15  ;;  %v5351_v52 = vpop.eup %5350 }
 0xc95   :  { %5354 = vrcp.f32 %v2978_v14  ;;  %v2979_v27 = vadd.f32 1.0, %v5351_v52 }
 0xc97   :  { %5356 = vrcp.f32 %v2979_v27 }
 0xc9e   :  { %v5353_v16 = vpop.eup %5352 }
 0xc9f   :  { %v2988_v20 = vmul.f32 %v5353_v16, %v5349_v46  ;;  %v5355_v1 = vpop.eup %5354 }
 0xca0   :  { %v2987_v45 = vmul.f32 %v5355_v1, %v6498_v40 }
 0xca1   :  { %v5357_v44 = vpop.eup %5356 }
 0xca2   :  { %v6540_v9 = vadd.f32 %v2988_v20, %v2987_v45 }
 0xca4   :  { %5358 = vtanh.f32 %v6540_v9 }
 0xcae   :  { %v5359_v17 = vpop.eup %5358 }
 0xcaf   :  { %v2991_v21 = vmul.f32 %v5359_v17, %v5357_v44 }
 0xcb1   :  { %3061 = vmatmul.mubr.f32.vlgmr.msra.gmra.mrb[24].mxu0 %v2991_v21  ;;  %3132 = vmatmul.mubr.f32.vlgmr.msra.gmra.mrb[24].mxu1 %v2991_v21 }
 0xcb2   :  { %4813 = vmatpush1.bf16.msra.mxu0 %v6254_v18  ;;  %4845 = vmatpush1.bf16.msra.mxu1 %v6257_v31 }
 0xcb3   :  { %4815 = vmatprep.subr.bf16.mxu0 %v6262_v41  ;;  %4847 = vmatprep.subr.bf16.mxu1 %v6264_v59 }
 0xcb4   :  { %3230 = vmatprep.mubr.f32.mxu0 %v5598_v0  ;;  %3301 = vmatprep.mubr.f32.mxu1 %v5598_v0 }
 0xcb6   :  { %4817 = vmatpush1.bf16.msra.mxu0 %v6266_v55  ;;  %4849 = vmatpush1.bf16.msra.mxu1 %v6269_v62 }
 0xcb7   :  { %4819 = vmatprep.subr.bf16.mxu0 %v6274_v29  ;;  %4851 = vmatprep.subr.bf16.mxu1 %v6276_v42 }
 0xcba   :  { %4821 = vmatpush1.bf16.msra.mxu0 %v6278_v47  ;;  %4853 = vmatpush1.bf16.msra.mxu1 %v6281_v58 }
 0xcbb   :  { %4823 = vmatprep.subr.bf16.mxu0 %v6286_v8  ;;  %4855 = vmatprep.subr.bf16.mxu1 %v6288_v24 }
 0xcbe   :  { %4825 = vmatpush1.bf16.msra.mxu0 %v6290_v28  ;;  %4857 = vmatpush1.bf16.msra.mxu1 %v6293_v43 }
 0xcbf   :  { %4827 = vmatprep.subr.bf16.mxu0 %v6298_v60  ;;  %4859 = vmatprep.subr.bf16.mxu1 %v6300_v57 }
 0xcc2   :  { %4829 = vmatpush1.bf16.msra.mxu0 %v6302_v51  ;;  %4861 = vmatpush1.bf16.msra.mxu1 %v6305_v30 }
 0xcc3   :  { %4831 = vmatprep.subr.bf16.mxu0 %v6309_v12  ;;  %4863 = vmatprep.subr.bf16.mxu1 %v6311_v37 }
 0xcc6   :  { %4833 = vmatpush1.bf16.msra.mxu0 %v6314_v7  ;;  %4865 = vmatpush1.bf16.msra.mxu1 %v6318_v35 }
 0xcc7   :  { %4835 = vmatprep.subr.bf16.mxu0 %v6320_v38  ;;  %4867 = vmatprep.subr.bf16.mxu1 %v6322_v2 }
 0xcca   :  { %4837 = vmatpush1.bf16.msra.mxu0 %v6325_v19  ;;  %4869 = vmatpush1.bf16.msra.mxu1 %v6329_v33 }
 0xccb   :  { %4839 = vmatprep.subr.bf16.mxu0 %v6334_v56  ;;  %4871 = vmatprep.subr.bf16.mxu1 %v6336_v6 }
 0xcce   :  { %4841 = vmatpush1.bf16.msra.mxu0 %v6338_v3  ;;  %4873 = vmatpush1.bf16.msra.mxu1 %v6341_v32 }
 0xccf   :  { %4875 = vmatprep.subr.bf16.mxu0 %v6250_v23  ;;  %4907 = vmatprep.subr.bf16.mxu1 %v6252_v26 }
 0xd84   :  { %v3062_v40 = vpop.f32.mrb[24].mxu0  ;;  %v3133_v48 = vpop.f32.mrb[24].mxu1 }
 0xd85   :  { %v5066_v36 = vadd.f32 %v3062_v40, %v6396_v49  ;;  %v3064_v4 = vpop.f32.mrb[25].mxu0  ;;  %v3135_v53 = vpop.f32.mrb[25].mxu1  ;;  %v5082_v50 = vadd.f32 %v3133_v48, %v6406_v11 }
 0xd86   :  { %v5067_v22 = vadd.f32 %v3064_v4, %v6400_v63  ;;  %v5083_v54 = vadd.f32 %v3135_v53, %v6410_v10 }
 0xd87   :  { %v3841_v25 = vmul.f32 -1.442695, %v5066_v36  ;;  %v3843_v61 = vmul.f32 -1.442695, %v5082_v50 }
 0xd88   :  { %v3842_v34 = vmul.f32 -1.442695, %v5067_v22 }
 0xd89   :  { %5360 = vpow2.f32 %v3841_v25 }
 0xd8a   :  { %5362 = vpow2.f32 %v3842_v34 }
 0xd8b   :  { %5364 = vtanh.f32 %v5083_v54 }
 0xd8c   :  { %5366 = vpow2.f32 %v3843_v61 }
 0xd93   :  { %v5361_v5 = vpop.eup %5360 }
 0xd94   :  { %v3147_v13 = vadd.f32 1.0, %v5361_v5  ;;  %v5363_v15 = vpop.eup %5362 }
 0xd95   :  { %v3148_v39 = vadd.f32 1.0, %v5363_v15  ;;  %v5365_v14 = vpop.eup %5364 }
 0xd96   :  { %5368 = vrcp.f32 %v3147_v13  ;;  %v5367_v46 = vpop.eup %5366 }
 0xd97   :  { %5370 = vrcp.f32 %v3148_v39  ;;  %v3149_v1 = vadd.f32 1.0, %v5367_v46 }
 0xd99   :  { %5372 = vrcp.f32 %v3149_v1 }
 0xda0   :  { %v5369_v52 = vpop.eup %5368 }
 0xda1   :  { %v3158_v16 = vmul.f32 %v5369_v52, %v5365_v14  ;;  %v5371_v20 = vpop.eup %5370 }
 0xda2   :  { %v3157_v27 = vmul.f32 %v5371_v20, %v6540_v9 }
 0xda3   :  { %v5373_v44 = vpop.eup %5372 }
 0xda4   :  { %v6582_v45 = vadd.f32 %v3158_v16, %v3157_v27 }
 0xda6   :  { %5374 = vtanh.f32 %v6582_v45 }
 0xdb0   :  { %v5375_v17 = vpop.eup %5374 }
 0xdb1   :  { %v3161_v21 = vmul.f32 %v5375_v17, %v5373_v44  ;;  %v3680_v17 = vld [vmem:[#allocation17 + $0x18] sm:$0xff] }
 0xdb3   :  { %3231 = vmatmul.mubr.f32.vlgmr.msra.gmra.mrb[26].mxu0 %v3161_v21  ;;  %3302 = vmatmul.mubr.f32.vlgmr.msra.gmra.mrb[26].mxu1 %v3161_v21 }
 0xdb4   :  { %4877 = vmatpush1.bf16.msra.mxu0 %v6254_v18  ;;  %4909 = vmatpush1.bf16.msra.mxu1 %v6257_v31 }
 0xdb5   :  { %4879 = vmatprep.subr.bf16.mxu0 %v6262_v41  ;;  %4911 = vmatprep.subr.bf16.mxu1 %v6264_v59 }
 0xdb6   :  { %3400 = vmatprep.mubr.f32.mxu0 %v5598_v0  ;;  %3471 = vmatprep.mubr.f32.mxu1 %v5598_v0 }
 0xdb8   :  { %4881 = vmatpush1.bf16.msra.mxu0 %v6266_v55  ;;  %4913 = vmatpush1.bf16.msra.mxu1 %v6269_v62 }
 0xdb9   :  { %4883 = vmatprep.subr.bf16.mxu0 %v6274_v29  ;;  %4915 = vmatprep.subr.bf16.mxu1 %v6276_v42 }
 0xdbc   :  { %4885 = vmatpush1.bf16.msra.mxu0 %v6278_v47  ;;  %4917 = vmatpush1.bf16.msra.mxu1 %v6281_v58 }
 0xdbd   :  { %4887 = vmatprep.subr.bf16.mxu0 %v6286_v8  ;;  %4919 = vmatprep.subr.bf16.mxu1 %v6288_v24 }
 0xdc0   :  { %4889 = vmatpush1.bf16.msra.mxu0 %v6290_v28  ;;  %4921 = vmatpush1.bf16.msra.mxu1 %v6293_v43 }
 0xdc1   :  { %4891 = vmatprep.subr.bf16.mxu0 %v6298_v60  ;;  %4923 = vmatprep.subr.bf16.mxu1 %v6300_v57 }
 0xdc4   :  { %4893 = vmatpush1.bf16.msra.mxu0 %v6302_v51  ;;  %4925 = vmatpush1.bf16.msra.mxu1 %v6305_v30 }
 0xdc5   :  { %4895 = vmatprep.subr.bf16.mxu0 %v6309_v12  ;;  %4927 = vmatprep.subr.bf16.mxu1 %v6311_v37 }
 0xdc8   :  { %4897 = vmatpush1.bf16.msra.mxu0 %v6314_v7  ;;  %4929 = vmatpush1.bf16.msra.mxu1 %v6318_v35 }
 0xdc9   :  { %4899 = vmatprep.subr.bf16.mxu0 %v6320_v38  ;;  %4931 = vmatprep.subr.bf16.mxu1 %v6322_v2 }
 0xdcc   :  { %4901 = vmatpush1.bf16.msra.mxu0 %v6325_v19  ;;  %4933 = vmatpush1.bf16.msra.mxu1 %v6329_v33 }
 0xdcd   :  { %4903 = vmatprep.subr.bf16.mxu0 %v6334_v56  ;;  %4935 = vmatprep.subr.bf16.mxu1 %v6336_v6 }
 0xdd0   :  { %4905 = vmatpush1.bf16.msra.mxu0 %v6338_v3  ;;  %4937 = vmatpush1.bf16.msra.mxu1 %v6341_v32 }
 0xdd1   :  { %4939 = vmatprep.subr.bf16.mxu0 %v6250_v23  ;;  %4971 = vmatprep.subr.bf16.mxu1 %v6252_v26 }
 0xe86   :  { %v3232_v9 = vpop.f32.mrb[26].mxu0  ;;  %v3303_v40 = vpop.f32.mrb[26].mxu1 }
 0xe87   :  { %v5068_v48 = vadd.f32 %v3232_v9, %v6396_v49  ;;  %v3234_v36 = vpop.f32.mrb[27].mxu0  ;;  %v3305_v4 = vpop.f32.mrb[27].mxu1  ;;  %v5084_v34 = vadd.f32 %v3303_v40, %v6406_v11  ;;  %v3681_v9 = vld [vmem:[#allocation17 + $0x20] sm:$0xff]  ;;  %v3682_v40 = vld [vmem:[#allocation17 + $0x28] sm:$0xff] }
 0xe88   :  { %v5069_v53 = vadd.f32 %v3234_v36, %v6400_v63  ;;  %v5085_v50 = vadd.f32 %v3305_v4, %v6410_v10  ;;  %v3683_v36 = vld [vmem:[#allocation17 + $0x30] sm:$0xff]  ;;  %v3684_v4 = vld [vmem:[#allocation17 + $0x38] sm:$0xff] }
 0xe89   :  { %v3844_v22 = vmul.f32 -1.442695, %v5068_v48  ;;  %v3846_v54 = vmul.f32 -1.442695, %v5084_v34  ;;  %v5009_v48 = vpack.c.bf16 %v3682_v40, %v3681_v9 }
 0xe8a   :  { %v3845_v25 = vmul.f32 -1.442695, %v5069_v53  ;;  %v5012_v53 = vpack.c.bf16 %v3684_v4, %v3683_v36 }
 0xe8b   :  { %5376 = vpow2.f32 %v3844_v22  ;;  %v3685_v22 = vld [vmem:[#allocation17 + $0x40] sm:$0xff] }
 0xe8c   :  { %5378 = vpow2.f32 %v3845_v25  ;;  %v3686_v25 = vld [vmem:[#allocation17 + $0x48] sm:$0xff] }
 0xe8d   :  { %5380 = vtanh.f32 %v5085_v50  ;;  %v5015_v34 = vpack.c.bf16 %v3686_v25, %v3685_v22  ;;  %v3687_v50 = vld [vmem:[#allocation17 + $0x50] sm:$0xff] }
 0xe8e   :  { %5382 = vpow2.f32 %v3846_v54  ;;  %v3688_v54 = vld [vmem:[#allocation17 + $0x58] sm:$0xff] }
 0xe95   :  { %v5377_v23 = vpop.eup %5376 }
 0xe96   :  { %v3317_v61 = vadd.f32 1.0, %v5377_v23  ;;  %v5379_v26 = vpop.eup %5378  ;;  %v5018_v23 = vpack.c.bf16 %v3688_v54, %v3687_v50 }
 0xe97   :  { %v3318_v5 = vadd.f32 1.0, %v5379_v26  ;;  %v5381_v13 = vpop.eup %5380  ;;  %v3690_v26 = vld [vmem:[#allocation17 + $0x68] sm:$0xff] }
 0xe98   :  { %5384 = vrcp.f32 %v3317_v61  ;;  %v5383_v15 = vpop.eup %5382  ;;  %v3689_v61 = vld [vmem:[#allocation17 + $0x60] sm:$0xff] }
 0xe99   :  { %5386 = vrcp.f32 %v3318_v5  ;;  %v3319_v52 = vadd.f32 1.0, %v5383_v15  ;;  %v5021_v5 = vpack.c.bf16 %v3690_v26, %v3689_v61  ;;  %v3692_v15 = vld [vmem:[#allocation17 + $0x78] sm:$0xff] }
 0xe9b   :  { %5388 = vrcp.f32 %v3319_v52 }
 0xea2   :  { %v5385_v39 = vpop.eup %5384 }
 0xea3   :  { %v3328_v14 = vmul.f32 %v5385_v39, %v5381_v13  ;;  %v5387_v46 = vpop.eup %5386  ;;  %v3691_v13 = vld [vmem:[#allocation17 + $0x70] sm:$0xff] }
 0xea4   :  { %v3327_v16 = vmul.f32 %v5387_v46, %v6582_v45  ;;  %v3679_v45 = vld [vmem:[#allocation17 + $0x10] sm:$0xff]  ;;  %v5024_v39 = vpack.c.bf16 %v3692_v15, %v3691_v13 }
 0xea5   :  { %v5389_v1 = vpop.eup %5388  ;;  %v5006_v21 = vpack.c.bf16 %v3680_v17, %v3679_v45 }
 0xea6   :  { %v6624_v20 = vadd.f32 %v3328_v14, %v3327_v16 }
 0xea8   :  { %5390 = vtanh.f32 %v6624_v20 }
 0xeb2   :  { %v5391_v27 = vpop.eup %5390 }
 0xeb3   :  { %v3331_v44 = vmul.f32 %v5391_v27, %v5389_v1 }
 0xeb5   :  { %3401 = vmatmul.mubr.f32.vlgmr.msra.gmra.mrb[28].mxu0 %v3331_v44  ;;  %3472 = vmatmul.mubr.f32.vlgmr.msra.gmra.mrb[28].mxu1 %v3331_v44 }
 0xeb6   :  { %4941 = vmatpush1.bf16.msra.mxu0 %v6254_v18  ;;  %4973 = vmatpush1.bf16.msra.mxu1 %v6257_v31 }
 0xeb7   :  { %4943 = vmatprep.subr.bf16.mxu0 %v6262_v41  ;;  %4975 = vmatprep.subr.bf16.mxu1 %v6264_v59 }
 0xeb8   :  { %3570 = vmatprep.mubr.f32.mxu0 %v5598_v0  ;;  %3641 = vmatprep.mubr.f32.mxu1 %v5598_v0 }
 0xeba   :  { %4945 = vmatpush1.bf16.msra.mxu0 %v6266_v55  ;;  %4977 = vmatpush1.bf16.msra.mxu1 %v6269_v62 }
 0xebb   :  { %4947 = vmatprep.subr.bf16.mxu0 %v6274_v29  ;;  %4979 = vmatprep.subr.bf16.mxu1 %v6276_v42 }
 0xebe   :  { %4949 = vmatpush1.bf16.msra.mxu0 %v6278_v47  ;;  %4981 = vmatpush1.bf16.msra.mxu1 %v6281_v58 }
 0xebf   :  { %4951 = vmatprep.subr.bf16.mxu0 %v6286_v8  ;;  %4983 = vmatprep.subr.bf16.mxu1 %v6288_v24 }
 0xec2   :  { %4953 = vmatpush1.bf16.msra.mxu0 %v6290_v28  ;;  %4985 = vmatpush1.bf16.msra.mxu1 %v6293_v43 }
 0xec3   :  { %4955 = vmatprep.subr.bf16.mxu0 %v6298_v60  ;;  %4987 = vmatprep.subr.bf16.mxu1 %v6300_v57 }
 0xec6   :  { %4957 = vmatpush1.bf16.msra.mxu0 %v6302_v51  ;;  %4989 = vmatpush1.bf16.msra.mxu1 %v6305_v30 }
 0xec7   :  { %4959 = vmatprep.subr.bf16.mxu0 %v6309_v12  ;;  %4991 = vmatprep.subr.bf16.mxu1 %v6311_v37 }
 0xeca   :  { %4961 = vmatpush1.bf16.msra.mxu0 %v6314_v7  ;;  %4993 = vmatpush1.bf16.msra.mxu1 %v6318_v35 }
 0xecb   :  { %4963 = vmatprep.subr.bf16.mxu0 %v6320_v38  ;;  %4995 = vmatprep.subr.bf16.mxu1 %v6322_v2 }
 0xece   :  { %4965 = vmatpush1.bf16.msra.mxu0 %v6325_v19  ;;  %4997 = vmatpush1.bf16.msra.mxu1 %v6329_v33 }
 0xecf   :  { %4967 = vmatprep.subr.bf16.mxu0 %v6334_v56  ;;  %4999 = vmatprep.subr.bf16.mxu1 %v6336_v6  ;;  %v3677_v56 = vld [vmem:[#allocation17] sm:$0xff]  ;;  %v3678_v6 = vld [vmem:[#allocation17 + $0x8] sm:$0xff] }
 0xed2   :  { %4969 = vmatpush1.bf16.msra.mxu0 %v6338_v3  ;;  %5001 = vmatpush1.bf16.msra.mxu1 %v6341_v32  ;;  %v5003_v3 = vpack.c.bf16 %v3678_v6, %v3677_v56  ;;  %v5599_v32 = vmov 0.0|0.0  }
 0xed3   :  { %5002 = vmatprep.subr.bf16.mxu0 %v5599_v32 }
 0xf88   :  { %v3402_v18 = vpop.f32.mrb[28].mxu0  ;;  %v3473_v31 = vpop.f32.mrb[28].mxu1 }
 0xf89   :  { %v5070_v41 = vadd.f32 %v3402_v18, %v6396_v49  ;;  %v3404_v59 = vpop.f32.mrb[29].mxu0  ;;  %v3475_v55 = vpop.f32.mrb[29].mxu1  ;;  %v5086_v47 = vadd.f32 %v3473_v31, %v6406_v11 }
 0xf8a   :  { %v5071_v62 = vadd.f32 %v3404_v59, %v6400_v63  ;;  %v5087_v58 = vadd.f32 %v3475_v55, %v6410_v10 }
 0xf8b   :  { %v3847_v29 = vmul.f32 -1.442695, %v5070_v41  ;;  %v3849_v8 = vmul.f32 -1.442695, %v5086_v47 }
 0xf8c   :  { %v3848_v42 = vmul.f32 -1.442695, %v5071_v62 }
 0xf8d   :  { %5392 = vpow2.f32 %v3847_v29 }
 0xf8e   :  { %5394 = vpow2.f32 %v3848_v42 }
 0xf8f   :  { %5396 = vtanh.f32 %v5087_v58 }
 0xf90   :  { %5398 = vpow2.f32 %v3849_v8 }
 0xf97   :  { %v5393_v24 = vpop.eup %5392 }
 0xf98   :  { %v3487_v28 = vadd.f32 1.0, %v5393_v24  ;;  %v5395_v43 = vpop.eup %5394 }
 0xf99   :  { %v3488_v60 = vadd.f32 1.0, %v5395_v43  ;;  %v5397_v57 = vpop.eup %5396  ;;  %v3853_v43 = vld [vmem:[%s6696_s8] ss:$0 sm:$0xff] }
 0xf9a   :  { %5400 = vrcp.f32 %v3487_v28  ;;  %v5399_v51 = vpop.eup %5398 }
 0xf9b   :  { %5402 = vrcp.f32 %v3488_v60  ;;  %v3489_v7 = vadd.f32 1.0, %v5399_v51 }
 0xf9d   :  { %5404 = vrcp.f32 %v3489_v7 }
 0xfa4   :  { %v5401_v30 = vpop.eup %5400 }
 0xfa5   :  { %v3498_v12 = vmul.f32 %v5401_v30, %v5397_v57  ;;  %v5403_v37 = vpop.eup %5402 }
 0xfa6   :  { %v3497_v35 = vmul.f32 %v5403_v37, %v6624_v20 }
 0xfa7   :  { %v5405_v2 = vpop.eup %5404 }
 0xfa8   :  { %v6664_v38 = vadd.f32 %v3498_v12, %v3497_v35 }
 0xfaa   :  { %5406 = vtanh.f32 %v6664_v38 }
 0xfb4   :  { %v5407_v19 = vpop.eup %5406 }
 0xfb5   :  { %v3501_v33 = vmul.f32 %v5407_v19, %v5405_v2 }
 0xfb7   :  { %3571 = vmatmul.mubr.f32.vlgmr.msra.gmra.mrb[30].mxu0 %v3501_v33  ;;  %3642 = vmatmul.mubr.f32.vlgmr.msra.gmra.mrb[30].mxu1 %v3501_v33 }
 0xfb8   :  { %5004 = vmatpush3.bf16.msra.mxu0 %v5003_v3  ;;  %3903 = vmatprep.mubr.msk.f32.mxu0 %vm5600_vm1, %v5598_v0 }
 0xfb9   :  { %5005 = vmatprep.subr.bf16.mxu0 %v5599_v32 }
 0xfbc   :  { %5007 = vmatpush3.bf16.msra.mxu0 %v5006_v21 }
 0xfbd   :  { %5008 = vmatprep.subr.bf16.mxu0 %v5599_v32 }
 0xfc0   :  { %5010 = vmatpush3.bf16.msra.mxu0 %v5009_v48 }
 0xfc1   :  { %5011 = vmatprep.subr.bf16.mxu0 %v5599_v32 }
 0xfc4   :  { %5013 = vmatpush3.bf16.msra.mxu0 %v5012_v53 }
 0xfc5   :  { %5014 = vmatprep.subr.bf16.mxu0 %v5599_v32 }
 0xfc8   :  { %5016 = vmatpush3.bf16.msra.mxu0 %v5015_v34 }
 0xfc9   :  { %5017 = vmatprep.subr.bf16.mxu0 %v5599_v32 }
 0xfcc   :  { %5019 = vmatpush3.bf16.msra.mxu0 %v5018_v23 }
 0xfcd   :  { %5020 = vmatprep.subr.bf16.mxu0 %v5599_v32 }
 0xfd0   :  { %5022 = vmatpush3.bf16.msra.mxu0 %v5021_v5 }
 0xfd1   :  { %5023 = vmatprep.subr.bf16.mxu0 %v5599_v32 }
 0xfd4   :  { %5025 = vmatpush3.bf16.msra.mxu0 %v5024_v39 }
0x108a   :  { %v3572_v14 = vpop.f32.mrb[30].mxu0  ;;  %v3643_v46 = vpop.f32.mrb[30].mxu1 }
0x108b   :  { %v5072_v52 = vadd.f32 %v3572_v14, %v6396_v49  ;;  %v3574_v16 = vpop.f32.mrb[31].mxu0  ;;  %v3645_v20 = vpop.f32.mrb[31].mxu1  ;;  %v5088_v0 = vadd.f32 %v3643_v46, %v6406_v11 }
0x108c   :  { %v5073_v1 = vadd.f32 %v3574_v16, %v6400_v63  ;;  %v5089_v18 = vadd.f32 %v3645_v20, %v6410_v10 }
0x108d   :  { %v3850_v27 = vmul.f32 -1.442695, %v5072_v52  ;;  %v3852_v31 = vmul.f32 -1.442695, %v5088_v0 }
0x108e   :  { %v3851_v44 = vmul.f32 -1.442695, %v5073_v1 }
0x108f   :  { %5408 = vpow2.f32 %v3850_v27 }
0x1090   :  { %5410 = vpow2.f32 %v3851_v44 }
0x1091   :  { %5412 = vtanh.f32 %v5089_v18 }
0x1092   :  { %5414 = vpow2.f32 %v3852_v31 }
0x1099   :  { %v5409_v41 = vpop.eup %5408 }
0x109a   :  { %v3657_v59 = vadd.f32 1.0, %v5409_v41  ;;  %v5411_v55 = vpop.eup %5410 }
0x109b   :  { %v3658_v49 = vadd.f32 1.0, %v5411_v55  ;;  %v5413_v62 = vpop.eup %5412 }
0x109c   :  { %5416 = vrcp.f32 %v3657_v59  ;;  %v5415_v29 = vpop.eup %5414 }
0x109d   :  { %5418 = vrcp.f32 %v3658_v49  ;;  %v3659_v58 = vadd.f32 1.0, %v5415_v29 }
0x109f   :  { %5420 = vrcp.f32 %v3659_v58 }
0x10a6   :  { %v5417_v63 = vpop.eup %5416 }
0x10a7   :  { %v3668_v42 = vmul.f32 %v5417_v63, %v5413_v62  ;;  %v5419_v47 = vpop.eup %5418 }
0x10a8   :  { %v3667_v8 = vmul.f32 %v5419_v47, %v6664_v38 }
0x10a9   :  { %v5421_v10 = vpop.eup %5420 }
0x10aa   :  { %v3669_v11 = vadd.f32 %v3668_v42, %v3667_v8 }
0x10ac   :  { %5422 = vtanh.f32 %v3669_v11 }
0x10b6   :  { %v5423_v24 = vpop.eup %5422 }
0x10b7   :  { %v3671_v28 = vmul.f32 %v5423_v24, %v5421_v10 }
0x10b9   :  { %3904 = vmatmul.mubr.f32.vlgmr.msra.gmra.mrb[32].mxu0 %v3671_v28 }
0x118c   :  { %v3766_v60 = vpop.f32.mrb[32].mxu0 }
0x118d   :  { %v3767_v57 = vadd.f32 %v3853_v43, %v3766_v60  ;;  %v3905_v51 = vpop.f32.mrb[33].mxu0 }
0x118f   :  { %3770 = vst [vmem:[#allocation19] sm:$0xff] %v3767_v57 }
0x1190   :  { %5567 = shalt.err (!%p5564_p10)
}
0x1191   :  { %s5568_s27 = scalar_lea.hbm %s6697_s9, 128 }
0x1192   :  { %p5569_p11 = scmp.ne.s32.totalorder %s6697_s9, %s5568_s27  ;;  %p5572_p12 = scmp.lt.u32.totalorder %s5568_s27, %s6697_s9 }
0x1194   :  { %p5574_p13 = pnand %p5572_p12, %p5569_p11 }
0x1196   :  { %5577 = shalt.err (!%p5574_p13)
}
0x1197   :  { %3780 = dma.vmem_to_hbm [thread:$0]  %s3778_s21, 128, %s6697_s9, [#allocation10]  }
0x1198   :  { %5586 = dma.done.wait [#allocation10], 128  }
0x1199   :  { %5587 = vsyncadd [#allocation10], 4294967168 }
0x119a   :  { %3784 = vsyncpa [#allocation9], 1 }
0x119b   :  { %3785 = vsyncpa [#allocation12], 1 }
0x119c   :  { %3786 = vsyncpa [#allocation15], 1 }
0x119d   :  { %3787 = vsyncpa [#allocation18], 1 }
0x119e   :  { %3788 = vsyncpa [#allocation10], 1 }

</bundles_post_ra>
